<compile_context>
chip_gen: v7x
topology: tpu7x:2x2x1
jax: 0.10.0
libtpu: 0.0.40
codegen_flags: <defaults>
</compile_context>

<pallas_src>
import functools
import math

import jax
import jax.numpy as jnp
from jax.experimental import pallas as pl
from jax.experimental.pallas import tpu as pltpu

EPS = 1e-6
NEG_INF = 1e9


# --------------------------- capability probe --------------------------------

@functools.lru_cache(maxsize=None)
def _single_buffer_supported():
    """Probe once whether BlockSpec(pipeline_mode=pl.Buffered(1)) compiles and
    behaves on this jax/backend; otherwise fall back to default buffering."""
    if not hasattr(pl, "Buffered"):
        return False

    def _probe_kernel(x_ref, w_ref, o_ref):
        o_ref[...] = x_ref[...] + w_ref[...]

    try:
        out = pl.pallas_call(
            _probe_kernel,
            grid=(2,),
            in_specs=[
                pl.BlockSpec((8, 128), lambda i: (i, 0)),
                pl.BlockSpec((8, 128), lambda i: (0, 0),
                             pipeline_mode=pl.Buffered(1)),
            ],
            out_specs=pl.BlockSpec((8, 128), lambda i: (i, 0)),
            out_shape=jax.ShapeDtypeStruct((16, 128), jnp.float32),
        )(jnp.zeros((16, 128), jnp.float32), jnp.ones((8, 128), jnp.float32))
        jax.block_until_ready(out)
        return bool(jnp.all(out == 1.0))
    except Exception:  # pragma: no cover - jax without Buffered(1) support
        return False


# ----------------------------- Pallas kernel ---------------------------------

def _decoder_layer_kernel(
    x_ref, mem_ref, tgt_m_ref, src_m_ref,
    ln0a_ref, ln0b_ref, wqkv_ref, bqkv_ref, wo0_ref, bo0_ref,
    ln1a_ref, ln1b_ref, wq1_ref, bq1_ref, wkv1_ref, bkv1_ref, wo1_ref, bo1_ref,
    ln2a_ref, ln2b_ref, w1_ref, b1_ref, w2_ref, b2_ref,
    fina_ref, finb_ref,
    o_ref,
    heads_ref,
    *, h, eps, apply_final_norm):
    """One full decoder layer (+ optional fused final LayerNorm) for one batch row."""
    C = x_ref.shape[-1]
    d_k = C // h
    scale = 1.0 / math.sqrt(d_k)

    x = x_ref[0]                               # (T, C)
    mem = mem_ref[0]                           # (S, C)
    # Additive mask bias computed ONCE per sublayer (not per head): 0 where the
    # mask is 1, -1e9 where it is 0.  After the row-max subtraction exp()
    # underflows to exactly 0 either way, matching the reference's
    # jnp.where(mask == 0, -1e9, scores).
    tgt_bias = (tgt_m_ref[0] - 1.0) * NEG_INF  # (T, T)
    src_bias = (src_m_ref[0] - 1.0) * NEG_INF  # (1, S)

    def layer_norm(z, a_ref, b_ref):
        # torch.Tensor.std is UNBIASED (n-1); reference uses (x-mean)/(std+eps).
        mean = jnp.mean(z, axis=-1, keepdims=True)
        diff = z - mean
        std = jnp.sqrt(jnp.sum(diff * diff, axis=-1, keepdims=True) / (C - 1))
        return a_ref[...] * diff / (std + eps) + b_ref[...]

    def attend_project(q, k, v, neg_bias, wo_ref, bo_ref):
        # q is pre-scaled by 1/sqrt(d_k).  Each head's softmax(QK^T)V lands in
        # its lane-column slice of the (T, C) VMEM scratch; the output
        # projection is then ONE lane-dense (T,C)@(C,C) matmul (contraction
        # depth K=C instead of h matmuls at K=d_k, no vreg accumulator).
        for i in range(h):
            lo = i * d_k
            s = jax.lax.dot_general(
                q[:, lo:lo + d_k], k[:, lo:lo + d_k],
                (((1,), (1,)), ((), ())),
                preferred_element_type=jnp.float32)
            s = s + neg_bias
            s = s - jnp.max(s, axis=-1, keepdims=True)
            p = jnp.exp(s)
            # Exact reciprocal (approx=True can exceed the 1e-4 tolerance);
            # normalization applied to the (T, d_k) head output, not (T, Tk).
            inv = pl.reciprocal(jnp.sum(p, axis=-1, keepdims=True))
            heads_ref[:, lo:lo + d_k] = (
                jnp.dot(p, v[:, lo:lo + d_k],
                        preferred_element_type=jnp.float32) * inv)
        return jnp.dot(heads_ref[...], wo_ref[...],
                       preferred_element_type=jnp.float32) + bo_ref[...]

    # ---- sublayer 0: masked self-attention (dropout=0 -> identity) ----------
    y = layer_norm(x, ln0a_ref, ln0b_ref)
    qkv = jnp.dot(y, wqkv_ref[...], preferred_element_type=jnp.float32) + bqkv_ref[...]
    x = x + attend_project(qkv[:, :C] * scale, qkv[:, C:2 * C], qkv[:, 2 * C:],
                           tgt_bias, wo0_ref, bo0_ref)

    # ---- sublayer 1: source attention over encoder memory -------------------
    y = layer_norm(x, ln1a_ref, ln1b_ref)
    q = (jnp.dot(y, wq1_ref[...], preferred_element_type=jnp.float32)
         + bq1_ref[...]) * scale
    kv = jnp.dot(mem, wkv1_ref[...], preferred_element_type=jnp.float32) + bkv1_ref[...]
    x = x + attend_project(q, kv[:, :C], kv[:, C:], src_bias, wo1_ref, bo1_ref)

    # ---- sublayer 2: position-wise feed-forward ------------------------------
    y = layer_norm(x, ln2a_ref, ln2b_ref)
    hdn = jnp.maximum(
        jnp.dot(y, w1_ref[...], preferred_element_type=jnp.float32) + b1_ref[...], 0.0)
    x = x + jnp.dot(hdn, w2_ref[...], preferred_element_type=jnp.float32) + b2_ref[...]

    # ---- final Decoder LayerNorm fused into the last layer -------------------
    if apply_final_norm:
        x = layer_norm(x, fina_ref, finb_ref)

    o_ref[0] = x


# ------------------------------ model wiring ----------------------------------

def _per_batch_spec(shape):
    nd = len(shape)
    return pl.BlockSpec((1,) + tuple(shape[1:]),
                        lambda b, nd=nd: (b,) + (0,) * (nd - 1))


def _broadcast_spec(shape):
    nd = len(shape)
    idx = lambda b, nd=nd: (0,) * nd
    if _single_buffer_supported():
        # Constant index_map -> no refetch needed; single buffer halves the
        # VMEM footprint of every weight/bias operand.
        return pl.BlockSpec(tuple(shape), idx, pipeline_mode=pl.Buffered(1))
    return pl.BlockSpec(tuple(shape), idx)


def _maybe_batched_spec(shape, batch):
    # Masks keep their natural batch dim: shared (broadcast) masks are DMA'd
    # once per layer instead of once per batch element.
    return _per_batch_spec(shape) if shape[0] == batch else _broadcast_spec(shape)


def _vmem_limit_bytes(operands, out_block_shape):
    """Weights (single-buffered when supported) + 2x activation blocks
    + scratch + headroom, clamped to [32 MiB, 64 MiB] (safe on v5e/v6e/v7x)."""
    itemsize = 4
    act = sum(math.prod(op.shape[1:]) for op in operands[:4]) * itemsize
    act += math.prod(out_block_shape) * itemsize
    wmult = 1 if _single_buffer_supported() else 2
    weights = sum(math.prod(op.shape) for op in operands[4:]) * itemsize * wmult
    scratch = math.prod(out_block_shape) * itemsize
    need = 2 * act + weights + scratch + (8 << 20)
    return int(min(max(need, 32 << 20), 64 << 20))


def _decoder_layer_call(x, memory, tgt_m, src_m, p, h, *,
                        final_a, final_b, apply_final_norm):
    B, T, C = x.shape

    operands = [
        x, memory, tgt_m, src_m,
        p["ln0_a"], p["ln0_b"], p["wqkv"], p["bqkv"], p["wo0"], p["bo0"],
        p["ln1_a"], p["ln1_b"], p["wq1"], p["bq1"],
        p["wkv1"], p["bkv1"], p["wo1"], p["bo1"],
        p["ln2_a"], p["ln2_b"], p["ff_w1"], p["ff_b1"], p["ff_w2"], p["ff_b2"],
        final_a, final_b,
    ]
    in_specs = [
        _per_batch_spec(x.shape),
        _per_batch_spec(memory.shape),
        _maybe_batched_spec(tgt_m.shape, B),
        _maybe_batched_spec(src_m.shape, B),
    ] + [_broadcast_spec(op.shape) for op in operands[4:]]

    return pl.pallas_call(
        functools.partial(_decoder_layer_kernel, h=h, eps=EPS,
                          apply_final_norm=apply_final_norm),
        grid=(B,),
        in_specs=in_specs,
        out_specs=_per_batch_spec((B, T, C)),
        out_shape=jax.ShapeDtypeStruct((B, T, C), jnp.float32),
        scratch_shapes=[pltpu.VMEM((T, C), jnp.float32)],
        compiler_params=pltpu.CompilerParams(
            dimension_semantics=("parallel",),
            vmem_limit_bytes=_vmem_limit_bytes(operands, (T, C)),
        ),
    )(*operands)


def prepare_params(params):
    """One-time weight prep (outside the forward): fuse Q/K/V (self-attn) and
    K/V (src-attn) projections and pre-reshape biases/LN params to (1, C) rows
    so no jnp.concatenate/reshape sits between consecutive pallas_calls."""
    row = lambda v: v.reshape(1, -1)
    layers = []
    for p in params["layers"]:
        sa, ca = p["self_attn"], p["src_attn"]
        layers.append(dict(
            wqkv=jnp.concatenate([sa["wq"], sa["wk"], sa["wv"]], axis=1),
            bqkv=row(jnp.concatenate([sa["bq"], sa["bk"], sa["bv"]])),
            wo0=sa["wo"], bo0=row(sa["bo"]),
            wq1=ca["wq"], bq1=row(ca["bq"]),
            wkv1=jnp.concatenate([ca["wk"], ca["wv"]], axis=1),
            bkv1=row(jnp.concatenate([ca["bk"], ca["bv"]])),
            wo1=ca["wo"], bo1=row(ca["bo"]),
            ff_w1=p["ff_w1"], ff_b1=row(p["ff_b1"]),
            ff_w2=p["ff_w2"], ff_b2=row(p["ff_b2"]),
            **{f"ln{i}_{s}": row(p[f"ln{i}_{s}"]) for i in range(3) for s in "ab"},
        ))
    return dict(layers=layers,
                norm_a=row(params["norm_a"]), norm_b=row(params["norm_b"]))


def decoder_forward(x, memory, src_mask, tgt_mask, prepared, h):
    """x:(B,T,C)  memory:(B,S,C)  src_mask:(B|1,1,1,S)  tgt_mask:(B|1,1,T,T)."""
    B, T, C = x.shape
    S = memory.shape[1]
    # Drop the broadcast head dim but keep the natural batch dim (no broadcast_to).
    tgt_m = tgt_mask.reshape(tgt_mask.shape[0], T, T)
    src_m = src_mask.reshape(src_mask.shape[0], 1, S)
    n = len(prepared["layers"])
    for li, p in enumerate(prepared["layers"]):
        x = _decoder_layer_call(
            x, memory, tgt_m, src_m, p, h,
            final_a=prepared["norm_a"], final_b=prepared["norm_b"],
            apply_final_norm=(li == n - 1))
    return x


# --------------------------- pure-JAX reference --------------------------------

def _ln_ref(x, a, b, eps=EPS):
    mean = x.mean(-1, keepdims=True)
    diff = x - mean
    std = jnp.sqrt((diff * diff).sum(-1, keepdims=True) / (x.shape[-1] - 1))
    return a * diff / (std + eps) + b


def _mha_ref(query, key, value, mask, p, h):
    B, Tq, d_model = query.shape
    d_k = d_model // h

    def proj(x, w, b):
        return (x @ w + b).reshape(x.shape[0], x.shape[1], h, d_k).transpose(0, 2, 1, 3)

    q = proj(query, p["wq"], p["bq"])
    k = proj(key, p["wk"], p["bk"])
    v = proj(value, p["wv"], p["bv"])
    scores = jnp.einsum("bhqd,bhkd->bhqk", q, k) / math.sqrt(d_k)
    scores = jnp.where(mask == 0.0, -1e9, scores)
    attn = jax.nn.softmax(scores, axis=-1)
    out = jnp.einsum("bhqk,bhkd->bhqd", attn, v)
    out = out.transpose(0, 2, 1, 3).reshape(B, Tq, d_model)
    return out @ p["wo"] + p["bo"]


def decoder_ref(x, memory, src_mask, tgt_mask, params, h):
    for p in params["layers"]:
        y = _ln_ref(x, p["ln0_a"], p["ln0_b"])
        x = x + _mha_ref(y, y, y, tgt_mask, p["self_attn"], h)
        y = _ln_ref(x, p["ln1_a"], p["ln1_b"])
        x = x + _mha_ref(y, memory, memory, src_mask, p["src_attn"], h)
        y = _ln_ref(x, p["ln2_a"], p["ln2_b"])
        x = x + (jnp.maximum(y @ p["ff_w1"] + p["ff_b1"], 0.0) @ p["ff_w2"] + p["ff_b2"])
    return _ln_ref(x, params["norm_a"], params["norm_b"])


# ------------------------------ parameters -------------------------------------

def init_params(key, N, d_model, d_ff):
    keys = iter(jax.random.split(key, N * 16 + 4))

    def lin(din, dout):
        w = jax.random.normal(next(keys), (din, dout), jnp.float32) / math.sqrt(din)
        return w, jnp.zeros((dout,), jnp.float32)

    layers = []
    for _ in range(N):
        p = {}
        for name in ("self_attn", "src_attn"):
            wq, bq = lin(d_model, d_model)
            wk, bk = lin(d_model, d_model)
            wv, bv = lin(d_model, d_model)
            wo, bo = lin(d_model, d_model)
            p[name] = dict(wq=wq, bq=bq, wk=wk, bk=bk, wv=wv, bv=bv, wo=wo, bo=bo)
        p["ff_w1"], p["ff_b1"] = lin(d_model, d_ff)
        p["ff_w2"], p["ff_b2"] = lin(d_ff, d_model)
        for i in range(3):
            p[f"ln{i}_a"] = jnp.ones((d_model,), jnp.float32)
            p[f"ln{i}_b"] = jnp.zeros((d_model,), jnp.float32)
        layers.append(p)
    return dict(
        layers=layers,
        norm_a=jnp.ones((d_model,), jnp.float32),
        norm_b=jnp.zeros((d_model,), jnp.float32),
    )


# ---------------------------------- main ----------------------------------------

if __name__ == "__main__":
    # d_model = 128 keeps the residual-stream output lane-dense (no masked stores).
    B, T, S, d_model, d_ff, h, N = 2, 16, 16, 128, 256, 4, 2

    key = jax.random.PRNGKey(0)
    kx, km, kp = jax.random.split(key, 3)
    x = jax.random.normal(kx, (B, T, d_model), jnp.float32)
    memory = jax.random.normal(km, (B, S, d_model), jnp.float32)
    # tgt mask: causal (subsequent) mask at its natural broadcast shape (1,1,T,T)
    # -> DMA'd once per layer, not replicated over batch or heads.
    tgt_mask = jnp.tril(jnp.ones((T, T), jnp.float32))[None, None]
    # src mask: per-batch padding mask (all ones here).
    src_mask = jnp.ones((B, 1, 1, S), jnp.float32)

    params = init_params(kp, N, d_model, d_ff)
    prepared = prepare_params(params)   # one-time weight fusion, outside the forward

    out = decoder_forward(x, memory, src_mask, tgt_mask, prepared, h)
    out = jax.block_until_ready(out)

    ref = decoder_ref(x, memory, src_mask, tgt_mask, params, h)
    assert out.shape == (B, T, d_model)
    err = float(jnp.max(jnp.abs(out - ref)))
    assert jnp.allclose(out, ref, atol=1e-4, rtol=1e-4), err

    print("KERNEL_OK")
</pallas_src>

<mosaic_0001>
module attributes {stable_mosaic.version = 11 : i64} {
  func.func @_probe_kernel(%arg0: i32, %arg1: memref<8x128xf32, #tpu.memory_space<vmem>>, %arg2: memref<8x128xf32, #tpu.memory_space<vmem>>, %arg3: memref<8x128xf32, #tpu.memory_space<vmem>>) attributes {dimension_semantics = [#tpu.dimension_semantics<arbitrary>], iteration_bounds = array<i64: 2>, scalar_prefetch = 0 : i64, scratch_operands = 0 : i64, tpu.core_type = #tpu.core_type<tc>, window_params = [{transform_indices = @transform_0, window_bounds = array<i64: 8, 128>}, {pipeline_mode = #tpu.pipeline_mode<synchronous>, transform_indices = @transform_1, window_bounds = array<i64: 8, 128>}, {transform_indices = @transform_2, window_bounds = array<i64: 8, 128>}]} {
    %c0 = arith.constant 0 : index
    %c0_0 = arith.constant 0 : index
    %0 = vector.load %arg1[%c0, %c0_0] : memref<8x128xf32, #tpu.memory_space<vmem>>, vector<8x128xf32>
    %c0_1 = arith.constant 0 : index
    %c0_2 = arith.constant 0 : index
    %1 = vector.load %arg2[%c0_1, %c0_2] : memref<8x128xf32, #tpu.memory_space<vmem>>, vector<8x128xf32>
    %2 = arith.addf %0, %1 : vector<8x128xf32>
    %c0_3 = arith.constant 0 : index
    %c0_4 = arith.constant 0 : index
    %3 = vector.load %arg3[%c0_3, %c0_4] : memref<8x128xf32, #tpu.memory_space<vmem>>, vector<8x128xf32>
    tpu.vector_store %arg3[%c0_3, %c0_4], %2 {strides = array<i32>} : memref<8x128xf32, #tpu.memory_space<vmem>>, vector<8x128xf32>,
    return
  }
  func.func @transform_0(%arg0: i32) -> (i32, i32) {
    %c0_i32 = arith.constant 0 : i32
    %c0_i32_0 = arith.constant 0 : i32
    return %arg0, %c0_i32 : i32, i32
  }
  func.func @transform_1(%arg0: i32) -> (i32, i32) {
    %c0_i32 = arith.constant 0 : i32
    %c0_i32_0 = arith.constant 0 : i32
    %c0_i32_1 = arith.constant 0 : i32
    return %c0_i32, %c0_i32_0 : i32, i32
  }
  func.func @transform_2(%arg0: i32) -> (i32, i32) {
    %c0_i32 = arith.constant 0 : i32
    %c0_i32_0 = arith.constant 0 : i32
    return %arg0, %c0_i32 : i32, i32
  }
}

module attributes {stable_mosaic.version = 11 : i64} {
  func.func @_decoder_layer_kernel(%arg0: i32, %arg1: memref<1x16x128xf32, #tpu.memory_space<vmem>>, %arg2: memref<1x16x128xf32, #tpu.memory_space<vmem>>, %arg3: memref<1x16x16xf32, #tpu.memory_space<vmem>>, %arg4: memref<1x1x16xf32, #tpu.memory_space<vmem>>, %arg5: memref<1x128xf32, #tpu.memory_space<vmem>>, %arg6: memref<1x128xf32, #tpu.memory_space<vmem>>, %arg7: memref<128x384xf32, #tpu.memory_space<vmem>>, %arg8: memref<1x384xf32, #tpu.memory_space<vmem>>, %arg9: memref<128x128xf32, #tpu.memory_space<vmem>>, %arg10: memref<1x128xf32, #tpu.memory_space<vmem>>, %arg11: memref<1x128xf32, #tpu.memory_space<vmem>>, %arg12: memref<1x128xf32, #tpu.memory_space<vmem>>, %arg13: memref<128x128xf32, #tpu.memory_space<vmem>>, %arg14: memref<1x128xf32, #tpu.memory_space<vmem>>, %arg15: memref<128x256xf32, #tpu.memory_space<vmem>>, %arg16: memref<1x256xf32, #tpu.memory_space<vmem>>, %arg17: memref<128x128xf32, #tpu.memory_space<vmem>>, %arg18: memref<1x128xf32, #tpu.memory_space<vmem>>, %arg19: memref<1x128xf32, #tpu.memory_space<vmem>>, %arg20: memref<1x128xf32, #tpu.memory_space<vmem>>, %arg21: memref<128x256xf32, #tpu.memory_space<vmem>>, %arg22: memref<1x256xf32, #tpu.memory_space<vmem>>, %arg23: memref<256x128xf32, #tpu.memory_space<vmem>>, %arg24: memref<1x128xf32, #tpu.memory_space<vmem>>, %arg25: memref<1x128xf32, #tpu.memory_space<vmem>>, %arg26: memref<1x128xf32, #tpu.memory_space<vmem>>, %arg27: memref<1x16x128xf32, #tpu.memory_space<vmem>>, %arg28: memref<16x128xf32, #tpu.memory_space<vmem>>) attributes {dimension_semantics = [#tpu.dimension_semantics<parallel>], iteration_bounds = array<i64: 2>, scalar_prefetch = 0 : i64, scratch_operands = 1 : i64, tpu.core_type = #tpu.core_type<tc>, window_params = [{transform_indices = @transform_0, window_bounds = array<i64: 1, 16, 128>}, {transform_indices = @transform_1, window_bounds = array<i64: 1, 16, 128>}, {pipeline_mode = #tpu.pipeline_mode<synchronous>, transform_indices = @transform_2, window_bounds = array<i64: 1, 16, 16>}, {transform_indices = @transform_3, window_bounds = array<i64: 1, 1, 16>}, {pipeline_mode = #tpu.pipeline_mode<synchronous>, transform_indices = @transform_4, window_bounds = array<i64: 1, 128>}, {pipeline_mode = #tpu.pipeline_mode<synchronous>, transform_indices = @transform_5, window_bounds = array<i64: 1, 128>}, {pipeline_mode = #tpu.pipeline_mode<synchronous>, transform_indices = @transform_6, window_bounds = array<i64: 128, 384>}, {pipeline_mode = #tpu.pipeline_mode<synchronous>, transform_indices = @transform_7, window_bounds = array<i64: 1, 384>}, {pipeline_mode = #tpu.pipeline_mode<synchronous>, transform_indices = @transform_8, window_bounds = array<i64: 128, 128>}, {pipeline_mode = #tpu.pipeline_mode<synchronous>, transform_indices = @transform_9, window_bounds = array<i64: 1, 128>}, {pipeline_mode = #tpu.pipeline_mode<synchronous>, transform_indices = @transform_10, window_bounds = array<i64: 1, 128>}, {pipeline_mode = #tpu.pipeline_mode<synchronous>, transform_indices = @transform_11, window_bounds = array<i64: 1, 128>}, {pipeline_mode = #tpu.pipeline_mode<synchronous>, transform_indices = @transform_12, window_bounds = array<i64: 128, 128>}, {pipeline_mode = #tpu.pipeline_mode<synchronous>, transform_indices = @transform_13, window_bounds = array<i64: 1, 128>}, {pipeline_mode = #tpu.pipeline_mode<synchronous>, transform_indices = @transform_14, window_bounds = array<i64: 128, 256>}, {pipeline_mode = #tpu.pipeline_mode<synchronous>, transform_indices = @transform_15, window_bounds = array<i64: 1, 256>}, {pipeline_mode = #tpu.pipeline_mode<synchronous>, transform_indices = @transform_16, window_bounds = array<i64: 128, 128>}, {pipeline_mode = #tpu.pipeline_mode<synchronous>, transform_indices = @transform_17, window_bounds = array<i64: 1, 128>}, {pipeline_mode = #tpu.pipeline_mode<synchronous>, transform_indices = @transform_18, window_bounds = array<i64: 1, 128>}, {pipeline_mode = #tpu.pipeline_mode<synchronous>, transform_indices = @transform_19, window_bounds = array<i64: 1, 128>}, {pipeline_mode = #tpu.pipeline_mode<synchronous>, transform_indices = @transform_20, window_bounds = array<i64: 128, 256>}, {pipeline_mode = #tpu.pipeline_mode<synchronous>, transform_indices = @transform_21, window_bounds = array<i64: 1, 256>}, {pipeline_mode = #tpu.pipeline_mode<synchronous>, transform_indices = @transform_22, window_bounds = array<i64: 256, 128>}, {pipeline_mode = #tpu.pipeline_mode<synchronous>, transform_indices = @transform_23, window_bounds = array<i64: 1, 128>}, {pipeline_mode = #tpu.pipeline_mode<synchronous>, transform_indices = @transform_24, window_bounds = array<i64: 1, 128>}, {pipeline_mode = #tpu.pipeline_mode<synchronous>, transform_indices = @transform_25, window_bounds = array<i64: 1, 128>}, {transform_indices = @transform_26, window_bounds = array<i64: 1, 16, 128>}]} {
    %c0 = arith.constant 0 : index
    %c0_0 = arith.constant 0 : index
    %c0_1 = arith.constant 0 : index
    %0 = vector.load %arg1[%c0, %c0_0, %c0_1] : memref<1x16x128xf32, #tpu.memory_space<vmem>>, vector<1x16x128xf32>
    %1 = vector.shape_cast %0 : vector<1x16x128xf32> to vector<16x128xf32>
    %c0_2 = arith.constant 0 : index
    %c0_3 = arith.constant 0 : index
    %c0_4 = arith.constant 0 : index
    %2 = vector.load %arg2[%c0_2, %c0_3, %c0_4] : memref<1x16x128xf32, #tpu.memory_space<vmem>>, vector<1x16x128xf32>
    %3 = vector.shape_cast %2 : vector<1x16x128xf32> to vector<16x128xf32>
    %c0_5 = arith.constant 0 : index
    %c0_6 = arith.constant 0 : index
    %c0_7 = arith.constant 0 : index
    %4 = vector.load %arg3[%c0_5, %c0_6, %c0_7] : memref<1x16x16xf32, #tpu.memory_space<vmem>>, vector<1x16x16xf32>
    %5 = vector.shape_cast %4 : vector<1x16x16xf32> to vector<16x16xf32>
    %cst = arith.constant 1.000000e+00 : f32
    %6 = vector.broadcast %cst : f32 to vector<16x16xf32>
    %7 = arith.subf %5, %6 : vector<16x16xf32>
    %cst_8 = arith.constant 1.000000e+09 : f32
    %8 = vector.broadcast %cst_8 : f32 to vector<16x16xf32>
    %9 = arith.mulf %7, %8 : vector<16x16xf32>
    %c0_9 = arith.constant 0 : index
    %c0_10 = arith.constant 0 : index
    %c0_11 = arith.constant 0 : index
    %10 = vector.load %arg4[%c0_9, %c0_10, %c0_11] : memref<1x1x16xf32, #tpu.memory_space<vmem>>, vector<1x1x16xf32>
    %11 = vector.shape_cast %10 : vector<1x1x16xf32> to vector<1x16xf32>
    %cst_12 = arith.constant 1.000000e+00 : f32
    %12 = vector.broadcast %cst_12 : f32 to vector<1x16xf32>
    %13 = arith.subf %11, %12 : vector<1x16xf32>
    %cst_13 = arith.constant 1.000000e+09 : f32
    %14 = vector.broadcast %cst_13 : f32 to vector<1x16xf32>
    %15 = arith.mulf %13, %14 : vector<1x16xf32>
    %cst_14 = arith.constant dense<0.000000e+00> : vector<16xf32>
    %16 = vector.multi_reduction <add>, %1, %cst_14 [1] : vector<16x128xf32> to vector<16xf32>
    %17 = vector.shape_cast %16 : vector<16xf32> to vector<16x1xf32>
    %cst_15 = arith.constant 1.280000e+02 : f32
    %18 = vector.broadcast %cst_15 : f32 to vector<16x1xf32>
    %19 = arith.divf %17, %18 : vector<16x1xf32>
    %20 = vector.broadcast %19 : vector<16x1xf32> to vector<16x128xf32>
    %21 = arith.subf %1, %20 : vector<16x128xf32>
    %22 = arith.mulf %21, %21 : vector<16x128xf32>
    %cst_16 = arith.constant dense<0.000000e+00> : vector<16xf32>
    %23 = vector.multi_reduction <add>, %22, %cst_16 [1] : vector<16x128xf32> to vector<16xf32>
    %24 = vector.shape_cast %23 : vector<16xf32> to vector<16x1xf32>
    %cst_17 = arith.constant 1.270000e+02 : f32
    %25 = vector.broadcast %cst_17 : f32 to vector<16x1xf32>
    %26 = arith.divf %24, %25 : vector<16x1xf32>
    %27 = math.sqrt %26 : vector<16x1xf32>
    %c0_18 = arith.constant 0 : index
    %c0_19 = arith.constant 0 : index
    %28 = vector.load %arg5[%c0_18, %c0_19] : memref<1x128xf32, #tpu.memory_space<vmem>>, vector<1x128xf32>
    %29 = vector.broadcast %28 : vector<1x128xf32> to vector<16x128xf32>
    %30 = arith.mulf %29, %21 : vector<16x128xf32>
    %cst_20 = arith.constant 9.99999997E-7 : f32
    %31 = vector.broadcast %cst_20 : f32 to vector<16x1xf32>
    %32 = arith.addf %27, %31 : vector<16x1xf32>
    %33 = vector.broadcast %32 : vector<16x1xf32> to vector<16x128xf32>
    %34 = arith.divf %30, %33 : vector<16x128xf32>
    %c0_21 = arith.constant 0 : index
    %c0_22 = arith.constant 0 : index
    %35 = vector.load %arg6[%c0_21, %c0_22] : memref<1x128xf32, #tpu.memory_space<vmem>>, vector<1x128xf32>
    %36 = vector.broadcast %35 : vector<1x128xf32> to vector<16x128xf32>
    %37 = arith.addf %34, %36 : vector<16x128xf32>
    %c0_23 = arith.constant 0 : index
    %c0_24 = arith.constant 0 : index
    %38 = vector.load %arg7[%c0_23, %c0_24] : memref<128x384xf32, #tpu.memory_space<vmem>>, vector<128x384xf32>
    %cst_25 = arith.constant dense<0.000000e+00> : vector<16x384xf32>
    %39 = tpu.matmul %37, %38, %cst_25 {dimension_numbers = #tpu.dot_dimension_numbers<[1], [0], [0], [1], [0, 0, 1, 1], [], []>} : vector<16x128xf32>, vector<128x384xf32>, vector<16x384xf32> -> vector<16x384xf32>
    %c0_26 = arith.constant 0 : index
    %c0_27 = arith.constant 0 : index
    %40 = vector.load %arg8[%c0_26, %c0_27] : memref<1x384xf32, #tpu.memory_space<vmem>>, vector<1x384xf32>
    %41 = vector.broadcast %40 : vector<1x384xf32> to vector<16x384xf32>
    %42 = arith.addf %39, %41 : vector<16x384xf32>
    %43 = vector.extract_strided_slice %42 {offsets = [0, 0], sizes = [16, 128], strides = [1, 1]} : vector<16x384xf32> to vector<16x128xf32>
    %cst_28 = arith.constant 0.176776692 : f32
    %44 = vector.broadcast %cst_28 : f32 to vector<16x128xf32>
    %45 = arith.mulf %43, %44 : vector<16x128xf32>
    %46 = vector.extract_strided_slice %42 {offsets = [0, 128], sizes = [16, 128], strides = [1, 1]} : vector<16x384xf32> to vector<16x128xf32>
    %47 = vector.extract_strided_slice %42 {offsets = [0, 256], sizes = [16, 128], strides = [1, 1]} : vector<16x384xf32> to vector<16x128xf32>
    %48 = vector.extract_strided_slice %45 {offsets = [0, 0], sizes = [16, 32], strides = [1, 1]} : vector<16x128xf32> to vector<16x32xf32>
    %49 = vector.extract_strided_slice %46 {offsets = [0, 0], sizes = [16, 32], strides = [1, 1]} : vector<16x128xf32> to vector<16x32xf32>
    %cst_29 = arith.constant dense<0.000000e+00> : vector<16x16xf32>
    %50 = tpu.matmul %48, %49, %cst_29 {dimension_numbers = #tpu.dot_dimension_numbers<[1], [1], [0], [0], [0, 0, 1, 0], [], []>} : vector<16x32xf32>, vector<16x32xf32>, vector<16x16xf32> -> vector<16x16xf32>
    %51 = arith.addf %50, %9 : vector<16x16xf32>
    %cst_30 = arith.constant dense<0xFF800000> : vector<16xf32>
    %52 = vector.multi_reduction <maximumf>, %51, %cst_30 [1] : vector<16x16xf32> to vector<16xf32>
    %53 = vector.shape_cast %52 : vector<16xf32> to vector<16x1xf32>
    %54 = vector.broadcast %53 : vector<16x1xf32> to vector<16x16xf32>
    %55 = arith.subf %51, %54 : vector<16x16xf32>
    %56 = math.exp %55 : vector<16x16xf32>
    %cst_31 = arith.constant dense<0.000000e+00> : vector<16xf32>
    %57 = vector.multi_reduction <add>, %56, %cst_31 [1] : vector<16x16xf32> to vector<16xf32>
    %58 = vector.shape_cast %57 : vector<16xf32> to vector<16x1xf32>
    %59 = tpu.reciprocal %58 : vector<16x1xf32> -> vector<16x1xf32>
    %60 = vector.extract_strided_slice %47 {offsets = [0, 0], sizes = [16, 32], strides = [1, 1]} : vector<16x128xf32> to vector<16x32xf32>
    %cst_32 = arith.constant dense<0.000000e+00> : vector<16x32xf32>
    %61 = tpu.matmul %56, %60, %cst_32 {dimension_numbers = #tpu.dot_dimension_numbers<[1], [0], [0], [1], [0, 0, 1, 1], [], []>} : vector<16x16xf32>, vector<16x32xf32>, vector<16x32xf32> -> vector<16x32xf32>
    %62 = vector.broadcast %59 : vector<16x1xf32> to vector<16x32xf32>
    %63 = arith.mulf %61, %62 : vector<16x32xf32>
    %c0_33 = arith.constant 0 : index
    %c0_34 = arith.constant 0 : index
    %64 = vector.load %arg28[%c0_33, %c0_34] : memref<16x128xf32, #tpu.memory_space<vmem>>, vector<16x32xf32>
    tpu.vector_store %arg28[%c0_33, %c0_34], %63 {strides = array<i32>} : memref<16x128xf32, #tpu.memory_space<vmem>>, vector<16x32xf32>,
    %65 = vector.extract_strided_slice %45 {offsets = [0, 32], sizes = [16, 32], strides = [1, 1]} : vector<16x128xf32> to vector<16x32xf32>
    %66 = vector.extract_strided_slice %46 {offsets = [0, 32], sizes = [16, 32], strides = [1, 1]} : vector<16x128xf32> to vector<16x32xf32>
    %cst_35 = arith.constant dense<0.000000e+00> : vector<16x16xf32>
    %67 = tpu.matmul %65, %66, %cst_35 {dimension_numbers = #tpu.dot_dimension_numbers<[1], [1], [0], [0], [0, 0, 1, 0], [], []>} : vector<16x32xf32>, vector<16x32xf32>, vector<16x16xf32> -> vector<16x16xf32>
    %68 = arith.addf %67, %9 : vector<16x16xf32>
    %cst_36 = arith.constant dense<0xFF800000> : vector<16xf32>
    %69 = vector.multi_reduction <maximumf>, %68, %cst_36 [1] : vector<16x16xf32> to vector<16xf32>
    %70 = vector.shape_cast %69 : vector<16xf32> to vector<16x1xf32>
    %71 = vector.broadcast %70 : vector<16x1xf32> to vector<16x16xf32>
    %72 = arith.subf %68, %71 : vector<16x16xf32>
    %73 = math.exp %72 : vector<16x16xf32>
    %cst_37 = arith.constant dense<0.000000e+00> : vector<16xf32>
    %74 = vector.multi_reduction <add>, %73, %cst_37 [1] : vector<16x16xf32> to vector<16xf32>
    %75 = vector.shape_cast %74 : vector<16xf32> to vector<16x1xf32>
    %76 = tpu.reciprocal %75 : vector<16x1xf32> -> vector<16x1xf32>
    %77 = vector.extract_strided_slice %47 {offsets = [0, 32], sizes = [16, 32], strides = [1, 1]} : vector<16x128xf32> to vector<16x32xf32>
    %cst_38 = arith.constant dense<0.000000e+00> : vector<16x32xf32>
    %78 = tpu.matmul %73, %77, %cst_38 {dimension_numbers = #tpu.dot_dimension_numbers<[1], [0], [0], [1], [0, 0, 1, 1], [], []>} : vector<16x16xf32>, vector<16x32xf32>, vector<16x32xf32> -> vector<16x32xf32>
    %79 = vector.broadcast %76 : vector<16x1xf32> to vector<16x32xf32>
    %80 = arith.mulf %78, %79 : vector<16x32xf32>
    %c0_39 = arith.constant 0 : index
    %c32 = arith.constant 32 : index
    %81 = vector.load %arg28[%c0_39, %c32] : memref<16x128xf32, #tpu.memory_space<vmem>>, vector<16x32xf32>
    tpu.vector_store %arg28[%c0_39, %c32], %80 {strides = array<i32>} : memref<16x128xf32, #tpu.memory_space<vmem>>, vector<16x32xf32>,
    %82 = vector.extract_strided_slice %45 {offsets = [0, 64], sizes = [16, 32], strides = [1, 1]} : vector<16x128xf32> to vector<16x32xf32>
    %83 = vector.extract_strided_slice %46 {offsets = [0, 64], sizes = [16, 32], strides = [1, 1]} : vector<16x128xf32> to vector<16x32xf32>
    %cst_40 = arith.constant dense<0.000000e+00> : vector<16x16xf32>
    %84 = tpu.matmul %82, %83, %cst_40 {dimension_numbers = #tpu.dot_dimension_numbers<[1], [1], [0], [0], [0, 0, 1, 0], [], []>} : vector<16x32xf32>, vector<16x32xf32>, vector<16x16xf32> -> vector<16x16xf32>
    %85 = arith.addf %84, %9 : vector<16x16xf32>
    %cst_41 = arith.constant dense<0xFF800000> : vector<16xf32>
    %86 = vector.multi_reduction <maximumf>, %85, %cst_41 [1] : vector<16x16xf32> to vector<16xf32>
    %87 = vector.shape_cast %86 : vector<16xf32> to vector<16x1xf32>
    %88 = vector.broadcast %87 : vector<16x1xf32> to vector<16x16xf32>
    %89 = arith.subf %85, %88 : vector<16x16xf32>
    %90 = math.exp %89 : vector<16x16xf32>
    %cst_42 = arith.constant dense<0.000000e+00> : vector<16xf32>
    %91 = vector.multi_reduction <add>, %90, %cst_42 [1] : vector<16x16xf32> to vector<16xf32>
    %92 = vector.shape_cast %91 : vector<16xf32> to vector<16x1xf32>
    %93 = tpu.reciprocal %92 : vector<16x1xf32> -> vector<16x1xf32>
    %94 = vector.extract_strided_slice %47 {offsets = [0, 64], sizes = [16, 32], strides = [1, 1]} : vector<16x128xf32> to vector<16x32xf32>
    %cst_43 = arith.constant dense<0.000000e+00> : vector<16x32xf32>
    %95 = tpu.matmul %90, %94, %cst_43 {dimension_numbers = #tpu.dot_dimension_numbers<[1], [0], [0], [1], [0, 0, 1, 1], [], []>} : vector<16x16xf32>, vector<16x32xf32>, vector<16x32xf32> -> vector<16x32xf32>
    %96 = vector.broadcast %93 : vector<16x1xf32> to vector<16x32xf32>
    %97 = arith.mulf %95, %96 : vector<16x32xf32>
    %c0_44 = arith.constant 0 : index
    %c64 = arith.constant 64 : index
    %98 = vector.load %arg28[%c0_44, %c64] : memref<16x128xf32, #tpu.memory_space<vmem>>, vector<16x32xf32>
    tpu.vector_store %arg28[%c0_44, %c64], %97 {strides = array<i32>} : memref<16x128xf32, #tpu.memory_space<vmem>>, vector<16x32xf32>,
    %99 = vector.extract_strided_slice %45 {offsets = [0, 96], sizes = [16, 32], strides = [1, 1]} : vector<16x128xf32> to vector<16x32xf32>
    %100 = vector.extract_strided_slice %46 {offsets = [0, 96], sizes = [16, 32], strides = [1, 1]} : vector<16x128xf32> to vector<16x32xf32>
    %cst_45 = arith.constant dense<0.000000e+00> : vector<16x16xf32>
    %101 = tpu.matmul %99, %100, %cst_45 {dimension_numbers = #tpu.dot_dimension_numbers<[1], [1], [0], [0], [0, 0, 1, 0], [], []>} : vector<16x32xf32>, vector<16x32xf32>, vector<16x16xf32> -> vector<16x16xf32>
    %102 = arith.addf %101, %9 : vector<16x16xf32>
    %cst_46 = arith.constant dense<0xFF800000> : vector<16xf32>
    %103 = vector.multi_reduction <maximumf>, %102, %cst_46 [1] : vector<16x16xf32> to vector<16xf32>
    %104 = vector.shape_cast %103 : vector<16xf32> to vector<16x1xf32>
    %105 = vector.broadcast %104 : vector<16x1xf32> to vector<16x16xf32>
    %106 = arith.subf %102, %105 : vector<16x16xf32>
    %107 = math.exp %106 : vector<16x16xf32>
    %cst_47 = arith.constant dense<0.000000e+00> : vector<16xf32>
    %108 = vector.multi_reduction <add>, %107, %cst_47 [1] : vector<16x16xf32> to vector<16xf32>
    %109 = vector.shape_cast %108 : vector<16xf32> to vector<16x1xf32>
    %110 = tpu.reciprocal %109 : vector<16x1xf32> -> vector<16x1xf32>
    %111 = vector.extract_strided_slice %47 {offsets = [0, 96], sizes = [16, 32], strides = [1, 1]} : vector<16x128xf32> to vector<16x32xf32>
    %cst_48 = arith.constant dense<0.000000e+00> : vector<16x32xf32>
    %112 = tpu.matmul %107, %111, %cst_48 {dimension_numbers = #tpu.dot_dimension_numbers<[1], [0], [0], [1], [0, 0, 1, 1], [], []>} : vector<16x16xf32>, vector<16x32xf32>, vector<16x32xf32> -> vector<16x32xf32>
    %113 = vector.broadcast %110 : vector<16x1xf32> to vector<16x32xf32>
    %114 = arith.mulf %112, %113 : vector<16x32xf32>
    %c0_49 = arith.constant 0 : index
    %c96 = arith.constant 96 : index
    %115 = vector.load %arg28[%c0_49, %c96] : memref<16x128xf32, #tpu.memory_space<vmem>>, vector<16x32xf32>
    tpu.vector_store %arg28[%c0_49, %c96], %114 {strides = array<i32>} : memref<16x128xf32, #tpu.memory_space<vmem>>, vector<16x32xf32>,
    %c0_50 = arith.constant 0 : index
    %c0_51 = arith.constant 0 : index
    %116 = vector.load %arg28[%c0_50, %c0_51] : memref<16x128xf32, #tpu.memory_space<vmem>>, vector<16x128xf32>
    %c0_52 = arith.constant 0 : index
    %c0_53 = arith.constant 0 : index
    %117 = vector.load %arg9[%c0_52, %c0_53] : memref<128x128xf32, #tpu.memory_space<vmem>>, vector<128x128xf32>
    %cst_54 = arith.constant dense<0.000000e+00> : vector<16x128xf32>
    %118 = tpu.matmul %116, %117, %cst_54 {dimension_numbers = #tpu.dot_dimension_numbers<[1], [0], [0], [1], [0, 0, 1, 1], [], []>} : vector<16x128xf32>, vector<128x128xf32>, vector<16x128xf32> -> vector<16x128xf32>
    %c0_55 = arith.constant 0 : index
    %c0_56 = arith.constant 0 : index
    %119 = vector.load %arg10[%c0_55, %c0_56] : memref<1x128xf32, #tpu.memory_space<vmem>>, vector<1x128xf32>
    %120 = vector.broadcast %119 : vector<1x128xf32> to vector<16x128xf32>
    %121 = arith.addf %118, %120 : vector<16x128xf32>
    %122 = arith.addf %1, %121 : vector<16x128xf32>
    %cst_57 = arith.constant dense<0.000000e+00> : vector<16xf32>
    %123 = vector.multi_reduction <add>, %122, %cst_57 [1] : vector<16x128xf32> to vector<16xf32>
    %124 = vector.shape_cast %123 : vector<16xf32> to vector<16x1xf32>
    %cst_58 = arith.constant 1.280000e+02 : f32
    %125 = vector.broadcast %cst_58 : f32 to vector<16x1xf32>
    %126 = arith.divf %124, %125 : vector<16x1xf32>
    %127 = vector.broadcast %126 : vector<16x1xf32> to vector<16x128xf32>
    %128 = arith.subf %122, %127 : vector<16x128xf32>
    %129 = arith.mulf %128, %128 : vector<16x128xf32>
    %cst_59 = arith.constant dense<0.000000e+00> : vector<16xf32>
    %130 = vector.multi_reduction <add>, %129, %cst_59 [1] : vector<16x128xf32> to vector<16xf32>
    %131 = vector.shape_cast %130 : vector<16xf32> to vector<16x1xf32>
    %cst_60 = arith.constant 1.270000e+02 : f32
    %132 = vector.broadcast %cst_60 : f32 to vector<16x1xf32>
    %133 = arith.divf %131, %132 : vector<16x1xf32>
    %134 = math.sqrt %133 : vector<16x1xf32>
    %c0_61 = arith.constant 0 : index
    %c0_62 = arith.constant 0 : index
    %135 = vector.load %arg11[%c0_61, %c0_62] : memref<1x128xf32, #tpu.memory_space<vmem>>, vector<1x128xf32>
    %136 = vector.broadcast %135 : vector<1x128xf32> to vector<16x128xf32>
    %137 = arith.mulf %136, %128 : vector<16x128xf32>
    %cst_63 = arith.constant 9.99999997E-7 : f32
    %138 = vector.broadcast %cst_63 : f32 to vector<16x1xf32>
    %139 = arith.addf %134, %138 : vector<16x1xf32>
    %140 = vector.broadcast %139 : vector<16x1xf32> to vector<16x128xf32>
    %141 = arith.divf %137, %140 : vector<16x128xf32>
    %c0_64 = arith.constant 0 : index
    %c0_65 = arith.constant 0 : index
    %142 = vector.load %arg12[%c0_64, %c0_65] : memref<1x128xf32, #tpu.memory_space<vmem>>, vector<1x128xf32>
    %143 = vector.broadcast %142 : vector<1x128xf32> to vector<16x128xf32>
    %144 = arith.addf %141, %143 : vector<16x128xf32>
    %c0_66 = arith.constant 0 : index
    %c0_67 = arith.constant 0 : index
    %145 = vector.load %arg13[%c0_66, %c0_67] : memref<128x128xf32, #tpu.memory_space<vmem>>, vector<128x128xf32>
    %cst_68 = arith.constant dense<0.000000e+00> : vector<16x128xf32>
    %146 = tpu.matmul %144, %145, %cst_68 {dimension_numbers = #tpu.dot_dimension_numbers<[1], [0], [0], [1], [0, 0, 1, 1], [], []>} : vector<16x128xf32>, vector<128x128xf32>, vector<16x128xf32> -> vector<16x128xf32>
    %c0_69 = arith.constant 0 : index
    %c0_70 = arith.constant 0 : index
    %147 = vector.load %arg14[%c0_69, %c0_70] : memref<1x128xf32, #tpu.memory_space<vmem>>, vector<1x128xf32>
    %148 = vector.broadcast %147 : vector<1x128xf32> to vector<16x128xf32>
    %149 = arith.addf %146, %148 : vector<16x128xf32>
    %cst_71 = arith.constant 0.176776692 : f32
    %150 = vector.broadcast %cst_71 : f32 to vector<16x128xf32>
    %151 = arith.mulf %149, %150 : vector<16x128xf32>
    %c0_72 = arith.constant 0 : index
    %c0_73 = arith.constant 0 : index
    %152 = vector.load %arg15[%c0_72, %c0_73] : memref<128x256xf32, #tpu.memory_space<vmem>>, vector<128x256xf32>
    %cst_74 = arith.constant dense<0.000000e+00> : vector<16x256xf32>
    %153 = tpu.matmul %3, %152, %cst_74 {dimension_numbers = #tpu.dot_dimension_numbers<[1], [0], [0], [1], [0, 0, 1, 1], [], []>} : vector<16x128xf32>, vector<128x256xf32>, vector<16x256xf32> -> vector<16x256xf32>
    %c0_75 = arith.constant 0 : index
    %c0_76 = arith.constant 0 : index
    %154 = vector.load %arg16[%c0_75, %c0_76] : memref<1x256xf32, #tpu.memory_space<vmem>>, vector<1x256xf32>
    %155 = vector.broadcast %154 : vector<1x256xf32> to vector<16x256xf32>
    %156 = arith.addf %153, %155 : vector<16x256xf32>
    %157 = vector.extract_strided_slice %156 {offsets = [0, 0], sizes = [16, 128], strides = [1, 1]} : vector<16x256xf32> to vector<16x128xf32>
    %158 = vector.extract_strided_slice %156 {offsets = [0, 128], sizes = [16, 128], strides = [1, 1]} : vector<16x256xf32> to vector<16x128xf32>
    %159 = vector.extract_strided_slice %151 {offsets = [0, 0], sizes = [16, 32], strides = [1, 1]} : vector<16x128xf32> to vector<16x32xf32>
    %160 = vector.extract_strided_slice %157 {offsets = [0, 0], sizes = [16, 32], strides = [1, 1]} : vector<16x128xf32> to vector<16x32xf32>
    %cst_77 = arith.constant dense<0.000000e+00> : vector<16x16xf32>
    %161 = tpu.matmul %159, %160, %cst_77 {dimension_numbers = #tpu.dot_dimension_numbers<[1], [1], [0], [0], [0, 0, 1, 0], [], []>} : vector<16x32xf32>, vector<16x32xf32>, vector<16x16xf32> -> vector<16x16xf32>
    %162 = vector.broadcast %15 : vector<1x16xf32> to vector<16x16xf32>
    %163 = arith.addf %161, %162 : vector<16x16xf32>
    %cst_78 = arith.constant dense<0xFF800000> : vector<16xf32>
    %164 = vector.multi_reduction <maximumf>, %163, %cst_78 [1] : vector<16x16xf32> to vector<16xf32>
    %165 = vector.shape_cast %164 : vector<16xf32> to vector<16x1xf32>
    %166 = vector.broadcast %165 : vector<16x1xf32> to vector<16x16xf32>
    %167 = arith.subf %163, %166 : vector<16x16xf32>
    %168 = math.exp %167 : vector<16x16xf32>
    %cst_79 = arith.constant dense<0.000000e+00> : vector<16xf32>
    %169 = vector.multi_reduction <add>, %168, %cst_79 [1] : vector<16x16xf32> to vector<16xf32>
    %170 = vector.shape_cast %169 : vector<16xf32> to vector<16x1xf32>
    %171 = tpu.reciprocal %170 : vector<16x1xf32> -> vector<16x1xf32>
    %172 = vector.extract_strided_slice %158 {offsets = [0, 0], sizes = [16, 32], strides = [1, 1]} : vector<16x128xf32> to vector<16x32xf32>
    %cst_80 = arith.constant dense<0.000000e+00> : vector<16x32xf32>
    %173 = tpu.matmul %168, %172, %cst_80 {dimension_numbers = #tpu.dot_dimension_numbers<[1], [0], [0], [1], [0, 0, 1, 1], [], []>} : vector<16x16xf32>, vector<16x32xf32>, vector<16x32xf32> -> vector<16x32xf32>
    %174 = vector.broadcast %171 : vector<16x1xf32> to vector<16x32xf32>
    %175 = arith.mulf %173, %174 : vector<16x32xf32>
    %c0_81 = arith.constant 0 : index
    %c0_82 = arith.constant 0 : index
    %176 = vector.load %arg28[%c0_81, %c0_82] : memref<16x128xf32, #tpu.memory_space<vmem>>, vector<16x32xf32>
    tpu.vector_store %arg28[%c0_81, %c0_82], %175 {strides = array<i32>} : memref<16x128xf32, #tpu.memory_space<vmem>>, vector<16x32xf32>,
    %177 = vector.extract_strided_slice %151 {offsets = [0, 32], sizes = [16, 32], strides = [1, 1]} : vector<16x128xf32> to vector<16x32xf32>
    %178 = vector.extract_strided_slice %157 {offsets = [0, 32], sizes = [16, 32], strides = [1, 1]} : vector<16x128xf32> to vector<16x32xf32>
    %cst_83 = arith.constant dense<0.000000e+00> : vector<16x16xf32>
    %179 = tpu.matmul %177, %178, %cst_83 {dimension_numbers = #tpu.dot_dimension_numbers<[1], [1], [0], [0], [0, 0, 1, 0], [], []>} : vector<16x32xf32>, vector<16x32xf32>, vector<16x16xf32> -> vector<16x16xf32>
    %180 = vector.broadcast %15 : vector<1x16xf32> to vector<16x16xf32>
    %181 = arith.addf %179, %180 : vector<16x16xf32>
    %cst_84 = arith.constant dense<0xFF800000> : vector<16xf32>
    %182 = vector.multi_reduction <maximumf>, %181, %cst_84 [1] : vector<16x16xf32> to vector<16xf32>
    %183 = vector.shape_cast %182 : vector<16xf32> to vector<16x1xf32>
    %184 = vector.broadcast %183 : vector<16x1xf32> to vector<16x16xf32>
    %185 = arith.subf %181, %184 : vector<16x16xf32>
    %186 = math.exp %185 : vector<16x16xf32>
    %cst_85 = arith.constant dense<0.000000e+00> : vector<16xf32>
    %187 = vector.multi_reduction <add>, %186, %cst_85 [1] : vector<16x16xf32> to vector<16xf32>
    %188 = vector.shape_cast %187 : vector<16xf32> to vector<16x1xf32>
    %189 = tpu.reciprocal %188 : vector<16x1xf32> -> vector<16x1xf32>
    %190 = vector.extract_strided_slice %158 {offsets = [0, 32], sizes = [16, 32], strides = [1, 1]} : vector<16x128xf32> to vector<16x32xf32>
    %cst_86 = arith.constant dense<0.000000e+00> : vector<16x32xf32>
    %191 = tpu.matmul %186, %190, %cst_86 {dimension_numbers = #tpu.dot_dimension_numbers<[1], [0], [0], [1], [0, 0, 1, 1], [], []>} : vector<16x16xf32>, vector<16x32xf32>, vector<16x32xf32> -> vector<16x32xf32>
    %192 = vector.broadcast %189 : vector<16x1xf32> to vector<16x32xf32>
    %193 = arith.mulf %191, %192 : vector<16x32xf32>
    %c0_87 = arith.constant 0 : index
    %c32_88 = arith.constant 32 : index
    %194 = vector.load %arg28[%c0_87, %c32_88] : memref<16x128xf32, #tpu.memory_space<vmem>>, vector<16x32xf32>
    tpu.vector_store %arg28[%c0_87, %c32_88], %193 {strides = array<i32>} : memref<16x128xf32, #tpu.memory_space<vmem>>, vector<16x32xf32>,
    %195 = vector.extract_strided_slice %151 {offsets = [0, 64], sizes = [16, 32], strides = [1, 1]} : vector<16x128xf32> to vector<16x32xf32>
    %196 = vector.extract_strided_slice %157 {offsets = [0, 64], sizes = [16, 32], strides = [1, 1]} : vector<16x128xf32> to vector<16x32xf32>
    %cst_89 = arith.constant dense<0.000000e+00> : vector<16x16xf32>
    %197 = tpu.matmul %195, %196, %cst_89 {dimension_numbers = #tpu.dot_dimension_numbers<[1], [1], [0], [0], [0, 0, 1, 0], [], []>} : vector<16x32xf32>, vector<16x32xf32>, vector<16x16xf32> -> vector<16x16xf32>
    %198 = vector.broadcast %15 : vector<1x16xf32> to vector<16x16xf32>
    %199 = arith.addf %197, %198 : vector<16x16xf32>
    %cst_90 = arith.constant dense<0xFF800000> : vector<16xf32>
    %200 = vector.multi_reduction <maximumf>, %199, %cst_90 [1] : vector<16x16xf32> to vector<16xf32>
    %201 = vector.shape_cast %200 : vector<16xf32> to vector<16x1xf32>
    %202 = vector.broadcast %201 : vector<16x1xf32> to vector<16x16xf32>
    %203 = arith.subf %199, %202 : vector<16x16xf32>
    %204 = math.exp %203 : vector<16x16xf32>
    %cst_91 = arith.constant dense<0.000000e+00> : vector<16xf32>
    %205 = vector.multi_reduction <add>, %204, %cst_91 [1] : vector<16x16xf32> to vector<16xf32>
    %206 = vector.shape_cast %205 : vector<16xf32> to vector<16x1xf32>
    %207 = tpu.reciprocal %206 : vector<16x1xf32> -> vector<16x1xf32>
    %208 = vector.extract_strided_slice %158 {offsets = [0, 64], sizes = [16, 32], strides = [1, 1]} : vector<16x128xf32> to vector<16x32xf32>
    %cst_92 = arith.constant dense<0.000000e+00> : vector<16x32xf32>
    %209 = tpu.matmul %204, %208, %cst_92 {dimension_numbers = #tpu.dot_dimension_numbers<[1], [0], [0], [1], [0, 0, 1, 1], [], []>} : vector<16x16xf32>, vector<16x32xf32>, vector<16x32xf32> -> vector<16x32xf32>
    %210 = vector.broadcast %207 : vector<16x1xf32> to vector<16x32xf32>
    %211 = arith.mulf %209, %210 : vector<16x32xf32>
    %c0_93 = arith.constant 0 : index
    %c64_94 = arith.constant 64 : index
    %212 = vector.load %arg28[%c0_93, %c64_94] : memref<16x128xf32, #tpu.memory_space<vmem>>, vector<16x32xf32>
    tpu.vector_store %arg28[%c0_93, %c64_94], %211 {strides = array<i32>} : memref<16x128xf32, #tpu.memory_space<vmem>>, vector<16x32xf32>,
    %213 = vector.extract_strided_slice %151 {offsets = [0, 96], sizes = [16, 32], strides = [1, 1]} : vector<16x128xf32> to vector<16x32xf32>
    %214 = vector.extract_strided_slice %157 {offsets = [0, 96], sizes = [16, 32], strides = [1, 1]} : vector<16x128xf32> to vector<16x32xf32>
    %cst_95 = arith.constant dense<0.000000e+00> : vector<16x16xf32>
    %215 = tpu.matmul %213, %214, %cst_95 {dimension_numbers = #tpu.dot_dimension_numbers<[1], [1], [0], [0], [0, 0, 1, 0], [], []>} : vector<16x32xf32>, vector<16x32xf32>, vector<16x16xf32> -> vector<16x16xf32>
    %216 = vector.broadcast %15 : vector<1x16xf32> to vector<16x16xf32>
    %217 = arith.addf %215, %216 : vector<16x16xf32>
    %cst_96 = arith.constant dense<0xFF800000> : vector<16xf32>
    %218 = vector.multi_reduction <maximumf>, %217, %cst_96 [1] : vector<16x16xf32> to vector<16xf32>
    %219 = vector.shape_cast %218 : vector<16xf32> to vector<16x1xf32>
    %220 = vector.broadcast %219 : vector<16x1xf32> to vector<16x16xf32>
    %221 = arith.subf %217, %220 : vector<16x16xf32>
    %222 = math.exp %221 : vector<16x16xf32>
    %cst_97 = arith.constant dense<0.000000e+00> : vector<16xf32>
    %223 = vector.multi_reduction <add>, %222, %cst_97 [1] : vector<16x16xf32> to vector<16xf32>
    %224 = vector.shape_cast %223 : vector<16xf32> to vector<16x1xf32>
    %225 = tpu.reciprocal %224 : vector<16x1xf32> -> vector<16x1xf32>
    %226 = vector.extract_strided_slice %158 {offsets = [0, 96], sizes = [16, 32], strides = [1, 1]} : vector<16x128xf32> to vector<16x32xf32>
    %cst_98 = arith.constant dense<0.000000e+00> : vector<16x32xf32>
    %227 = tpu.matmul %222, %226, %cst_98 {dimension_numbers = #tpu.dot_dimension_numbers<[1], [0], [0], [1], [0, 0, 1, 1], [], []>} : vector<16x16xf32>, vector<16x32xf32>, vector<16x32xf32> -> vector<16x32xf32>
    %228 = vector.broadcast %225 : vector<16x1xf32> to vector<16x32xf32>
    %229 = arith.mulf %227, %228 : vector<16x32xf32>
    %c0_99 = arith.constant 0 : index
    %c96_100 = arith.constant 96 : index
    %230 = vector.load %arg28[%c0_99, %c96_100] : memref<16x128xf32, #tpu.memory_space<vmem>>, vector<16x32xf32>
    tpu.vector_store %arg28[%c0_99, %c96_100], %229 {strides = array<i32>} : memref<16x128xf32, #tpu.memory_space<vmem>>, vector<16x32xf32>,
    %c0_101 = arith.constant 0 : index
    %c0_102 = arith.constant 0 : index
    %231 = vector.load %arg28[%c0_101, %c0_102] : memref<16x128xf32, #tpu.memory_space<vmem>>, vector<16x128xf32>
    %c0_103 = arith.constant 0 : index
    %c0_104 = arith.constant 0 : index
    %232 = vector.load %arg17[%c0_103, %c0_104] : memref<128x128xf32, #tpu.memory_space<vmem>>, vector<128x128xf32>
    %cst_105 = arith.constant dense<0.000000e+00> : vector<16x128xf32>
    %233 = tpu.matmul %231, %232, %cst_105 {dimension_numbers = #tpu.dot_dimension_numbers<[1], [0], [0], [1], [0, 0, 1, 1], [], []>} : vector<16x128xf32>, vector<128x128xf32>, vector<16x128xf32> -> vector<16x128xf32>
    %c0_106 = arith.constant 0 : index
    %c0_107 = arith.constant 0 : index
    %234 = vector.load %arg18[%c0_106, %c0_107] : memref<1x128xf32, #tpu.memory_space<vmem>>, vector<1x128xf32>
    %235 = vector.broadcast %234 : vector<1x128xf32> to vector<16x128xf32>
    %236 = arith.addf %233, %235 : vector<16x128xf32>
    %237 = arith.addf %122, %236 : vector<16x128xf32>
    %cst_108 = arith.constant dense<0.000000e+00> : vector<16xf32>
    %238 = vector.multi_reduction <add>, %237, %cst_108 [1] : vector<16x128xf32> to vector<16xf32>
    %239 = vector.shape_cast %238 : vector<16xf32> to vector<16x1xf32>
    %cst_109 = arith.constant 1.280000e+02 : f32
    %240 = vector.broadcast %cst_109 : f32 to vector<16x1xf32>
    %241 = arith.divf %239, %240 : vector<16x1xf32>
    %242 = vector.broadcast %241 : vector<16x1xf32> to vector<16x128xf32>
    %243 = arith.subf %237, %242 : vector<16x128xf32>
    %244 = arith.mulf %243, %243 : vector<16x128xf32>
    %cst_110 = arith.constant dense<0.000000e+00> : vector<16xf32>
    %245 = vector.multi_reduction <add>, %244, %cst_110 [1] : vector<16x128xf32> to vector<16xf32>
    %246 = vector.shape_cast %245 : vector<16xf32> to vector<16x1xf32>
    %cst_111 = arith.constant 1.270000e+02 : f32
    %247 = vector.broadcast %cst_111 : f32 to vector<16x1xf32>
    %248 = arith.divf %246, %247 : vector<16x1xf32>
    %249 = math.sqrt %248 : vector<16x1xf32>
    %c0_112 = arith.constant 0 : index
    %c0_113 = arith.constant 0 : index
    %250 = vector.load %arg19[%c0_112, %c0_113] : memref<1x128xf32, #tpu.memory_space<vmem>>, vector<1x128xf32>
    %251 = vector.broadcast %250 : vector<1x128xf32> to vector<16x128xf32>
    %252 = arith.mulf %251, %243 : vector<16x128xf32>
    %cst_114 = arith.constant 9.99999997E-7 : f32
    %253 = vector.broadcast %cst_114 : f32 to vector<16x1xf32>
    %254 = arith.addf %249, %253 : vector<16x1xf32>
    %255 = vector.broadcast %254 : vector<16x1xf32> to vector<16x128xf32>
    %256 = arith.divf %252, %255 : vector<16x128xf32>
    %c0_115 = arith.constant 0 : index
    %c0_116 = arith.constant 0 : index
    %257 = vector.load %arg20[%c0_115, %c0_116] : memref<1x128xf32, #tpu.memory_space<vmem>>, vector<1x128xf32>
    %258 = vector.broadcast %257 : vector<1x128xf32> to vector<16x128xf32>
    %259 = arith.addf %256, %258 : vector<16x128xf32>
    %c0_117 = arith.constant 0 : index
    %c0_118 = arith.constant 0 : index
    %260 = vector.load %arg21[%c0_117, %c0_118] : memref<128x256xf32, #tpu.memory_space<vmem>>, vector<128x256xf32>
    %cst_119 = arith.constant dense<0.000000e+00> : vector<16x256xf32>
    %261 = tpu.matmul %259, %260, %cst_119 {dimension_numbers = #tpu.dot_dimension_numbers<[1], [0], [0], [1], [0, 0, 1, 1], [], []>} : vector<16x128xf32>, vector<128x256xf32>, vector<16x256xf32> -> vector<16x256xf32>
    %c0_120 = arith.constant 0 : index
    %c0_121 = arith.constant 0 : index
    %262 = vector.load %arg22[%c0_120, %c0_121] : memref<1x256xf32, #tpu.memory_space<vmem>>, vector<1x256xf32>
    %263 = vector.broadcast %262 : vector<1x256xf32> to vector<16x256xf32>
    %264 = arith.addf %261, %263 : vector<16x256xf32>
    %cst_122 = arith.constant 0.000000e+00 : f32
    %265 = vector.broadcast %cst_122 : f32 to vector<16x256xf32>
    %266 = arith.maximumf %264, %265 : vector<16x256xf32>
    %c0_123 = arith.constant 0 : index
    %c0_124 = arith.constant 0 : index
    %267 = vector.load %arg23[%c0_123, %c0_124] : memref<256x128xf32, #tpu.memory_space<vmem>>, vector<256x128xf32>
    %cst_125 = arith.constant dense<0.000000e+00> : vector<16x128xf32>
    %268 = tpu.matmul %266, %267, %cst_125 {dimension_numbers = #tpu.dot_dimension_numbers<[1], [0], [0], [1], [0, 0, 1, 1], [], []>} : vector<16x256xf32>, vector<256x128xf32>, vector<16x128xf32> -> vector<16x128xf32>
    %269 = arith.addf %237, %268 : vector<16x128xf32>
    %c0_126 = arith.constant 0 : index
    %c0_127 = arith.constant 0 : index
    %270 = vector.load %arg24[%c0_126, %c0_127] : memref<1x128xf32, #tpu.memory_space<vmem>>, vector<1x128xf32>
    %271 = vector.broadcast %270 : vector<1x128xf32> to vector<16x128xf32>
    %272 = arith.addf %269, %271 : vector<16x128xf32>
    %c0_128 = arith.constant 0 : index
    %c0_129 = arith.constant 0 : index
    %c0_130 = arith.constant 0 : index
    %273 = vector.load %arg27[%c0_128, %c0_129, %c0_130] : memref<1x16x128xf32, #tpu.memory_space<vmem>>, vector<1x16x128xf32>
    %274 = vector.shape_cast %273 : vector<1x16x128xf32> to vector<16x128xf32>
    %275 = vector.shape_cast %272 : vector<16x128xf32> to vector<1x16x128xf32>
    tpu.vector_store %arg27[%c0_128, %c0_129, %c0_130], %275 {strides = array<i32>} : memref<1x16x128xf32, #tpu.memory_space<vmem>>, vector<1x16x128xf32>,
    return
  }
  func.func @transform_0(%arg0: i32) -> (i32, i32, i32) {
    %c0_i32 = arith.constant 0 : i32
    %c0_i32_0 = arith.constant 0 : i32
    %c0_i32_1 = arith.constant 0 : i32
    return %arg0, %c0_i32, %c0_i32_0 : i32, i32, i32
  }
  func.func @transform_1(%arg0: i32) -> (i32, i32, i32) {
    %c0_i32 = arith.constant 0 : i32
    %c0_i32_0 = arith.constant 0 : i32
    %c0_i32_1 = arith.constant 0 : i32
    return %arg0, %c0_i32, %c0_i32_0 : i32, i32, i32
  }
  func.func @transform_2(%arg0: i32) -> (i32, i32, i32) {
    %c0_i32 = arith.constant 0 : i32
    %c0_i32_0 = arith.constant 0 : i32
    %c0_i32_1 = arith.constant 0 : i32
    %c0_i32_2 = arith.constant 0 : i32
    return %c0_i32, %c0_i32_0, %c0_i32_1 : i32, i32, i32
  }
  func.func @transform_3(%arg0: i32) -> (i32, i32, i32) {
    %c0_i32 = arith.constant 0 : i32
    %c0_i32_0 = arith.constant 0 : i32
    %c0_i32_1 = arith.constant 0 : i32
    return %arg0, %c0_i32, %c0_i32_0 : i32, i32, i32
  }
  func.func @transform_4(%arg0: i32) -> (i32, i32) {
    %c0_i32 = arith.constant 0 : i32
    %c0_i32_0 = arith.constant 0 : i32
    %c0_i32_1 = arith.constant 0 : i32
    return %c0_i32, %c0_i32_0 : i32, i32
  }
  func.func @transform_5(%arg0: i32) -> (i32, i32) {
    %c0_i32 = arith.constant 0 : i32
    %c0_i32_0 = arith.constant 0 : i32
    %c0_i32_1 = arith.constant 0 : i32
    return %c0_i32, %c0_i32_0 : i32, i32
  }
  func.func @transform_6(%arg0: i32) -> (i32, i32) {
    %c0_i32 = arith.constant 0 : i32
    %c0_i32_0 = arith.constant 0 : i32
    %c0_i32_1 = arith.constant 0 : i32
    return %c0_i32, %c0_i32_0 : i32, i32
  }
  func.func @transform_7(%arg0: i32) -> (i32, i32) {
    %c0_i32 = arith.constant 0 : i32
    %c0_i32_0 = arith.constant 0 : i32
    %c0_i32_1 = arith.constant 0 : i32
    return %c0_i32, %c0_i32_0 : i32, i32
  }
  func.func @transform_8(%arg0: i32) -> (i32, i32) {
    %c0_i32 = arith.constant 0 : i32
    %c0_i32_0 = arith.constant 0 : i32
    %c0_i32_1 = arith.constant 0 : i32
    return %c0_i32, %c0_i32_0 : i32, i32
  }
  func.func @transform_9(%arg0: i32) -> (i32, i32) {
    %c0_i32 = arith.constant 0 : i32
    %c0_i32_0 = arith.constant 0 : i32
    %c0_i32_1 = arith.constant 0 : i32
    return %c0_i32, %c0_i32_0 : i32, i32
  }
  func.func @transform_10(%arg0: i32) -> (i32, i32) {
    %c0_i32 = arith.constant 0 : i32
    %c0_i32_0 = arith.constant 0 : i32
    %c0_i32_1 = arith.constant 0 : i32
    return %c0_i32, %c0_i32_0 : i32, i32
  }
  func.func @transform_11(%arg0: i32) -> (i32, i32) {
    %c0_i32 = arith.constant 0 : i32
    %c0_i32_0 = arith.constant 0 : i32
    %c0_i32_1 = arith.constant 0 : i32
    return %c0_i32, %c0_i32_0 : i32, i32
  }
  func.func @transform_12(%arg0: i32) -> (i32, i32) {
    %c0_i32 = arith.constant 0 : i32
    %c0_i32_0 = arith.constant 0 : i32
    %c0_i32_1 = arith.constant 0 : i32
    return %c0_i32, %c0_i32_0 : i32, i32
  }
  func.func @transform_13(%arg0: i32) -> (i32, i32) {
    %c0_i32 = arith.constant 0 : i32
    %c0_i32_0 = arith.constant 0 : i32
    %c0_i32_1 = arith.constant 0 : i32
    return %c0_i32, %c0_i32_0 : i32, i32
  }
  func.func @transform_14(%arg0: i32) -> (i32, i32) {
    %c0_i32 = arith.constant 0 : i32
    %c0_i32_0 = arith.constant 0 : i32
    %c0_i32_1 = arith.constant 0 : i32
    return %c0_i32, %c0_i32_0 : i32, i32
  }
  func.func @transform_15(%arg0: i32) -> (i32, i32) {
    %c0_i32 = arith.constant 0 : i32
    %c0_i32_0 = arith.constant 0 : i32
    %c0_i32_1 = arith.constant 0 : i32
    return %c0_i32, %c0_i32_0 : i32, i32
  }
  func.func @transform_16(%arg0: i32) -> (i32, i32) {
    %c0_i32 = arith.constant 0 : i32
    %c0_i32_0 = arith.constant 0 : i32
    %c0_i32_1 = arith.constant 0 : i32
    return %c0_i32, %c0_i32_0 : i32, i32
  }
  func.func @transform_17(%arg0: i32) -> (i32, i32) {
    %c0_i32 = arith.constant 0 : i32
    %c0_i32_0 = arith.constant 0 : i32
    %c0_i32_1 = arith.constant 0 : i32
    return %c0_i32, %c0_i32_0 : i32, i32
  }
  func.func @transform_18(%arg0: i32) -> (i32, i32) {
    %c0_i32 = arith.constant 0 : i32
    %c0_i32_0 = arith.constant 0 : i32
    %c0_i32_1 = arith.constant 0 : i32
    return %c0_i32, %c0_i32_0 : i32, i32
  }
  func.func @transform_19(%arg0: i32) -> (i32, i32) {
    %c0_i32 = arith.constant 0 : i32
    %c0_i32_0 = arith.constant 0 : i32
    %c0_i32_1 = arith.constant 0 : i32
    return %c0_i32, %c0_i32_0 : i32, i32
  }
  func.func @transform_20(%arg0: i32) -> (i32, i32) {
    %c0_i32 = arith.constant 0 : i32
    %c0_i32_0 = arith.constant 0 : i32
    %c0_i32_1 = arith.constant 0 : i32
    return %c0_i32, %c0_i32_0 : i32, i32
  }
  func.func @transform_21(%arg0: i32) -> (i32, i32) {
    %c0_i32 = arith.constant 0 : i32
    %c0_i32_0 = arith.constant 0 : i32
    %c0_i32_1 = arith.constant 0 : i32
    return %c0_i32, %c0_i32_0 : i32, i32
  }
  func.func @transform_22(%arg0: i32) -> (i32, i32) {
    %c0_i32 = arith.constant 0 : i32
    %c0_i32_0 = arith.constant 0 : i32
    %c0_i32_1 = arith.constant 0 : i32
    return %c0_i32, %c0_i32_0 : i32, i32
  }
  func.func @transform_23(%arg0: i32) -> (i32, i32) {
    %c0_i32 = arith.constant 0 : i32
    %c0_i32_0 = arith.constant 0 : i32
    %c0_i32_1 = arith.constant 0 : i32
    return %c0_i32, %c0_i32_0 : i32, i32
  }
  func.func @transform_24(%arg0: i32) -> (i32, i32) {
    %c0_i32 = arith.constant 0 : i32
    %c0_i32_0 = arith.constant 0 : i32
    %c0_i32_1 = arith.constant 0 : i32
    return %c0_i32, %c0_i32_0 : i32, i32
  }
  func.func @transform_25(%arg0: i32) -> (i32, i32) {
    %c0_i32 = arith.constant 0 : i32
    %c0_i32_0 = arith.constant 0 : i32
    %c0_i32_1 = arith.constant 0 : i32
    return %c0_i32, %c0_i32_0 : i32, i32
  }
  func.func @transform_26(%arg0: i32) -> (i32, i32, i32) {
    %c0_i32 = arith.constant 0 : i32
    %c0_i32_0 = arith.constant 0 : i32
    %c0_i32_1 = arith.constant 0 : i32
    return %arg0, %c0_i32, %c0_i32_0 : i32, i32, i32
  }
}

</mosaic_0001>

<bundles_post_ra>
// kernel: tpu_custom_call.1
= control target key start
LH: loop header
LB: loop body
LE: loop exit
PB: predicated region body
PF: predicated region fallthrough
CT: control target
= control target key end

     0   :  { %7 = vsyncpa [#allocation3], 0  ;;  %s690_s0 = inlined_call_operand.hbm [shape: f32[16,128], index: 0, kind: input, shape index: {}]   ;;  %s691_s1 = inlined_call_operand.hbm [shape: f32[8,128], index: 1, kind: input, shape index: {}]   ;;  %s692_s2 = inlined_call_operand.hbm [shape: f32[16,128], index: 2, kind: output, shape index: {}]  }
   0x1   :  { %9 = vsyncpa [#allocation3 + $0x1], 0 }
   0x2   :  { %10 = vsyncpa [#allocation6], 0 }
   0x3   :  { %11 = vsyncpa [#allocation4], 0 }
   0x4   :  { %13 = vsyncpa [#allocation4 + $0x1], 0  ;;  %s489_s9 = smov 0   ;;  %s491_s10 = smov 0  }
   0x5   :  { %s493_s11 = smov 0   ;;  %s495_s12 = smov 0  }
   0x6 LB: > { %s510_s13 = sadd.s32 4294967295, %s469_s12   ;;  %s270_s14 = sadd.s32 4294967294, %s469_s12   ;;  %s469_s12 = sphi %s495_s12, %s716_s12   ;;  %s465_s11 = sphi %s493_s11, %s715_s11   ;;  %s461_s10 = sphi %s491_s10, %s714_s10   ;;  %s457_s9 = sphi %s489_s9, %s713_s9  }
   0x7   : > { %p39_p0 = scmp.ne.s32.totalorder %s461_s10, %s457_s9  ;;  %p693_p1 = scmp.eq.s32.totalorder %s510_s13, 0 }
   0x8   : > { %p90_p3 = scmp.eq.s32.totalorder %s270_s14, 1  ;;  %p271_p5 = scmp.ge.s32.totalorder %s469_s12, 1 }
   0x9   : > { %p519_p4 = por %p693_p1, %p39_p0  ;;  %p97_p7 = scmp.lt.s32.totalorder %s469_s12, 3 }
   0xa   : > { %p524_p6 = por %p90_p3, %p39_p0  ;;  %s471_s18 = smov [#allocation5]  }
   0xb   : > { %s696_s15 = scalar_select %p519_p4, 1, 0 }
   0xc   : > { %s697_s16 = scalar_select %p524_p6, 1, 0 }
   0xd   : > { %p529_p8 = pnand %p271_p5, %p97_p7  ;;  %s110_s19 = sshll.u32 %s471_s18, 4  ;;  %s111_s19 = int_to_ptr.vmem [resolvable:$true] %s110_s19 }
   0xe   : > { %s537_s20 = sadd.s32 1, %s469_s12   ;;  %s26_s24 = sadd.s32 1, %s465_s11 }
   0xf   : > { %s698_s17 = scalar_select %p529_p8, 1, 0 }
  0x10   : > { %p292_p10 = pneg %p529_p8  ;;  %s23_s22 = ssub.s32 %s469_s12, %s537_s20 }
  0x11   : > { %p547_p12 = scmp.eq.s32.totalorder %s23_s22, 0  ;;  %s341_s27 = scalar_lea.hbm %s691_s1, 128 }
  0x12   : > { %p541_p11 = pnand %p292_p10, %p693_p1  ;;  %p342_p0 = scmp.ne.s32.totalorder %s691_s1, %s341_s27 }
  0x13   : > { %s700_s23 = scalar_select %p547_p12, 1, 0 }
  0x14   : > { %p343_p3 = pneg %p541_p11  ;;  %p348_p10 = scmp.lt.u32.totalorder %s341_s27, %s691_s1 }
  0x16   : > { %p344_p5 = pnand %p343_p3, %p342_p0 }
  0x18   : > { %p345_p7 = pneg %p344_p5 }
  0x1a   : > { %p350_p9 = pnand %p348_p10, %p345_p7 }
  0x1c   : > { %353 = shalt.err (!%p350_p9)
}
  0x1d   : > { %s354_s4 = scalar_lea.vmem %s111_s19, 128  ;;  %p362_p6 = scmp.lt.s32.totalorder %s111_s19, %s111_s19 }
  0x1e   : > { %p355_p1 = scmp.ne.s32.totalorder %s111_s19, %s354_s4  ;;  %p363_p4 = scmp.lt.s32.totalorder %s354_s4, %s354_s4 }
  0x20   : > { %p357_p2 = pnand %p355_p1, %p343_p3  ;;  %p364_p8 = por %p363_p4, %p362_p6 }
  0x22   : > { %p358_p13 = pneg %p357_p2 }
  0x24   : > { %p365_p12 = pnand %p364_p8, %p358_p13 }
  0x26   : > { %368 = shalt.err (!%p365_p12)
}
  0x27   : > { %295 = dma.hbm_to_vmem [thread:$0]  (!%p541_p11), %s691_s1, 128, %s111_s19, [#allocation6]  }
  0x28   : > { %p701_p1 = scmp.ne.s32.totalorder %s700_s23, 0  ;;  %p34_p2 = scmp.eq.s32.totalorder %s469_s12, 0 }
  0x29   : > { %p702_p4 = scmp.ne.s32.totalorder %s465_s11, %s461_s10  ;;  %p703_p6 = scmp.eq.s32.totalorder %s510_s13, 1 }
  0x2a   : > { %s573_s7 = scalar_select %p701_p1, %s465_s11, %s26_s24  }
  0x2b   : > { %p581_p8 = por %p703_p6, %p702_p4  ;;  %p305_p9 = scmp.lt.s32.totalorder %s469_s12, 2 }
  0x2c   : > { %s121_s14 = sand.u32 1, %s465_s11   ;;  %p705_p12 = pmov %p702_p4 }
  0x2d   : > { %s274_s18 = sshll.u32 %s121_s14, 3  ;;  %s275_s21 = sshll.u32 %s469_s12, 7 }
  0x2e   : > { %p35_p13 = por %p34_p2, %p705_p12  ;;  %s594_s19 = scalar_lea.hbm %s690_s0, %s275_s21 }
  0x2f   : > { %s125_s23 = scalar_lea.vmem [#allocation2], %s274_s18  ;;  %s122_s27 = scalar_lea.sflag [#allocation3], %s121_s14 }
  0x30   : > { %s132_s24 = sshll.u32 %s125_s23, 4  ;;  %p596_p11 = pnand %p305_p9, %p35_p13  ;;  %s600_s24 = int_to_ptr.vmem [resolvable:$true] %s132_s24 }
  0x31   : > { %s369_s28 = scalar_lea.hbm %s594_s19, 128  ;;  %s374_s3 = scalar_lea.hbm %s690_s0, 256 }
  0x32   : > { %p370_p0 = scmp.ne.s32.totalorder %s594_s19, %s369_s28  ;;  %p371_p3 = pneg %p596_p11 }
  0x33   : > { %p375_p10 = scmp.lt.u32.totalorder %s594_s19, %s690_s0  ;;  %p376_p1 = scmp.lt.u32.totalorder %s374_s3, %s369_s28 }
  0x34   : > { %p372_p5 = pnand %p371_p3, %p370_p0  ;;  %p378_p4 = scmp.lt.u32.totalorder %s369_s28, %s594_s19 }
  0x35   : > { %p377_p2 = por %p376_p1, %p375_p10 }
  0x36   : > { %p373_p7 = pneg %p372_p5 }
  0x37   : > { %p379_p6 = por %p378_p4, %p377_p2 }
  0x39   : > { %p380_p9 = pnand %p379_p6, %p373_p7 }
  0x3b   : > { %383 = shalt.err (!%p380_p9)
}
  0x3c   : > { %s384_s6 = scalar_lea.vmem %s600_s24, 128  ;;  %s472_s14 = smov [#allocation2]  }
  0x3d   : > { %p385_p12 = scmp.ne.s32.totalorder %s600_s24, %s384_s6  ;;  %s389_s18 = sshll.u32 %s472_s14, 4  ;;  %s390_s18 = int_to_ptr.vmem [resolvable:$false] %s389_s18 }
  0x3e   : > { %s391_s21 = scalar_lea.vmem %s390_s18, 256  ;;  %p392_p5 = scmp.lt.s32.totalorder %s600_s24, %s390_s18 }
  0x3f   : > { %p387_p13 = pnand %p385_p12, %p371_p3  ;;  %p393_p10 = scmp.lt.s32.totalorder %s391_s21, %s384_s6 }
  0x41   : > { %p388_p0 = pneg %p387_p13  ;;  %p394_p1 = por %p393_p10, %p392_p5 }
  0x43   : > { %p395_p2 = pnand %p394_p1, %p388_p0 }
  0x45   : > { %398 = shalt.err (!%p395_p2)
}
  0x46   : > { %299 = dma.hbm_to_vmem [thread:$0]  (!%p596_p11), %s594_s19, 128, %s600_s24, %s122_s27  }
  0x47   : > { %p707_p7 = scmp.ne.s32.totalorder %s698_s17, 0 }
  0x48   : > { %s630_s22 = sand.u32 (!%p707_p7), 1, %s461_s10   ;;  %p708_p3 = scmp.ne.s32.totalorder (!%p707_p7), %s696_s15, 0 }
  0x49   : > { %141 = sbr.rel (%p707_p7) target bundleno = 109 (0x6d), region = 28  ;;  %s277_s25 = sshll.u32 (!%p707_p7), %s630_s22, 3 }
  0x4a   : > { %s144_s23 = scalar_lea.sflag (!%p707_p7), [#allocation3], %s630_s22  ;;  %s147_s28 = scalar_lea.vmem (!%p707_p7), [#allocation2], %s277_s25 }
  0x50   : > { %444 = dma.done.wait (%p708_p3), %s144_s23, 128  }
  0x51   : > { %446 = vsyncadd (%p708_p3), %s144_s23, 4294967168  ;;  %p709_p4 = scmp.eq.s32.totalorder %s510_s13, 0 }
  0x53   : > { %448 = dma.done.wait (%p709_p4), [#allocation6], 128   ;;  %p710_p11 = pmov %p709_p4 }
  0x54   : > { %s171_s17 = scalar_lea.vmem [#allocation7], %s277_s25  ;;  %s281_s24 = sshll.u32 %s510_s13, 7  ;;  %v172_v0 = vld [vmem:[%s147_s28] sm:$0xff]  ;;  %v173_v1 = vld [vmem:[#allocation5] sm:$0xff] }
  0x55   : > { %450 = vsyncadd (%p710_p11), [#allocation6], 4294967168  ;;  %s190_s19 = sshll.u32 %s171_s17, 4  ;;  %v174_v2 = vadd.f32 %v173_v1, %v172_v0  ;;  %s648_s27 = scalar_lea.hbm %s692_s2, %s281_s24  ;;  %s643_s19 = int_to_ptr.vmem [resolvable:$true] %s190_s19 }
  0x56   : > { %s177_s29 = scalar_lea.sflag [#allocation4], %s630_s22  ;;  %s399_s30 = scalar_lea.vmem %s643_s19, 128 }
  0x57   : > { %175 = vst [vmem:[%s171_s17] sm:$0xff] %v174_v2  ;;  %p400_p6 = scmp.ne.s32.totalorder %s643_s19, %s399_s30  ;;  %s473_s13 = smov [#allocation7]  }
  0x58   : > { %s403_s3 = sshll.u32 %s473_s13, 4  ;;  %s404_s3 = int_to_ptr.vmem [resolvable:$false] %s403_s3 }
  0x59   : > { %p401_p9 = pnand %p400_p6, %p581_p8  ;;  %s405_s4 = scalar_lea.vmem %s404_s3, 256 }
  0x5a   : > { %p406_p13 = scmp.lt.s32.totalorder %s643_s19, %s404_s3  ;;  %p407_p0 = scmp.lt.s32.totalorder %s405_s4, %s399_s30 }
  0x5b   : > { %p402_p12 = pneg %p401_p9 }
  0x5c   : > { %p408_p5 = por %p407_p0, %p406_p13 }
  0x5e   : > { %p409_p10 = pnand %p408_p5, %p402_p12 }
  0x60   : > { %412 = shalt.err (!%p409_p10)
}
  0x61   : > { %s413_s5 = scalar_lea.hbm %s648_s27, 128  ;;  %s417_s18 = scalar_lea.hbm %s692_s2, 256 }
  0x62   : > { %p414_p1 = scmp.ne.s32.totalorder %s648_s27, %s413_s5  ;;  %p418_p3 = scmp.lt.u32.totalorder %s648_s27, %s692_s2 }
  0x63   : > { %p419_p4 = scmp.lt.u32.totalorder %s417_s18, %s413_s5  ;;  %p421_p6 = scmp.lt.u32.totalorder %s413_s5, %s648_s27 }
  0x64   : > { %p415_p2 = pnand %p414_p1, %p581_p8 }
  0x65   : > { %p420_p11 = por %p419_p4, %p418_p3 }
  0x66   : > { %p416_p7 = pneg %p415_p2 }
  0x67   : > { %p422_p9 = por %p421_p6, %p420_p11 }
  0x69   : > { %p423_p12 = pnand %p422_p9, %p416_p7 }
  0x6b   : > { %426 = shalt.err (!%p423_p12)
}
  0x6c   : > { %290 = dma.vmem_to_hbm [thread:$0]  (%p581_p8), %s643_s19, 128, %s648_s27, %s177_s29  }
  0x6d PF: > { %s202_s25 = sand.u32 1, %s457_s9   ;;  %p711_p13 = scmp.ne.s32.totalorder %s697_s16, 0 }
  0x6e   : > { %p712_p0 = scmp.ge.s32.totalorder %s469_s12, 2  ;;  %s203_s23 = scalar_lea.sflag [#allocation4], %s202_s25 }
  0x70   : > { %p301_p5 = pnand %p712_p0, %p711_p13 }
  0x72   : > { %452 = dma.done.wait (!%p301_p5), %s203_s23, 128  }
  0x73   : > { %454 = vsyncadd (!%p301_p5), %s203_s23, 4294967168  ;;  %p16_p10 = scmp.ge.s32.totalorder %s537_s20, 4   ;;  %s713_s9 = smov %s461_s10 }
  0x74   : > { %s714_s10 = smov %s465_s11  ;;  %s715_s11 = smov %s573_s7 }
  0x75   : > { %s716_s12 = smov %s537_s20  ;;  %18 = sbr.rel (!%p16_p10) target bundleno = 6 (0x6), region = 77 }
  0x7c   :  { %208 = vsyncpa [#allocation3], 1 }
  0x7d   :  { %210 = vsyncpa [#allocation3 + $0x1], 1 }
  0x7e   :  { %211 = vsyncpa [#allocation6], 1 }
  0x7f   :  { %212 = vsyncpa [#allocation4], 1 }
  0x80   :  { %214 = vsyncpa [#allocation4 + $0x1], 1 }

// kernel: tpu_custom_call.1
= control target key start
LH: loop header
LB: loop body
LE: loop exit
PB: predicated region body
PF: predicated region fallthrough
CT: control target
= control target key end

     0   :  { %s6414_s0 = inlined_call_operand.hbm [shape: f32[2,16,128], index: 0, kind: input, shape index: {}]   ;;  %s6415_s1 = inlined_call_operand.hbm [shape: f32[2,16,128], index: 1, kind: input, shape index: {}]   ;;  %s6416_s2 = inlined_call_operand.hbm [shape: f32[1,16,16], index: 2, kind: input, shape index: {}]   ;;  %s6417_s3 = inlined_call_operand.vmem [shape: f32[2,1,16], index: 3, kind: input, shape index: {}]   ;;  %s6418_s4 = inlined_call_operand.vmem [shape: f32[1,128], index: 4, kind: input, shape index: {}]   ;;  %s6419_s5 = inlined_call_operand.vmem [shape: f32[1,128], index: 5, kind: input, shape index: {}]   ;;  %s6420_s6 = inlined_call_operand.hbm [shape: f32[128,384], index: 6, kind: input, shape index: {}]   ;;  %s6421_s7 = inlined_call_operand.vmem [shape: f32[1,384], index: 7, kind: input, shape index: {}]   ;;  %s6422_s8 = inlined_call_operand.hbm [shape: f32[128,128], index: 8, kind: input, shape index: {}]   ;;  %s6423_s9 = inlined_call_operand.vmem [shape: f32[1,128], index: 9, kind: input, shape index: {}]   ;;  %s6424_s10 = inlined_call_operand.vmem [shape: f32[1,128], index: 10, kind: input, shape index: {}]   ;;  %s6425_s11 = inlined_call_operand.vmem [shape: f32[1,128], index: 11, kind: input, shape index: {}]   ;;  %s6426_s12 = inlined_call_operand.hbm [shape: f32[128,128], index: 12, kind: input, shape index: {}]   ;;  %s6427_s13 = inlined_call_operand.vmem [shape: f32[1,128], index: 13, kind: input, shape index: {}]   ;;  %s6428_s14 = inlined_call_operand.hbm [shape: f32[128,256], index: 14, kind: input, shape index: {}]   ;;  %s6429_s15 = inlined_call_operand.vmem [shape: f32[1,256], index: 15, kind: input, shape index: {}]   ;;  %s6430_s16 = inlined_call_operand.hbm [shape: f32[128,128], index: 16, kind: input, shape index: {}]   ;;  %s6431_s17 = inlined_call_operand.vmem [shape: f32[1,128], index: 17, kind: input, shape index: {}]   ;;  %s6432_s18 = inlined_call_operand.vmem [shape: f32[1,128], index: 18, kind: input, shape index: {}]   ;;  %s6433_s19 = inlined_call_operand.vmem [shape: f32[1,128], index: 19, kind: input, shape index: {}]   ;;  %s6434_s20 = inlined_call_operand.hbm [shape: f32[128,256], index: 20, kind: input, shape index: {}]   ;;  %s6435_s21 = inlined_call_operand.vmem [shape: f32[1,256], index: 21, kind: input, shape index: {}]   ;;  %s6436_s22 = inlined_call_operand.hbm [shape: f32[256,128], index: 22, kind: input, shape index: {}]   ;;  %s6437_s23 = inlined_call_operand.vmem [shape: f32[1,128], index: 23, kind: input, shape index: {}]   ;;  %s6438_s24 = inlined_call_operand.vmem [shape: f32[1,128], index: 24, kind: input, shape index: {}]   ;;  %s6439_s25 = inlined_call_operand.vmem [shape: f32[1,128], index: 25, kind: input, shape index: {}]   ;;  %s6440_s26 = inlined_call_operand.hbm [shape: f32[2,16,128], index: 26, kind: output, shape index: {}]  }
   0x1   :  { %6457 = sst [smem:[#allocation30_spill]] %s6414_s0 }
   0x2   :  { %6458 = sst [smem:[#allocation31_spill]] %s6415_s1 }
   0x3   :  { %6459 = sst [smem:[#allocation32_spill]] %s6416_s2 }
   0x4   :  { %6460 = sst [smem:[#allocation33_spill]] %s6417_s3 }
   0x5   :  { %6461 = sst [smem:[#allocation34_spill]] %s6418_s4 }
   0x6   :  { %6462 = sst [smem:[#allocation35_spill]] %s6419_s5 }
   0x7   :  { %6463 = sst [smem:[#allocation36_spill]] %s6420_s6 }
   0x8   :  { %6464 = sst [smem:[#allocation37_spill]] %s6421_s7 }
   0x9   :  { %6465 = sst [smem:[#allocation38_spill]] %s6422_s8 }
   0xa   :  { %6466 = sst [smem:[#allocation39_spill]] %s6423_s9 }
   0xb   :  { %6467 = sst [smem:[#allocation40_spill]] %s6424_s10 }
   0xc   :  { %6468 = sst [smem:[#allocation41_spill]] %s6426_s12 }
   0xd   :  { %6469 = sst [smem:[#allocation42_spill]] %s6427_s13 }
   0xe   :  { %6470 = sst [smem:[#allocation43_spill]] %s6428_s14 }
   0xf   :  { %6471 = sst [smem:[#allocation44_spill]] %s6430_s16 }
  0x10   :  { %6472 = sst [smem:[#allocation45_spill]] %s6431_s17 }
  0x11   :  { %6473 = sst [smem:[#allocation46_spill]] %s6432_s18 }
  0x12   :  { %6474 = sst [smem:[#allocation47_spill]] %s6433_s19 }
  0x13   :  { %6475 = sst [smem:[#allocation48_spill]] %s6434_s20 }
  0x14   :  { %6476 = sst [smem:[#allocation49_spill]] %s6435_s21 }
  0x15   :  { %6477 = sst [smem:[#allocation50_spill]] %s6436_s22 }
  0x16   :  { %6478 = sst [smem:[#allocation51_spill]] %s6437_s23 }
  0x17   :  { %6479 = sst [smem:[#allocation52_spill]] %s6440_s26 }
  0x18   :  { %31 = vsyncpa [#allocation4], 0 }
  0x19   :  { %33 = vsyncpa [#allocation4 + $0x1], 0 }
  0x1a   :  { %34 = vsyncpa [#allocation7], 0 }
  0x1b   :  { %36 = vsyncpa [#allocation7 + $0x1], 0 }
  0x1c   :  { %37 = vsyncpa [#allocation10], 0 }
  0x1d   :  { %38 = vsyncpa [#allocation13], 0 }
  0x1e   :  { %39 = vsyncpa [#allocation16], 0 }
  0x1f   :  { %40 = vsyncpa [#allocation19], 0 }
  0x20   :  { %41 = vsyncpa [#allocation5], 0 }
  0x21   :  { %43 = vsyncpa [#allocation5 + $0x1], 0  ;;  %s5586_s27 = smov 0   ;;  %s5588_s3 = smov 0  }
  0x22   :  { %s5590_s24 = smov 0   ;;  %s5592_s25 = smov 0  }
  0x23 LB: > { %s5428_s7 = smov [#allocation8]   ;;  %s5607_s8 = sadd.s32 4294967295, %s5426_s25   ;;  %s5426_s25 = sphi %s5592_s25, %s6535_s25   ;;  %s5422_s24 = sphi %s5590_s24, %s6534_s24   ;;  %s5418_s3 = sphi %s5588_s3, %s6533_s3   ;;  %s5414_s27 = sphi %s5586_s27, %s6532_s27  }
  0x24   : > { %s653_s28 = sshll.u32 %s5428_s7, 4  ;;  %p3901_p0 = scmp.ge.s32.totalorder %s5426_s25, 1  ;;  %s5612_s28 = int_to_ptr.vmem [resolvable:$true] %s653_s28 }
  0x25   : > { %p6449_p1 = scmp.eq.s32.totalorder %s5607_s8, 0  ;;  %p641_p2 = scmp.lt.s32.totalorder %s5426_s25, 3 }
  0x26   : > { %s5429_s29 = smov [#allocation9]   ;;  %s5430_s30 = smov [#allocation12]  }
  0x27   : > { %p5614_p3 = pnand %p3901_p0, %p641_p2  ;;  %s672_s0 = sshll.u32 %s5429_s29, 4  ;;  %s5627_s0 = int_to_ptr.vmem [resolvable:$true] %s672_s0 }
  0x28   : > { %s5629_s2 = sshll.u32 %s5430_s30, 4  ;;  %s6482_s6 = sld [smem:[#allocation32_spill]]  ;;  %s711_s2 = int_to_ptr.vmem [resolvable:$true] %s5629_s2 }
  0x29   : > { %s6480_s4 = scalar_select %p5614_p3, 1, 0 }
  0x2a   : > { %p4798_p5 = pneg %p5614_p3 }
  0x2c   : > { %p5623_p6 = pnand %p4798_p5, %p6449_p1 }
  0x2e   : > { %s5052_s1 = scalar_lea.hbm %s6482_s6, 256  ;;  %p5639_p8 = pneg %p5623_p6 }
  0x2f   : > { %p5053_p7 = scmp.ne.s32.totalorder %s6482_s6, %s5052_s1  ;;  %p5059_p11 = scmp.lt.u32.totalorder %s5052_s1, %s6482_s6 }
  0x31   : > { %p5055_p9 = pnand %p5639_p8, %p5053_p7 }
  0x33   : > { %p5056_p10 = pneg %p5055_p9 }
  0x35   : > { %p5061_p12 = pnand %p5059_p11, %p5056_p10 }
  0x37   : > { %5064 = shalt.err (!%p5061_p12)
}
  0x38   : > { %s5065_s26 = scalar_lea.vmem %s5612_s28, 256  ;;  %p5073_p5 = scmp.lt.s32.totalorder %s5612_s28, %s5612_s28 }
  0x39   : > { %p5066_p13 = scmp.ne.s32.totalorder %s5612_s28, %s5065_s26  ;;  %p5074_p4 = scmp.lt.s32.totalorder %s5065_s26, %s5065_s26 }
  0x3b   : > { %p5068_p0 = pnand %p5066_p13, %p5639_p8  ;;  %p5075_p7 = por %p5074_p4, %p5073_p5 }
  0x3d   : > { %p5069_p2 = pneg %p5068_p0 }
  0x3f   : > { %p5076_p9 = pnand %p5075_p7, %p5069_p2 }
  0x41   : > { %5079 = shalt.err (!%p5076_p9)
}
  0x42   : > { %s6447_s5 = smov 128   ;;  %s6452_s23 = smov 8  }
  0x43   : > { %4801 = dma.hbm_to_vmem [thread:$0]  (!%p5623_p6), %s6482_s6, 256, %s5612_s28, [#allocation7], %s6447_s5, %s6447_s5, %s6452_s23  }
  0x44   : > { %s6484_s21 = sld [smem:[#allocation36_spill]] }
  0x4a   : > { %s5080_s26 = scalar_lea.hbm %s6484_s21, 6144 }
  0x4b   : > { %p5081_p4 = scmp.ne.s32.totalorder %s6484_s21, %s5080_s26  ;;  %p5087_p12 = scmp.lt.u32.totalorder %s5080_s26, %s6484_s21 }
  0x4d   : > { %p5083_p10 = pnand %p5081_p4, %p5639_p8 }
  0x4f   : > { %p5084_p11 = pneg %p5083_p10 }
  0x51   : > { %p5089_p13 = pnand %p5087_p12, %p5084_p11 }
  0x53   : > { %5092 = shalt.err (!%p5089_p13)
}
  0x54   : > { %s5093_s28 = scalar_lea.vmem %s5627_s0, 6144  ;;  %p5101_p7 = scmp.lt.s32.totalorder %s5627_s0, %s5627_s0 }
  0x55   : > { %p5094_p0 = scmp.ne.s32.totalorder %s5627_s0, %s5093_s28  ;;  %p5102_p9 = scmp.lt.s32.totalorder %s5093_s28, %s5093_s28 }
  0x57   : > { %p5096_p2 = pnand %p5094_p0, %p5639_p8  ;;  %p5103_p4 = por %p5102_p9, %p5101_p7 }
  0x59   : > { %p5097_p5 = pneg %p5096_p2 }
  0x5b   : > { %p5104_p10 = pnand %p5103_p4, %p5097_p5 }
  0x5d   : > { %5107 = shalt.err (!%p5104_p10)
}
  0x5e   : > { %s5433_s18 = smov 384   ;;  %s5434_s13 = smov 24  }
  0x5f   : > { %4804 = dma.hbm_to_vmem [thread:$0]  (!%p5623_p6), %s6484_s21, 6144, %s5627_s0, [#allocation10], %s5433_s18, %s5433_s18, %s5434_s13  }
  0x60   : > { %s6485_s12 = sld [smem:[#allocation41_spill]] }
  0x66   : > { %s5108_s7 = scalar_lea.hbm %s6485_s12, 2048 }
  0x67   : > { %p5109_p11 = scmp.ne.s32.totalorder %s6485_s12, %s5108_s7  ;;  %p5115_p0 = scmp.lt.u32.totalorder %s5108_s7, %s6485_s12 }
  0x69   : > { %p5111_p12 = pnand %p5109_p11, %p5639_p8 }
  0x6b   : > { %p5112_p13 = pneg %p5111_p12 }
  0x6d   : > { %p5117_p2 = pnand %p5115_p0, %p5112_p13 }
  0x6f   : > { %5120 = shalt.err (!%p5117_p2)
}
  0x70   : > { %s5121_s17 = scalar_lea.vmem %s711_s2, 2048  ;;  %p5129_p4 = scmp.lt.s32.totalorder %s711_s2, %s711_s2 }
  0x71   : > { %p5122_p5 = scmp.ne.s32.totalorder %s711_s2, %s5121_s17  ;;  %p5130_p10 = scmp.lt.s32.totalorder %s5121_s17, %s5121_s17 }
  0x73   : > { %p5124_p7 = pnand %p5122_p5, %p5639_p8  ;;  %p5131_p1 = por %p5130_p10, %p5129_p4 }
  0x75   : > { %p5125_p9 = pneg %p5124_p7 }
  0x77   : > { %p5132_p3 = pnand %p5131_p1, %p5125_p9 }
  0x79   : > { %5135 = shalt.err (!%p5132_p3)
}
  0x7a   : > { %s6486_s0 = smov 128   ;;  %s5435_s13 = smov [#allocation15]  }
  0x7b   : > { %4810 = dma.hbm_to_vmem [thread:$0]  (!%p5623_p6), %s6485_s12, 2048, %s711_s2, [#allocation13], %s6486_s0, %s6486_s0, %s6452_s23  }
  0x7c   : > { %s742_s19 = sshll.u32 %s5435_s13, 4  ;;  %s5436_s10 = smov [#allocation11]   ;;  %s743_s19 = int_to_ptr.vmem [resolvable:$true] %s742_s19 }
  0x7d   : > { %s688_s1 = sshll.u32 %s5436_s10, 4  ;;  %s6487_s16 = sld [smem:[#allocation44_spill]]  ;;  %s689_s1 = int_to_ptr.vmem [resolvable:$true] %s688_s1 }
  0x83   : > { %s5136_s26 = scalar_lea.hbm %s6487_s16, 2048 }
  0x84   : > { %p5137_p1 = scmp.ne.s32.totalorder %s6487_s16, %s5136_s26  ;;  %p5143_p12 = scmp.lt.u32.totalorder %s5136_s26, %s6487_s16 }
  0x86   : > { %p5139_p3 = pnand %p5137_p1, %p5639_p8 }
  0x88   : > { %p5140_p11 = pneg %p5139_p3 }
  0x8a   : > { %p5145_p13 = pnand %p5143_p12, %p5140_p11 }
  0x8c   : > { %5148 = shalt.err (!%p5145_p13)
}
  0x8d   : > { %s5149_s2 = scalar_lea.vmem %s743_s19, 2048  ;;  %p5157_p7 = scmp.lt.s32.totalorder %s743_s19, %s743_s19 }
  0x8e   : > { %p5150_p0 = scmp.ne.s32.totalorder %s743_s19, %s5149_s2  ;;  %p5158_p9 = scmp.lt.s32.totalorder %s5149_s2, %s5149_s2 }
  0x90   : > { %p5152_p2 = pnand %p5150_p0, %p5639_p8  ;;  %p5159_p4 = por %p5158_p9, %p5157_p7 }
  0x92   : > { %p5153_p5 = pneg %p5152_p2 }
  0x94   : > { %p5160_p10 = pnand %p5159_p4, %p5153_p5 }
  0x96   : > { %5163 = shalt.err (!%p5160_p10)
}
  0x97   : > { %4816 = dma.hbm_to_vmem [thread:$0]  (!%p5623_p6), %s6487_s16, 2048, %s743_s19, [#allocation16], %s6486_s0, %s6486_s0, %s6452_s23  }
  0x98   : > { %s6488_s7 = sld [smem:[#allocation38_spill]] }
  0x9e   : > { %s5164_s30 = scalar_lea.hbm %s6488_s7, 2048 }
  0x9f   : > { %p5165_p1 = scmp.ne.s32.totalorder %s6488_s7, %s5164_s30  ;;  %p5171_p12 = scmp.lt.u32.totalorder %s5164_s30, %s6488_s7 }
  0xa1   : > { %p5167_p3 = pnand %p5165_p1, %p5639_p8 }
  0xa3   : > { %p5168_p11 = pneg %p5167_p3 }
  0xa5   : > { %p5173_p13 = pnand %p5171_p12, %p5168_p11 }
  0xa7   : > { %5176 = shalt.err (!%p5173_p13)
}
  0xa8   : > { %s5177_s2 = scalar_lea.vmem %s689_s1, 2048  ;;  %p5185_p7 = scmp.lt.s32.totalorder %s689_s1, %s689_s1 }
  0xa9   : > { %p5178_p0 = scmp.ne.s32.totalorder %s689_s1, %s5177_s2  ;;  %p5186_p9 = scmp.lt.s32.totalorder %s5177_s2, %s5177_s2 }
  0xab   : > { %p5180_p2 = pnand %p5178_p0, %p5639_p8  ;;  %p5187_p4 = por %p5186_p9, %p5185_p7 }
  0xad   : > { %p5181_p5 = pneg %p5180_p2 }
  0xaf   : > { %p5188_p10 = pnand %p5187_p4, %p5181_p5 }
  0xb1   : > { %5191 = shalt.err (!%p5188_p10)
}
  0xb2   : > { %4807 = dma.hbm_to_vmem [thread:$0]  (!%p5623_p6), %s6488_s7, 2048, %s689_s1, [#allocation10], %s6486_s0, %s6486_s0, %s6452_s23  }
  0xb3   : > { %s5437_s18 = smov [#allocation14]   ;;  %s6489_s14 = sld [smem:[#allocation43_spill]] }
  0xb4   : > { %s726_s13 = sshll.u32 %s5437_s18, 4  ;;  %s727_s13 = int_to_ptr.vmem [resolvable:$true] %s726_s13 }
  0xb9   : > { %s5192_s26 = scalar_lea.hbm %s6489_s14, 4096 }
  0xba   : > { %p5193_p1 = scmp.ne.s32.totalorder %s6489_s14, %s5192_s26  ;;  %p5199_p12 = scmp.lt.u32.totalorder %s5192_s26, %s6489_s14 }
  0xbc   : > { %p5195_p3 = pnand %p5193_p1, %p5639_p8 }
  0xbe   : > { %p5196_p11 = pneg %p5195_p3 }
  0xc0   : > { %p5201_p13 = pnand %p5199_p12, %p5196_p11 }
  0xc2   : > { %5204 = shalt.err (!%p5201_p13)
}
  0xc3   : > { %s5205_s1 = scalar_lea.vmem %s727_s13, 4096  ;;  %p5213_p7 = scmp.lt.s32.totalorder %s727_s13, %s727_s13 }
  0xc4   : > { %p5206_p0 = scmp.ne.s32.totalorder %s727_s13, %s5205_s1  ;;  %p5214_p9 = scmp.lt.s32.totalorder %s5205_s1, %s5205_s1 }
  0xc6   : > { %p5208_p2 = pnand %p5206_p0, %p5639_p8  ;;  %p5215_p4 = por %p5214_p9, %p5213_p7 }
  0xc8   : > { %p5209_p5 = pneg %p5208_p2 }
  0xca   : > { %p5216_p10 = pnand %p5215_p4, %p5209_p5 }
  0xcc   : > { %5219 = shalt.err (!%p5216_p10)
}
  0xcd   : > { %s5438_s19 = smov 256   ;;  %s5439_s6 = smov 16  }
  0xce   : > { %4813 = dma.hbm_to_vmem [thread:$0]  (!%p5623_p6), %s6489_s14, 4096, %s727_s13, [#allocation13], %s5438_s19, %s5438_s19, %s5439_s6  }
  0xcf   : > { %s5440_s30 = smov [#allocation17]   ;;  %s5441_s28 = smov [#allocation18]  }
  0xd0   : > { %s764_s26 = sshll.u32 %s5440_s30, 4  ;;  %s780_s17 = sshll.u32 %s5441_s28, 4  ;;  %s765_s26 = int_to_ptr.vmem [resolvable:$true] %s764_s26  ;;  %s5768_s17 = int_to_ptr.vmem [resolvable:$true] %s780_s17 }
  0xd1   : > { %s6490_s20 = sld [smem:[#allocation48_spill]] }
  0xd7   : > { %s5220_s1 = scalar_lea.hbm %s6490_s20, 4096 }
  0xd8   : > { %p5221_p1 = scmp.ne.s32.totalorder %s6490_s20, %s5220_s1  ;;  %p5227_p12 = scmp.lt.u32.totalorder %s5220_s1, %s6490_s20 }
  0xda   : > { %p5223_p3 = pnand %p5221_p1, %p5639_p8 }
  0xdc   : > { %p5224_p11 = pneg %p5223_p3 }
  0xde   : > { %p5229_p13 = pnand %p5227_p12, %p5224_p11 }
  0xe0   : > { %5232 = shalt.err (!%p5229_p13)
}
  0xe1   : > { %s5233_s10 = scalar_lea.vmem %s765_s26, 4096  ;;  %p5241_p7 = scmp.lt.s32.totalorder %s765_s26, %s765_s26 }
  0xe2   : > { %p5234_p0 = scmp.ne.s32.totalorder %s765_s26, %s5233_s10  ;;  %p5242_p9 = scmp.lt.s32.totalorder %s5233_s10, %s5233_s10 }
  0xe4   : > { %p5236_p2 = pnand %p5234_p0, %p5639_p8  ;;  %p5243_p4 = por %p5242_p9, %p5241_p7 }
  0xe6   : > { %p5237_p5 = pneg %p5236_p2 }
  0xe8   : > { %p5244_p10 = pnand %p5243_p4, %p5237_p5 }
  0xea   : > { %5247 = shalt.err (!%p5244_p10)
}
  0xeb   : > { %4819 = dma.hbm_to_vmem [thread:$0]  (!%p5623_p6), %s6490_s20, 4096, %s765_s26, [#allocation16], %s5438_s19, %s5438_s19, %s5439_s6  }
  0xec   : > { %s6491_s22 = sld [smem:[#allocation50_spill]] }
  0xf2   : > { %s5248_s5 = scalar_lea.hbm %s6491_s22, 4096 }
  0xf3   : > { %p5249_p1 = scmp.ne.s32.totalorder %s6491_s22, %s5248_s5  ;;  %p5255_p12 = scmp.lt.u32.totalorder %s5248_s5, %s6491_s22 }
  0xf5   : > { %p5251_p3 = pnand %p5249_p1, %p5639_p8 }
  0xf7   : > { %p5252_p11 = pneg %p5251_p3 }
  0xf9   : > { %p5257_p13 = pnand %p5255_p12, %p5252_p11 }
  0xfb   : > { %5260 = shalt.err (!%p5257_p13)
}
  0xfc   : > { %s5261_s19 = scalar_lea.vmem %s5768_s17, 4096  ;;  %p5269_p7 = scmp.lt.s32.totalorder %s5768_s17, %s5768_s17 }
  0xfd   : > { %p5262_p0 = scmp.ne.s32.totalorder %s5768_s17, %s5261_s19  ;;  %p5270_p9 = scmp.lt.s32.totalorder %s5261_s19, %s5261_s19 }
  0xff   : > { %p5264_p2 = pnand %p5262_p0, %p5639_p8  ;;  %p5271_p4 = por %p5270_p9, %p5269_p7 }
 0x101   : > { %p5265_p5 = pneg %p5264_p2 }
 0x103   : > { %p5272_p10 = pnand %p5271_p4, %p5265_p5 }
 0x105   : > { %5275 = shalt.err (!%p5272_p10)
}
 0x106   : > { %s6492_s6 = smov 8   ;;  %s3900_s9 = sadd.s32 4294967294, %s5426_s25  }
 0x107   : > { %4822 = dma.hbm_to_vmem [thread:$0]  (!%p5623_p6), %s6491_s22, 4096, %s5768_s17, [#allocation19], %s6486_s0, %s6486_s0, %s6492_s6  }
 0x108   : > { %s5816_s29 = sadd.s32 1, %s5426_s25   ;;  %s56_s7 = sadd.s32 1, %s5422_s24 }
 0x109   : > { %s53_s23 = ssub.s32 %s5426_s25, %s5816_s29  ;;  %p63_p1 = scmp.ne.s32.totalorder %s5422_s24, %s5418_s3 }
 0x10a   : > { %p54_p8 = scmp.eq.s32.totalorder %s53_s23, 0  ;;  %p64_p3 = scmp.eq.s32.totalorder %s5426_s25, 0 }
 0x10b   : > { %p69_p11 = scmp.ne.s32.totalorder %s5418_s3, %s5414_s27  ;;  %p6495_p13 = scmp.eq.s32.totalorder %s5607_s8, 0 }
 0x10c   : > { %s5827_s30 = scalar_select %p54_p8, %s5422_s24, %s56_s7  }
 0x10d   : > { %p5829_p12 = por %p64_p3, %p63_p1  ;;  %p5835_p6 = por %p6495_p13, %p69_p11 }
 0x10e   : > { %6493 = sst [smem:[#allocation29_spill]] %s5827_s30  ;;  %p628_p0 = scmp.eq.s32.totalorder %s5607_s8, 1 }
 0x10f   : > { %p634_p2 = scmp.eq.s32.totalorder %s3900_s9, 1  ;;  %p4842_p5 = scmp.lt.s32.totalorder %s5426_s25, 2 }
 0x110   : > { %s803_s5 = sand.u32 1, %s5422_s24   ;;  %p5842_p7 = por %p628_p0, %p63_p1 }
 0x111   : > { %p5846_p9 = por %p634_p2, %p69_p11  ;;  %s3911_s18 = sshll.u32 %s803_s5, 4 }
 0x112   : > { %s6497_s2 = scalar_select %p5842_p7, 1, 0 }
 0x113   : > { %s6498_s1 = scalar_select %p5846_p9, 1, 0 }
 0x114   : > { %s3995_s13 = sshll.u32 %s5426_s25, 8  ;;  %s6499_s10 = sld [smem:[#allocation30_spill]] }
 0x115   : > { %s807_s9 = scalar_lea.vmem [#allocation3], %s3911_s18  ;;  %p5860_p4 = pnand %p4842_p5, %p5829_p12 }
 0x116   : > { %s814_s7 = sshll.u32 %s807_s9, 4  ;;  %s6501_s20 = sld [smem:[#allocation31_spill]]  ;;  %s5856_s7 = int_to_ptr.vmem [resolvable:$true] %s814_s7 }
 0x117   : > { %s828_s26 = scalar_lea.vmem [#allocation6], %s3911_s18  ;;  %s5871_s22 = scalar_lea.sflag [#allocation4], %s803_s5 }
 0x118   : > { %s5869_s21 = sshll.u32 %s828_s26, 4  ;;  %p5278_p8 = pneg %p5860_p4  ;;  %s5903_s21 = int_to_ptr.vmem [resolvable:$true] %s5869_s21 }
 0x11a   : > { %s5854_s23 = scalar_lea.hbm %s6499_s10, %s3995_s13  ;;  %s5281_s14 = scalar_lea.hbm %s6499_s10, 512 }
 0x11b   : > { %s5276_s9 = scalar_lea.hbm %s5854_s23, 256  ;;  %p5282_p11 = scmp.lt.u32.totalorder %s5854_s23, %s6499_s10 }
 0x11c   : > { %s5867_s19 = scalar_lea.hbm %s6501_s20, %s3995_s13  ;;  %p5277_p10 = scmp.ne.s32.totalorder %s5854_s23, %s5276_s9 }
 0x11d   : > { %p5283_p12 = scmp.lt.u32.totalorder %s5281_s14, %s5276_s9  ;;  %p5285_p0 = scmp.lt.u32.totalorder %s5276_s9, %s5854_s23 }
 0x11e   : > { %p5279_p1 = pnand %p5278_p8, %p5277_p10 }
 0x11f   : > { %p5284_p13 = por %p5283_p12, %p5282_p11 }
 0x120   : > { %p5280_p3 = pneg %p5279_p1 }
 0x121   : > { %p5286_p2 = por %p5285_p0, %p5284_p13 }
 0x123   : > { %p5287_p5 = pnand %p5286_p2, %p5280_p3 }
 0x125   : > { %5290 = shalt.err (!%p5287_p5)
}
 0x126   : > { %s5291_s5 = scalar_lea.vmem %s5856_s7, 256  ;;  %s5442_s30 = smov [#allocation3]  }
 0x127   : > { %p5292_p10 = scmp.ne.s32.totalorder %s5856_s7, %s5291_s5  ;;  %s5296_s18 = sshll.u32 %s5442_s30, 4  ;;  %s5297_s18 = int_to_ptr.vmem [resolvable:$false] %s5296_s18 }
 0x128   : > { %s5298_s26 = scalar_lea.vmem %s5297_s18, 512  ;;  %p5299_p7 = scmp.lt.s32.totalorder %s5856_s7, %s5297_s18 }
 0x129   : > { %p5294_p1 = pnand %p5292_p10, %p5278_p8  ;;  %p5300_p11 = scmp.lt.s32.totalorder %s5298_s26, %s5291_s5 }
 0x12b   : > { %p5295_p9 = pneg %p5294_p1  ;;  %p5301_p12 = por %p5300_p11, %p5299_p7 }
 0x12d   : > { %p5302_p13 = pnand %p5301_p12, %p5295_p9 }
 0x12f   : > { %5305 = shalt.err (!%p5302_p13)
}
 0x130   : > { %4826 = dma.hbm_to_vmem [thread:$0]  (!%p5860_p4), %s5854_s23, 256, %s5856_s7, %s5871_s22, %s6486_s0, %s6486_s0, %s6492_s6  }
 0x131   : > { %s824_s9 = sand.u32 1, %s5426_s25   ;;  %s5306_s14 = scalar_lea.hbm %s5867_s19, 256 }
 0x132   : > { %s5906_s28 = scalar_lea.sflag [#allocation7], %s824_s9  ;;  %p5307_p7 = scmp.ne.s32.totalorder %s5867_s19, %s5306_s14 }
 0x133   : > { %s5311_s5 = scalar_lea.hbm %s6501_s20, 512  ;;  %p5312_p0 = scmp.lt.u32.totalorder %s5867_s19, %s6501_s20 }
 0x134   : > { %p5309_p9 = pnand %p5307_p7, %p5278_p8  ;;  %p5313_p2 = scmp.lt.u32.totalorder %s5311_s5, %s5306_s14 }
 0x135   : > { %p5315_p10 = scmp.lt.u32.totalorder %s5306_s14, %s5867_s19 }
 0x136   : > { %p5310_p3 = pneg %p5309_p9  ;;  %p5314_p5 = por %p5313_p2, %p5312_p0 }
 0x138   : > { %p5316_p1 = por %p5315_p10, %p5314_p5 }
 0x13a   : > { %p5317_p11 = pnand %p5316_p1, %p5310_p3 }
 0x13c   : > { %5320 = shalt.err (!%p5317_p11)
}
 0x13d   : > { %s5321_s22 = scalar_lea.vmem %s5903_s21, 256  ;;  %s5443_s23 = smov [#allocation6]  }
 0x13e   : > { %p5322_p12 = scmp.ne.s32.totalorder %s5903_s21, %s5321_s22  ;;  %s5326_s7 = sshll.u32 %s5443_s23, 4  ;;  %s5327_s7 = int_to_ptr.vmem [resolvable:$false] %s5326_s7 }
 0x13f   : > { %s5328_s26 = scalar_lea.vmem %s5327_s7, 512  ;;  %p5329_p9 = scmp.lt.s32.totalorder %s5903_s21, %s5327_s7 }
 0x140   : > { %p5324_p13 = pnand %p5322_p12, %p5278_p8  ;;  %p5330_p0 = scmp.lt.s32.totalorder %s5328_s26, %s5321_s22 }
 0x142   : > { %p5325_p7 = pneg %p5324_p13  ;;  %p5331_p2 = por %p5330_p0, %p5329_p9 }
 0x144   : > { %p5332_p5 = pnand %p5331_p2, %p5325_p7 }
 0x146   : > { %5335 = shalt.err (!%p5332_p5)
}
 0x147   : > { %4829 = dma.hbm_to_vmem [thread:$0]  (!%p5860_p4), %s5867_s19, 256, %s5903_s21, %s5906_s28, %s6486_s0, %s6486_s0, %s6492_s6  }
 0x148   : > { %p6502_p8 = scmp.ne.s32.totalorder %s6480_s4, 0 }
 0x149   : > { %s5938_s9 = sand.u32 (!%p6502_p8), 1, %s5418_s3  }
 0x14a   : > { %853 = sbr.rel (%p6502_p8) target bundleno = 6028 (0x178c), region = 124  ;;  %s5941_s14 = sshll.u32 (!%p6502_p8), %s5938_s9, 4 }
 0x14b   : > { %s856_s12 = scalar_lea.sflag (!%p6502_p8), [#allocation4], %s5938_s9  ;;  %s859_s16 = scalar_lea.vmem (!%p6502_p8), [#allocation3], %s5941_s14 }
 0x151   : > { %5381 = dma.done.wait (%p5835_p6), %s856_s12, 256  }
 0x152   : > { %5383 = vsyncadd (%p5835_p6), %s856_s12, 4294967040  ;;  %s864_s21 = sand.u32 1, %s5607_s8   ;;  %s868_s0 = scalar_lea.vmem [#allocation6], %s5941_s14 }
 0x153   : > { %s865_s4 = scalar_lea.sflag [#allocation7], %s864_s21 }
 0x154   : > { %5385 = dma.done.wait (%p5835_p6), %s865_s4, 256  }
 0x155   : > { %5387 = vsyncadd (%p5835_p6), %s865_s4, 4294967040  ;;  %p6503_p4 = scmp.eq.s32.totalorder %s5607_s8, 0 }
 0x157   : > { %5389 = dma.done.wait (%p6503_p4), [#allocation7], 256   ;;  %p6504_p3 = pmov %p6503_p4 }
 0x159   : > { %5391 = vsyncadd (%p6504_p3), [#allocation7], 4294967040  ;;  %p6505_p10 = pmov %p6504_p3 }
 0x15a   : > { %p6506_p1 = pmov %p6504_p3 }
 0x15b   : > { %5393 = dma.done.wait (%p6505_p10), [#allocation10], 8192  }
 0x15c   : > { %5395 = vsyncadd (%p6506_p1), [#allocation10], 4294959104  ;;  %p6507_p11 = pmov %p6506_p1 }
 0x15d   : > { %p6508_p12 = pmov %p6506_p1 }
 0x15e   : > { %5397 = dma.done.wait (%p6507_p11), [#allocation13], 6144  }
 0x15f   : > { %5399 = vsyncadd (%p6508_p12), [#allocation13], 4294961152  ;;  %p6509_p6 = pmov %p6506_p1 }
 0x160   : > { %p6510_p13 = pmov %p6506_p1 }
 0x161   : > { %5401 = dma.done.wait (%p6509_p6), [#allocation16], 6144  }
 0x162   : > { %5403 = vsyncadd (%p6510_p13), [#allocation16], 4294961152  ;;  %p6511_p7 = pmov %p6506_p1 }
 0x163   : > { %p6512_p9 = pmov %p6506_p1 }
 0x164   : > { %5405 = dma.done.wait (%p6511_p7), [#allocation19], 4096  }
 0x165   : > { %5407 = vsyncadd (%p6512_p9), [#allocation19], 4294963200  ;;  %v5975_v0 = vld [vmem:[%s859_s16] sm:$0xff]  ;;  %v5978_v1 = vld [vmem:[%s859_s16 + $0x8] sm:$0xff]  ;;  %v5444_v59 = vmov 0.0   ;;  %s6513_s19 = sld [smem:[#allocation34_spill]] }
 0x166   : > { %993 = vadd.xlane.f32.xlu0 %v5975_v0  ;;  %v1050_v10 = vld [vmem:[#allocation9 + $0x8] sm:$0xff]  ;;  %v1053_v11 = vld [vmem:[#allocation9 + $0x20] sm:$0xff]  ;;  %v1052_v14 = vld [vmem:[#allocation9 + $0x18] sm:$0xff]  ;;  %1178 = vmatprep.mubr.f32.mxu0 %v5444_v59  ;;  %s6514_s5 = sld [smem:[#allocation35_spill]]  ;;  %s6515_s22 = sld [smem:[#allocation37_spill]]  ;;  %vm1268_vm4 = vcmask 261120  }
 0x167   : > { %v4424_v12 = vpack.c.bf16 %v1053_v11, %v1050_v10  ;;  %v1049_v13 = vld [vmem:[#allocation9] sm:$0xff]  ;;  %v1056_v16 = vld [vmem:[#allocation9 + $0x38] sm:$0xff]  ;;  %v1059_v17 = vld [vmem:[#allocation9 + $0x50] sm:$0xff]  ;;  %vm1356_vm6 = vcmask 130048   ;;  %s5445_s23 = smov 64   ;;  %s5446_s7 = smov 96  }
 0x168   : > { %v4426_v15 = vpack.c.bf16 %v1052_v14, %v1049_v13  ;;  %v1051_v18 = vld [vmem:[#allocation9 + $0x10] sm:$0xff]  ;;  %v4428_v19 = vpack.c.bf16 %v1059_v17, %v1056_v16  ;;  %v1054_v20 = vld [vmem:[#allocation9 + $0x28] sm:$0xff]  ;;  %v1065_v26 = vld [vmem:[#allocation9 + $0x80] sm:$0xff]  ;;  %s5447_s26 = smov 32   ;;  %vm1672_vm7 = vcmask 523520   ;;  %vm1883_vm8 = vcmask 785920  }
 0x169   : > { %4425 = vmatprep.subr.bf16.mxu0 %v4424_v12  ;;  %v1055_v21 = vld [vmem:[#allocation9 + $0x30] sm:$0xff]  ;;  %v1058_v22 = vld [vmem:[#allocation9 + $0x48] sm:$0xff]  ;;  %v4456_v23 = vpack.c.bf16 %v1054_v20, %v1051_v18  ;;  %v1057_v27 = vld [vmem:[#allocation9 + $0x40] sm:$0xff]  ;;  %vm2094_vm9 = vcmask 1048320   ;;  %s6518_s21 = sld [smem:[#allocation39_spill]]  ;;  %s6519_s6 = sld [smem:[#allocation40_spill]] }
 0x16a   : > { %995 = vadd.xlane.f32.xlu0 %v5978_v1  ;;  %4427 = vmatpush1.bf16.msra.mxu0 %v4426_v15  ;;  %v4430_v24 = vpack.c.bf16 %v1058_v22, %v1055_v21  ;;  %v1062_v25 = vld [vmem:[#allocation9 + $0x68] sm:$0xff]  ;;  %v1060_v29 = vld [vmem:[#allocation9 + $0x58] sm:$0xff]  ;;  %v1061_v30 = vld [vmem:[#allocation9 + $0x60] sm:$0xff]  ;;  %s6520_s18 = sld [smem:[#allocation42_spill]]  ;;  %p977_p0 = scmp.lt.s32.totalorder %s5607_s8, 1 }
 0x16b   : > { %4429 = vmatprep.subr.bf16.mxu0 %v4428_v19  ;;  %4457 = vmatprep.subr.bf16.mxu1 %v4456_v23  ;;  %v4432_v28 = vpack.c.bf16 %v1065_v26, %v1062_v25  ;;  %v1064_v31 = vld [vmem:[#allocation9 + $0x78] sm:$0xff]  ;;  %v4460_v32 = vpack.c.bf16 %v1060_v29, %v1057_v27  ;;  %v1071_v35 = vld [vmem:[#allocation9 + $0xb0] sm:$0xff]  ;;  %v1066_v38 = vld [vmem:[#allocation9 + $0x88] sm:$0xff]  ;;  %s6523_s17 = sld [smem:[#allocation46_spill]]  ;;  %s6524_s13 = sld [smem:[#allocation47_spill]] }
 0x16c   : > { %4459 = vmatpush3.bf16.msra.mxu1 %v4456_v23  ;;  %v4434_v33 = vpack.c.bf16 %v1064_v31, %v1061_v30  ;;  %v1068_v34 = vld [vmem:[#allocation9 + $0x98] sm:$0xff]  ;;  %v1063_v36 = vld [vmem:[#allocation9 + $0x70] sm:$0xff]  ;;  %v1070_v40 = vld [vmem:[#allocation9 + $0xa8] sm:$0xff]  ;;  %s6526_s16 = sld [smem:[#allocation51_spill]]  ;;  %p6528_p5 = scmp.ne.s32.totalorder %s6497_s2, 0 }
 0x16d   : > { %4461 = vmatprep.subr.bf16.mxu1 %v4460_v32  ;;  %v4436_v37 = vpack.c.bf16 %v1071_v35, %v1068_v34  ;;  %v1067_v39 = vld [vmem:[#allocation9 + $0x90] sm:$0xff]  ;;  %v4464_v41 = vpack.c.bf16 %v1066_v38, %v1063_v36  ;;  %v1074_v43 = vld [vmem:[#allocation9 + $0xc8] sm:$0xff]  ;;  %v1077_v44 = vld [vmem:[#allocation9 + $0xe0] sm:$0xff] }
 0x16e   : > { %4431 = vmatpush1.bf16.msra.mxu0 %v4430_v24  ;;  %v4438_v42 = vpack.c.bf16 %v1070_v40, %v1067_v39  ;;  %v1069_v45 = vld [vmem:[#allocation9 + $0xa0] sm:$0xff]  ;;  %v4440_v46 = vpack.c.bf16 %v1077_v44, %v1074_v43  ;;  %v1072_v47 = vld [vmem:[#allocation9 + $0xb8] sm:$0xff]  ;;  %v1083_v53 = vld [vmem:[#allocation9 + $0x110] sm:$0xff] }
 0x16f   : > { %4433 = vmatprep.subr.bf16.mxu0 %v4432_v28  ;;  %v1073_v48 = vld [vmem:[#allocation9 + $0xc0] sm:$0xff]  ;;  %v1076_v49 = vld [vmem:[#allocation9 + $0xd8] sm:$0xff]  ;;  %v4468_v50 = vpack.c.bf16 %v1072_v47, %v1069_v45  ;;  %v1075_v54 = vld [vmem:[#allocation9 + $0xd0] sm:$0xff] }
 0x170   : > { %4463 = vmatpush3.bf16.msra.mxu1 %v4460_v32  ;;  %v4442_v51 = vpack.c.bf16 %v1076_v49, %v1073_v48  ;;  %v1080_v52 = vld [vmem:[#allocation9 + $0xf8] sm:$0xff]  ;;  %v1078_v56 = vld [vmem:[#allocation9 + $0xe8] sm:$0xff]  ;;  %v1079_v57 = vld [vmem:[#allocation9 + $0xf0] sm:$0xff]  ;;  %v1099_v49 = vlaneseq }
 0x171   : > { %4465 = vmatprep.subr.bf16.mxu1 %v4464_v41  ;;  %v4444_v55 = vpack.c.bf16 %v1083_v53, %v1080_v52  ;;  %v1082_v58 = vld [vmem:[#allocation9 + $0x108] sm:$0xff]  ;;  %v4472_v60 = vpack.c.bf16 %v1078_v56, %v1075_v54  ;;  %v1089_v63 = vld [vmem:[#allocation9 + $0x140] sm:$0xff]  ;;  %v1092_v11 = vld [vmem:[#allocation9 + $0x158] sm:$0xff] }
 0x172   : > { %4435 = vmatpush1.bf16.msra.mxu0 %v4434_v33  ;;  %v4446_v61 = vpack.c.bf16 %v1082_v58, %v1079_v57  ;;  %v1086_v62 = vld [vmem:[#allocation9 + $0x128] sm:$0xff]  ;;  %v1095_v12 = vld [vmem:[#allocation9 + $0x170] sm:$0xff]  ;;  %v1093_v20 = vld [vmem:[#allocation9 + $0x160] sm:$0xff] }
 0x173   : > { %4437 = vmatprep.subr.bf16.mxu0 %v4436_v37  ;;  %v1087_v13 = vld [vmem:[#allocation9 + $0x130] sm:$0xff]  ;;  %v4452_v14 = vpack.c.bf16 %v1095_v12, %v1092_v11  ;;  %v1090_v15 = vld [vmem:[#allocation9 + $0x148] sm:$0xff]  ;;  %v1096_v21 = vld [vmem:[#allocation9 + $0x178] sm:$0xff] }
 0x174   : > { %4467 = vmatpush3.bf16.msra.mxu1 %v4464_v41  ;;  %v1091_v16 = vld [vmem:[#allocation9 + $0x150] sm:$0xff]  ;;  %v1094_v17 = vld [vmem:[#allocation9 + $0x168] sm:$0xff]  ;;  %v4480_v18 = vpack.c.bf16 %v1090_v15, %v1087_v13  ;;  %v4484_v22 = vpack.c.bf16 %v1096_v21, %v1093_v20  ;;  %v3932_v39 = vld [vmem:[%s6513_s19] ss:$0 sm:$0xff] }
 0x175   : > { %4469 = vmatprep.subr.bf16.mxu1 %v4468_v50  ;;  %v4454_v19 = vpack.c.bf16 %v1094_v17, %v1091_v16  ;;  %vm6016_vm5 = vmpackc.low %vm1268_vm4, %vm1268_vm4  ;;  %v985_v16 = vld [vmem:[#allocation8 + $0x8] sm:$0xff]  ;;  %v984_v17 = vld [vmem:[#allocation8] sm:$0xff] }
 0x176   : > { %4439 = vmatpush1.bf16.msra.mxu0 %v4438_v42  ;;  %v3933_v42 = vld [vmem:[%s6514_s5] ss:$0 sm:$0xff] }
 0x177   : > { %4441 = vmatprep.subr.bf16.mxu0 %v4440_v46 }
 0x178   : > { %4471 = vmatpush3.bf16.msra.mxu1 %v4468_v50 }
 0x179   : > { %4473 = vmatprep.subr.bf16.mxu1 %v4472_v60 }
 0x17a   : > { %4443 = vmatpush1.bf16.msra.mxu0 %v4442_v51  ;;  %v1097_v51 = vld [vmem:[%s6515_s22] sm:$0x7]  ;;  %s978_s22 = scalar_select %p977_p0, %s5607_s8, 1 }
 0x17b   : > { %4445 = vmatprep.subr.bf16.mxu0 %v4444_v55 }
 0x17c   : > { %4475 = vmatpush3.bf16.msra.mxu1 %v4472_v60 }
 0x17e   : > { %4447 = vmatpush1.bf16.msra.mxu0 %v4446_v61 }
 0x1f3   : > { %v994_v2 = vpop.xlane.xlu0 %993 }
 0x1f4   : > { %v998_v3 = vmul.f32 0.0078125, %v994_v2  ;;  %v1081_v2 = vld [vmem:[#allocation9 + $0x100] sm:$0xff] }
 0x1f6   : > { %v5982_v4 = vsub.f32 %v5975_v0, %v998_v3  ;;  %v4448_v3 = vpack.c.bf16 %v1089_v63, %v1086_v62 }
 0x1f7   : > { %v996_v5 = vpop.xlane.xlu0 %995 }
 0x1f8   : > { %v999_v6 = vmul.f32 0.0078125, %v996_v5  ;;  %v1002_v7 = vmul.f32 %v5982_v4, %v5982_v4  ;;  %v1084_v5 = vld [vmem:[#allocation9 + $0x118] sm:$0xff]  ;;  %4449 = vmatprep.subr.bf16.mxu0 %v4448_v3  ;;  %v1032_v40 = vmul.f32 %v3932_v39, %v5982_v4  ;;  %v1100_v4 = vshrl.u32 %v1099_v49, 7 }
 0x1fa   : > { %v5987_v8 = vsub.f32 %v5978_v1, %v999_v6  ;;  %1004 = vadd.xlane.f32.xlu1 %v1002_v7  ;;  %v1085_v6 = vld [vmem:[#allocation9 + $0x120] sm:$0xff]  ;;  %v1088_v7 = vld [vmem:[#allocation9 + $0x138] sm:$0xff]  ;;  %v6001_v50 = vsub.s32 0, %v1100_v4  ;;  %v1109_v52 = vsub.s32 2, %v1100_v4  ;;  %v6007_v53 = vsub.s32 1, %v1100_v4 }
 0x1fb   : > { %v4450_v10 = vpack.c.bf16 %v1088_v7, %v1085_v6 }
 0x1fc   : > { %v1003_v9 = vmul.f32 %v5987_v8, %v5987_v8  ;;  %v1033_v44 = vmul.f32 %v3932_v39, %v5987_v8  ;;  %v1102_v8 = vrot.slane %v1097_v51, %v6001_v50  ;;  %v1110_v57 = vrot.slane %v1097_v51, %v1109_v52 }
 0x1fd   : > { %4451 = vmatpush1.bf16.msra.mxu0 %v4450_v10  ;;  %v1106_v58 = vrot.slane %v1097_v51, %v6007_v53 }
 0x1fe   : > { %1006 = vadd.xlane.f32.xlu1 %v1003_v9  ;;  %v4476_v9 = vpack.c.bf16 %v1084_v5, %v1081_v2  ;;  %4453 = vmatprep.subr.bf16.mxu0 %v4452_v14 }
 0x200   : > { %4477 = vmatprep.subr.bf16.mxu1 %v4476_v9 }
 0x201   : > { %4479 = vmatpush3.bf16.msra.mxu1 %v4476_v9  ;;  %4455 = vmatpush1.bf16.msra.mxu0 %v4454_v19  ;;  %v3929_v19 = vadd.f32 -1.0, %v984_v17 }
 0x202   : > { %4481 = vmatprep.subr.bf16.mxu1 %v4480_v18 }
 0x203   : > { %v6034_v21 = vmul.f32 1e+09, %v3929_v19 }
 0x205   : > { %4483 = vmatpush3.bf16.msra.mxu1 %v4480_v18  ;;  %v3930_v18 = vadd.f32 -1.0, %v985_v16 }
 0x206   : > { %4485 = vmatprep.subr.bf16.mxu1 %v4484_v22 }
 0x207   : > { %v6032_v20 = vmul.f32 1e+09, %v3930_v18 }
 0x209   : > { %4487 = vmatpush3.bf16.msra.mxu1 %v4484_v22 }
 0x287   : > { %v1005_v23 = vpop.xlane.xlu1 %1004 }
 0x288   : > { %v1009_v24 = vmul.f32 0.007874016, %v1005_v23 }
 0x28a   : > { %4964 = vrsqrt.f32 %v1009_v24  ;;  %vm1013_vm0 = vcmp.eq.f32.partialorder %v1009_v24, inf  ;;  %v1016_v29 = vand.u32 2147483648, %v1009_v24  ;;  %vm1015_vm1 = vcmp.eq.f32.partialorder %v1009_v24, 0.0 }
 0x28b   : > { %v1007_v25 = vpop.xlane.xlu1 %1006 }
 0x28c   : > { %v1010_v26 = vmul.f32 0.007874016, %v1007_v25 }
 0x28e   : > { %4966 = vrsqrt.f32 %v1010_v26  ;;  %vm1020_vm2 = vcmp.eq.f32.partialorder %v1010_v26, inf  ;;  %v1023_v35 = vand.u32 2147483648, %v1010_v26  ;;  %vm1022_vm3 = vcmp.eq.f32.partialorder %v1010_v26, 0.0 }
 0x294   : > { %v4965_v27 = vpop.eup %4964 }
 0x295   : > { %v1012_v28 = vmul.f32 %v4965_v27, %v1009_v24 }
 0x297   : > { %v1014_v30 = vsel %vm1013_vm0, %v1009_v24, %v1012_v28 }
 0x298   : > { %v4967_v31 = vpop.eup %4966  ;;  %v1017_v32 = vsel %vm1015_vm1, %v1016_v29, %v1014_v30 }
 0x299   : > { %v1019_v33 = vmul.f32 %v4967_v31, %v1010_v26  ;;  %v1034_v34 = vadd.f32 1e-06, %v1017_v32 }
 0x29b   : > { %v1021_v36 = vsel %vm1020_vm2, %v1010_v26, %v1019_v33  ;;  %4968 = vrcp.f32 %v1034_v34 }
 0x29c   : > { %v1024_v37 = vsel %vm1022_vm3, %v1023_v35, %v1021_v36 }
 0x29d   : > { %v1035_v38 = vadd.f32 1e-06, %v1024_v37 }
 0x29f   : > { %4970 = vrcp.f32 %v1035_v38 }
 0x2a5   : > { %v4969_v41 = vpop.eup %4968 }
 0x2a6   : > { %v1037_v43 = vmul.f32 %v4969_v41, %v1032_v40 }
 0x2a8   : > { %v1047_v45 = vadd.f32 %v3933_v42, %v1037_v43 }
 0x2a9   : > { %v4971_v46 = vpop.eup %4970 }
 0x2aa   : > { %1179 = vmatmul.mubr.f32.vlgmr.msra.gmra.mrb[0].mxu0 %v1047_v45  ;;  %4204 = vmatprep.mubr.f32.mxu1 %v1047_v45  ;;  %v1039_v47 = vmul.f32 %v4971_v46, %v1033_v44 }
 0x2ab   : > { %1184 = vmatprep.mubr.f32.mxu0 %v5444_v59 }
 0x2ac   : > { %v1048_v48 = vadd.f32 %v3933_v42, %v1039_v47 }
 0x2ae   : > { %1185 = vmatmul.mubr.f32.gmra.mrb[2].mxu0 %v1048_v48  ;;  %4205 = vmatmul.mubr.f32.vlgmr.msra.gmra.mrb[0].mxu1 %v1048_v48 }
 0x37d   : > { %v1180_v54 = vpop.f32.mrb[0].mxu0 }
 0x37e   : > { %v1181_v55 = vadd.f32 %v1180_v54, %v1102_v8  ;;  %v1182_v56 = vpop.f32.mrb[1].mxu0 }
 0x37f   : > { %v1183_v5 = vadd.f32 %v1182_v56, %v1106_v58 }
 0x380   : > { %v6010_v60 = vmul.f32 0.17677669, %v1181_v55 }
 0x381   : > { %v1186_v61 = vpop.f32.mrb[2].mxu0  ;;  %v4206_v62 = vpop.f32.mrb[0].mxu1 }
 0x382   : > { %v1263_v63 = vadd.f32 %v4206_v62, %v1110_v57  ;;  %v1188_v2 = vpop.f32.mrb[3].mxu0  ;;  %v1257_v3 = vpop.f32.mrb[1].mxu1  ;;  %4211 = vmatprep.mubr.msk.f32.mxu0 %vm1268_vm4, %v6010_v60  ;;  %v1187_v14 = vadd.f32 %v1186_v61, %v1102_v8 }
 0x383   : > { %v1189_v6 = vadd.f32 %v1188_v2, %v1106_v58  ;;  %v1258_v7 = vadd.f32 %v1257_v3, %v1110_v57 }
 0x384   : > { %v6028_v15 = vmul.f32 0.17677669, %v1187_v14 }
 0x385   : > { %v4488_v10 = vpack.c.bf16 %v1189_v6, %v1183_v5  ;;  %v4494_v11 = vpack.c.bf16 %v1263_v63, %v1258_v7  ;;  %v6020_v12 = vpack.i.bf16 %v1189_v6, %v1183_v5  ;;  %v6022_v13 = vpack.i.bf16 %v1263_v63, %v1258_v7 }
 0x387   : > { %4490 = vmatprep.subr.msk.bf16.mxu0 %vm6016_vm5, %v4488_v10  ;;  %4495 = vmatprep.subr.bf16.mxu1 %v4494_v11 }
 0x388   : > { %4493 = vmatpush3.bf16.xpose.msk.msra.mxu0 %vm6016_vm5, %v4488_v10  ;;  %4497 = vmatpush3.bf16.msra.mxu1 %v4494_v11 }
 0x38f   : > { %4212 = vmatmul.mubr.msk.f32.vlgmr.msra.gmra.mrb[4].mxu0 %vm1268_vm4, %v6028_v15 }
 0x462   : > { %v4213_v22 = vpop.f32.mrb[4].mxu0 }
 0x463   : > { %v1353_v23 = vadd.f32 %v4213_v22, %v6032_v20  ;;  %v1347_v24 = vpop.f32.mrb[5].mxu0 }
 0x464   : > { %v1348_v25 = vadd.f32 %v1347_v24, %v6034_v21 }
 0x465   : > { %v1360_v26 = vsel %vm1356_vm6, %v1353_v23, -inf }
 0x466   : > { %1361 = vmax.xlane.f32.xlu1 %v1360_v26  ;;  %v1357_v27 = vsel %vm1356_vm6, %v1348_v25, -inf }
 0x467   : > { %1358 = vmax.xlane.f32.xlu0 %v1357_v27 }
 0x477   : > { %4910 = vrot.lane.b32.xlu1 %v6020_v12, %s5445_s23 }
 0x47b   : > { %1462 = vrot.lane.b32.xlu1 %v6010_v60, %s5446_s7 }
 0x47d   : > { %4905 = vrot.lane.b32.xlu0 %v6020_v12, %s5446_s7 }
 0x47f   : > { %1464 = vrot.lane.b32.xlu1 %v6028_v15, %s5446_s7 }
 0x481   : > { %1675 = vrot.lane.b32.xlu0 %v6010_v60, %s5445_s23 }
 0x483   : > { %1677 = vrot.lane.b32.xlu1 %v6028_v15, %s5445_s23 }
 0x4f3   : > { %v1362_v28 = vpop.xlane.xlu1 %1361 }
 0x4f4   : > { %v1364_v29 = vsub.f32 %v1353_v23, %v1362_v28  ;;  %v1359_v30 = vpop.xlane.xlu0 %1358 }
 0x4f5   : > { %v1363_v31 = vsub.f32 %v1348_v25, %v1359_v30 }
 0x4f6   : > { %v1367_v32 = vmul.f32 1.442695, %v1364_v29 }
 0x4f7   : > { %v1365_v33 = vmul.f32 1.442695, %v1363_v31  ;;  %v4911_v38 = vpop.permute.xlu1 %4910 }
 0x4f8   : > { %v4906_v34 = vpop.permute.xlu0 %4905  ;;  %v4913_v39 = vunpack.i.h.bf16 %v4911_v38  ;;  %v4912_v40 = vunpack.i.l.bf16 %v4911_v38 }
 0x4f9   : > { %4972 = vpow2.f32 %v1365_v33  ;;  %v4908_v35 = vunpack.i.h.bf16 %v4906_v34  ;;  %v4907_v36 = vunpack.i.l.bf16 %v4906_v34 }
 0x4fa   : > { %4974 = vpow2.f32 %v1367_v32  ;;  %v4508_v43 = vpack.c.bf16 %v4913_v39, %v4912_v40 }
 0x4fb   : > { %v4498_v37 = vpack.c.bf16 %v4908_v35, %v4907_v36  ;;  %v1463_v44 = vpop.permute.xlu1 %1462 }
 0x4fc   : > { %v1676_v46 = vpop.permute.xlu0 %1675 }
 0x4fd   : > { %4500 = vmatprep.subr.msk.bf16.mxu1 %vm6016_vm5, %v4498_v37 }
 0x4ff   : > { %v1465_v45 = vpop.permute.xlu1 %1464 }
 0x503   : > { %v6054_v41 = vpop.eup %4972  ;;  %v1678_v47 = vpop.permute.xlu1 %1677 }
 0x504   : > { %v6056_v42 = vpop.eup %4974  ;;  %4218 = vmatprep.mubr.msk.f32.mxu1 %vm1356_vm6, %v6054_v41 }
 0x505   : > { %4219 = vmatmul.mubr.msk.f32.vlgmr.msra.gmra.mrb[2].mxu1 %vm1356_vm6, %v6056_v42 }
 0x506   : > { %4503 = vmatpush3.bf16.xpose.msk.msra.mxu1 %vm6016_vm5, %v4498_v37  ;;  %4225 = vmatprep.mubr.msk.f32.mxu1 %vm1268_vm4, %v1463_v44 }
 0x507   : > { %4510 = vmatprep.subr.msk.bf16.mxu1 %vm6016_vm5, %v4508_v43 }
 0x50d   : > { %4226 = vmatmul.mubr.msk.f32.vlgmr.msra.gmra.mrb[4].mxu1 %vm1268_vm4, %v1465_v45 }
 0x50e   : > { %4513 = vmatpush3.bf16.xpose.msk.msra.mxu1 %vm6016_vm5, %v4508_v43  ;;  %4239 = vmatprep.mubr.msk.f32.mxu1 %vm1268_vm4, %v1676_v46 }
 0x515   : > { %4240 = vmatmul.mubr.msk.f32.vlgmr.msra.gmra.mrb[6].mxu1 %vm1268_vm4, %v1678_v47 }
 0x5d8   : > { %v6072_v48 = vpop.f32.mrb[2].mxu1 }
 0x5d9   : > { %v6074_v49 = vpop.f32.mrb[3].mxu1 }
 0x5e0   : > { %v4227_v4 = vpop.f32.mrb[4].mxu1 }
 0x5e1   : > { %v1544_v51 = vpop.f32.mrb[5].mxu1  ;;  %v1550_v58 = vadd.f32 %v4227_v4, %v6032_v20 }
 0x5e2   : > { %v1545_v61 = vadd.f32 %v1544_v51, %v6034_v21 }
 0x5e3   : > { %v1556_v62 = vsel %vm1356_vm6, %v1550_v58, -inf }
 0x5e4   : > { %v1553_v63 = vsel %vm1356_vm6, %v1545_v61, -inf }
 0x5e8   : > { %v4241_v8 = vpop.f32.mrb[6].mxu1 }
 0x5e9   : > { %v1763_v52 = vadd.f32 %v4241_v8, %v6032_v20  ;;  %v1757_v54 = vpop.f32.mrb[7].mxu1 }
 0x5ea   : > { %v1758_v55 = vadd.f32 %v1757_v54, %v6034_v21 }
 0x5eb   : > { %v1769_v56 = vsel %vm1356_vm6, %v1763_v52, -inf }
 0x5ec   : > { %1770 = vmax.xlane.f32.xlu1 %v1769_v56  ;;  %v1766_v57 = vsel %vm1356_vm6, %v1758_v55, -inf }
 0x5ed   : > { %1767 = vmax.xlane.f32.xlu0 %v1766_v57 }
 0x5fd   : > { %4920 = vrot.lane.b32.xlu1 %v6020_v12, %s5447_s26 }
 0x601   : > { %1888 = vrot.lane.b32.xlu1 %v6028_v15, %s5447_s26 }
 0x603   : > { %4915 = vrot.lane.b32.xlu0 %v6022_v13, %s5445_s23 }
 0x607   : > { %1886 = vrot.lane.b32.xlu0 %v6010_v60, %s5447_s26 }
 0x625   : > { %1557 = vmax.xlane.f32.xlu1 %v1556_v62 }
 0x626   : > { %1554 = vmax.xlane.f32.xlu0 %v1553_v63 }
 0x636   : > { %4930 = vrot.lane.b32.xlu1 %v6022_v13, %s5447_s26 }
 0x679   : > { %v1771_v2 = vpop.xlane.xlu1 %1770 }
 0x67a   : > { %v1773_v3 = vsub.f32 %v1763_v52, %v1771_v2  ;;  %v1768_v5 = vpop.xlane.xlu0 %1767 }
 0x67b   : > { %v1772_v6 = vsub.f32 %v1758_v55, %v1768_v5 }
 0x67c   : > { %v1776_v7 = vmul.f32 1.442695, %v1773_v3  ;;  %v1372_v3 = vsel %vm1356_vm6, %v6056_v42, 0.0 }
 0x67d   : > { %v1774_v10 = vmul.f32 1.442695, %v1772_v6  ;;  %v4921_v60 = vpop.permute.xlu1 %4920  ;;  %v1369_v6 = vsel %vm1356_vm6, %v6054_v41, 0.0 }
 0x67e   : > { %v4923_v11 = vunpack.i.h.bf16 %v4921_v60  ;;  %v4916_v12 = vpop.permute.xlu0 %4915  ;;  %v4922_v14 = vunpack.i.l.bf16 %v4921_v60  ;;  %v2101_v60 = vld [vmem:[#allocation11 + $0x10] sm:$0xff] }
 0x67f   : > { %4976 = vpow2.f32 %v1774_v10  ;;  %v4918_v15 = vunpack.i.h.bf16 %v4916_v12  ;;  %v4917_v16 = vunpack.i.l.bf16 %v4916_v12  ;;  %v2100_v10 = vld [vmem:[#allocation11 + $0x8] sm:$0xff]  ;;  %v2102_v12 = vld [vmem:[#allocation11 + $0x18] sm:$0xff] }
 0x680   : > { %4978 = vpow2.f32 %v1776_v7  ;;  %v4518_v18 = vpack.c.bf16 %v4923_v11, %v4922_v14  ;;  %v2099_v7 = vld [vmem:[#allocation11] sm:$0xff]  ;;  %v4532_v14 = vpack.c.bf16 %v2102_v12, %v2101_v60 }
 0x681   : > { %v4514_v17 = vpack.c.bf16 %v4918_v15, %v4917_v16  ;;  %v1889_v24 = vpop.permute.xlu1 %1888  ;;  %v4528_v11 = vpack.c.bf16 %v2100_v10, %v2099_v7  ;;  %v2103_v15 = vld [vmem:[#allocation11 + $0x20] sm:$0xff]  ;;  %v2104_v16 = vld [vmem:[#allocation11 + $0x28] sm:$0xff] }
 0x682   : > { %v1887_v23 = vpop.permute.xlu0 %1886  ;;  %v4536_v42 = vpack.c.bf16 %v2104_v16, %v2103_v15  ;;  %v3958_v60 = vld [vmem:[%s6518_s21] ss:$0 sm:$0xff]  ;;  %s6521_s21 = sld [smem:[#allocation33_spill]] }
 0x683   : > { %4515 = vmatprep.subr.bf16.mxu1 %v4514_v17 }
 0x684   : > { %4517 = vmatpush3.bf16.msra.mxu1 %v4514_v17 }
 0x685   : > { %4520 = vmatprep.subr.msk.bf16.mxu1 %vm6016_vm5, %v4518_v18 }
 0x688   : > { %s979_s4 = scalar_lea.vmem %s6521_s21, %s978_s22  ;;  %s976_s21 = scalar_lea.vmem [#allocation20], %s5941_s14 }
 0x689   : > { %v4977_v19 = vpop.eup %4976  ;;  %s3706_s14 = scalar_lea.sflag [#allocation5], %s5938_s9 }
 0x68a   : > { %v4979_v22 = vpop.eup %4978  ;;  %4246 = vmatprep.mubr.msk.f32.mxu1 %vm1356_vm6, %v4977_v19 }
 0x68b   : > { %4247 = vmatmul.mubr.msk.f32.vlgmr.msra.gmra.mrb[8].mxu1 %vm1356_vm6, %v4979_v22  ;;  %v1781_v30 = vsel %vm1356_vm6, %v4979_v22, 0.0 }
 0x68c   : > { %4253 = vmatprep.mubr.msk.f32.mxu1 %vm1268_vm4, %v1887_v23 }
 0x68d   : > { %4523 = vmatpush3.bf16.xpose.msk.msra.mxu1 %vm6016_vm5, %v4518_v18 }
 0x694   : > { %4254 = vmatmul.mubr.msk.f32.vlgmr.msra.gmra.mrb[10].mxu1 %vm1268_vm4, %v1889_v24 }
 0x6b2   : > { %v1558_v39 = vpop.xlane.xlu1 %1557 }
 0x6b3   : > { %v1555_v25 = vpop.xlane.xlu0 %1554  ;;  %v1560_v40 = vsub.f32 %v1550_v58, %v1558_v39 }
 0x6b4   : > { %v1559_v26 = vsub.f32 %v1545_v61, %v1555_v25 }
 0x6b5   : > { %v1563_v43 = vmul.f32 1.442695, %v1560_v40 }
 0x6b6   : > { %v1561_v27 = vmul.f32 1.442695, %v1559_v26  ;;  %v4931_v51 = vpop.permute.xlu1 %4930 }
 0x6b7   : > { %v4932_v55 = vunpack.i.l.bf16 %v4931_v51 }
 0x6b8   : > { %4980 = vpow2.f32 %v1561_v27 }
 0x6b9   : > { %4982 = vpow2.f32 %v1563_v43  ;;  %v2111_v43 = vld [vmem:[#allocation11 + $0x60] sm:$0xff] }
 0x6c2   : > { %v4981_v28 = vpop.eup %4980 }
 0x6c3   : > { %4232 = vmatprep.mubr.msk.f32.mxu0 %vm1356_vm6, %v4981_v28  ;;  %v1565_v29 = vsel %vm1356_vm6, %v4981_v28, 0.0  ;;  %v4983_v44 = vpop.eup %4982 }
 0x6c4   : > { %1566 = vadd.xlane.f32.xlu1 %v1565_v29  ;;  %v1568_v45 = vsel %vm1356_vm6, %v4983_v44, 0.0 }
 0x6c8   : > { %1782 = vadd.xlane.f32.xlu1 %v1781_v30  ;;  %v2105_v30 = vld [vmem:[#allocation11 + $0x30] sm:$0xff] }
 0x751   : > { %v1567_v17 = vpop.xlane.xlu1 %1566 }
 0x75e   : > { %v6105_v31 = vpop.f32.mrb[8].mxu1 }
 0x75f   : > { %v6107_v32 = vpop.f32.mrb[9].mxu1 }
 0x767   : > { %v4255_v33 = vpop.f32.mrb[10].mxu1 }
 0x768   : > { %v1974_v34 = vadd.f32 %v4255_v33, %v6032_v20  ;;  %v1968_v35 = vpop.f32.mrb[11].mxu1  ;;  %v1778_v20 = vsel %vm1356_vm6, %v4977_v19, 0.0  ;;  %v1783_v19 = vpop.xlane.xlu1 %1782  ;;  %v2106_v33 = vld [vmem:[#allocation11 + $0x38] sm:$0xff] }
 0x769   : > { %v1969_v36 = vadd.f32 %v1968_v35, %v6034_v21  ;;  %v2107_v35 = vld [vmem:[#allocation11 + $0x40] sm:$0xff] }
 0x76a   : > { %v1980_v37 = vsel %vm1356_vm6, %v1974_v34, -inf }
 0x76b   : > { %1981 = vmax.xlane.f32.xlu0 %v1980_v37  ;;  %v1977_v38 = vsel %vm1356_vm6, %v1969_v36, -inf }
 0x76f   : > { %1978 = vmax.xlane.f32.xlu0 %v1977_v38 }
 0x785   : > { %4925 = vrot.lane.b32.xlu0 %v6022_v13, %s5446_s7  ;;  %v4933_v13 = vunpack.i.h.bf16 %v4931_v51 }
 0x787   : > { %v4524_v61 = vpack.c.bf16 %v4933_v13, %v4932_v55 }
 0x7a4   : > { %1569 = vadd.xlane.f32.xlu0 %v1568_v45 }
 0x7a8   : > { %1779 = vadd.xlane.f32.xlu0 %v1778_v20 }
 0x7f8   : > { %v1982_v21 = vpop.xlane.xlu0 %1981 }
 0x7f9   : > { %v1984_v46 = vsub.f32 %v1974_v34, %v1982_v21  ;;  %v4540_v34 = vpack.c.bf16 %v2106_v33, %v2105_v30 }
 0x7fb   : > { %v1987_v47 = vmul.f32 1.442695, %v1984_v46 }
 0x7fc   : > { %v1979_v4 = vpop.xlane.xlu0 %1978 }
 0x7fd   : > { %4984 = vpow2.f32 %v1987_v47  ;;  %v1983_v8 = vsub.f32 %v1969_v36, %v1979_v4  ;;  %v2108_v36 = vld [vmem:[#allocation11 + $0x48] sm:$0xff] }
 0x7fe   : > { %v4544_v37 = vpack.c.bf16 %v2108_v36, %v2107_v35 }
 0x7ff   : > { %v1985_v52 = vmul.f32 1.442695, %v1983_v8  ;;  %v2113_v8 = vld [vmem:[#allocation11 + $0x70] sm:$0xff] }
 0x800   : > { %v4926_v54 = vpop.permute.xlu0 %4925 }
 0x801   : > { %4986 = vpow2.f32 %v1985_v52  ;;  %v4928_v56 = vunpack.i.h.bf16 %v4926_v54  ;;  %v4927_v57 = vunpack.i.l.bf16 %v4926_v54  ;;  %v2114_v52 = vld [vmem:[#allocation11 + $0x78] sm:$0xff] }
 0x803   : > { %v4504_v58 = vpack.c.bf16 %v4928_v56, %v4927_v57  ;;  %v4556_v56 = vpack.c.bf16 %v2114_v52, %v2113_v8  ;;  %v2370_v8 = vld [vmem:[#allocation14 + $0x88] sm:$0xff] }
 0x805   : > { %4505 = vmatprep.subr.bf16.mxu0 %v4504_v58 }
 0x806   : > { %4507 = vmatpush3.bf16.msra.mxu0 %v4504_v58 }
 0x807   : > { %v4985_v62 = vpop.eup %4984  ;;  %4525 = vmatprep.subr.bf16.mxu0 %v4524_v61 }
 0x808   : > { %v1992_v63 = vsel %vm1356_vm6, %v4985_v62, 0.0 }
 0x809   : > { %1993 = vadd.xlane.f32.xlu1 %v1992_v63  ;;  %4233 = vmatmul.mubr.msk.f32.vlgmr.msra.gmra.mrb[6].mxu0 %vm1356_vm6, %v4983_v44  ;;  %v2112_v44 = vld [vmem:[#allocation11 + $0x68] sm:$0xff] }
 0x80a   : > { %4527 = vmatpush3.bf16.msra.mxu0 %v4524_v61  ;;  %v4552_v46 = vpack.c.bf16 %v2112_v44, %v2111_v43  ;;  %v2366_v44 = vld [vmem:[#allocation14 + $0x68] sm:$0xff] }
 0x80b   : > { %v4987_v2 = vpop.eup %4986  ;;  %4529 = vmatprep.subr.bf16.mxu0 %v4528_v11 }
 0x80c   : > { %4260 = vmatprep.mubr.msk.f32.mxu0 %vm1356_vm6, %v4987_v2  ;;  %v1989_v5 = vsel %vm1356_vm6, %v4987_v2, 0.0 }
 0x80d   : > { %1373 = vadd.xlane.f32.xlu1 %v1372_v3  ;;  %1990 = vadd.xlane.f32.xlu0 %v1989_v5 }
 0x80e   : > { %4261 = vmatmul.mubr.msk.f32.vlgmr.msra.gmra.mrb[8].mxu0 %vm1356_vm6, %v4985_v62 }
 0x80f   : > { %4531 = vmatpush3.bf16.msra.mxu0 %v4528_v11 }
 0x810   : > { %4533 = vmatprep.subr.bf16.mxu0 %v4532_v14 }
 0x811   : > { %1370 = vadd.xlane.f32.xlu0 %v1369_v6 }
 0x813   : > { %4535 = vmatpush3.bf16.msra.mxu0 %v4532_v14 }
 0x814   : > { %4537 = vmatprep.subr.bf16.mxu0 %v4536_v42 }
 0x817   : > { %4539 = vmatpush3.bf16.msra.mxu0 %v4536_v42 }
 0x818   : > { %4541 = vmatprep.subr.bf16.mxu0 %v4540_v34 }
 0x81b   : > { %4543 = vmatpush3.bf16.msra.mxu0 %v4540_v34 }
 0x81c   : > { %4545 = vmatprep.subr.bf16.mxu0 %v4544_v37 }
 0x81f   : > { %4547 = vmatpush3.bf16.msra.mxu0 %v4544_v37 }
 0x831   : > { %v1570_v18 = vpop.xlane.xlu0 %1569 }
 0x835   : > { %v1780_v41 = vpop.xlane.xlu0 %1779 }
 0x896   : > { %v1994_v22 = vpop.xlane.xlu1 %1993 }
 0x89a   : > { %v1374_v23 = vpop.xlane.xlu1 %1373  ;;  %v1991_v24 = vpop.xlane.xlu0 %1990 }
 0x89b   : > { %4988 = vrcp.f32 %v1374_v23  ;;  %v2358_v23 = vld [vmem:[#allocation14 + $0x28] sm:$0xff] }
 0x89e   : > { %v1371_v25 = vpop.xlane.xlu0 %1370 }
 0x89f   : > { %4990 = vrcp.f32 %v1371_v25 }
 0x8a0   : > { %4992 = vrcp.f32 %v1570_v18  ;;  %v2356_v18 = vld [vmem:[#allocation14 + $0x18] sm:$0xff] }
 0x8a1   : > { %4994 = vrcp.f32 %v1567_v17  ;;  %v2354_v17 = vld [vmem:[#allocation14 + $0x8] sm:$0xff] }
 0x8a2   : > { %4996 = vrcp.f32 %v1780_v41  ;;  %v4592_v41 = vpack.c.bf16 %v2356_v18, %v2354_v17  ;;  %v2259_v18 = vld [vmem:[#allocation12 + $0x30] sm:$0xff] }
 0x8a3   : > { %4998 = vrcp.f32 %v1783_v19  ;;  %v2353_v19 = vld [vmem:[#allocation14] sm:$0xff] }
 0x8a4   : > { %5000 = vrcp.f32 %v1994_v22  ;;  %v2355_v22 = vld [vmem:[#allocation14 + $0x10] sm:$0xff] }
 0x8a5   : > { %v4989_v26 = vpop.eup %4988  ;;  %5002 = vrcp.f32 %v1991_v24  ;;  %v2360_v24 = vld [vmem:[#allocation14 + $0x38] sm:$0xff]  ;;  %v4594_v25 = vpack.c.bf16 %v2355_v22, %v2353_v19 }
 0x8a6   : > { %v1459_v27 = vmul.f32 %v4989_v26, %v6072_v48  ;;  %v2109_v48 = vld [vmem:[#allocation11 + $0x50] sm:$0xff]  ;;  %v4596_v26 = vpack.c.bf16 %v2360_v24, %v2358_v23  ;;  %v2260_v19 = vld [vmem:[#allocation12 + $0x38] sm:$0xff]  ;;  %v2381_v24 = vld [vmem:[#allocation14 + $0xe0] sm:$0xff] }
 0x8a7   : > { %v4572_v22 = vpack.c.bf16 %v2260_v19, %v2259_v18  ;;  %v2384_v23 = vld [vmem:[#allocation14 + $0xf8] sm:$0xff] }
 0x8a8   : > { %1461 = vst.msk [vmem:[#allocation2 + $0x8] sm:$0xff] %vm1268_vm4, %v1459_v27  ;;  %v2357_v27 = vld [vmem:[#allocation14 + $0x20] sm:$0xff] }
 0x8a9   : > { %v4991_v28 = vpop.eup %4990 }
 0x8aa   : > { %v1458_v29 = vmul.f32 %v4991_v28, %v6074_v49  ;;  %v2110_v49 = vld [vmem:[#allocation11 + $0x58] sm:$0xff]  ;;  %v4993_v39 = vpop.eup %4992  ;;  %v2359_v28 = vld [vmem:[#allocation14 + $0x30] sm:$0xff] }
 0x8ab   : > { %v4548_v38 = vpack.c.bf16 %v2110_v49, %v2109_v48  ;;  %v4995_v45 = vpop.eup %4994 }
 0x8ac   : > { %1460 = vst.msk [vmem:[#allocation2] sm:$0xff] %vm1268_vm4, %v1458_v29  ;;  %v4997_v47 = vpop.eup %4996  ;;  %v2364_v29 = vld [vmem:[#allocation14 + $0x58] sm:$0xff] }
 0x8ad   : > { %4549 = vmatprep.subr.bf16.mxu0 %v4548_v38  ;;  %v4999_v51 = vpop.eup %4998  ;;  %v1873_v55 = vmul.f32 %v4997_v47, %v6107_v32 }
 0x8ae   : > { %4551 = vmatpush3.bf16.msra.mxu0 %v4548_v38  ;;  %v5001_v13 = vpop.eup %5000  ;;  %v1874_v63 = vmul.f32 %v4999_v51, %v6105_v31  ;;  %v2254_v51 = vld [vmem:[#allocation12 + $0x8] sm:$0xff] }
 0x8af   : > { %4553 = vmatprep.subr.bf16.mxu0 %v4552_v46  ;;  %v5003_v57 = vpop.eup %5002 }
 0x8b2   : > { %4555 = vmatpush3.bf16.msra.mxu0 %v4552_v46  ;;  %v2367_v46 = vld [vmem:[#allocation14 + $0x70] sm:$0xff] }
 0x8b3   : > { %4557 = vmatprep.subr.bf16.mxu0 %v4556_v56 }
 0x8b6   : > { %4559 = vmatpush3.bf16.msra.mxu0 %v4556_v56 }
 0x8b7   : > { %4593 = vmatprep.subr.bf16.mxu0 %v4592_v41  ;;  %v2382_v41 = vld [vmem:[#allocation14 + $0xe8] sm:$0xff] }
 0x8dc   : > { %v4234_v40 = vpop.f32.mrb[6].mxu0 }
 0x8dd   : > { %v1663_v20 = vmul.f32 %v4993_v39, %v4234_v40  ;;  %v1653_v21 = vpop.f32.mrb[7].mxu0  ;;  %v2361_v39 = vld [vmem:[#allocation14 + $0x40] sm:$0xff]  ;;  %v2363_v40 = vld [vmem:[#allocation14 + $0x50] sm:$0xff] }
 0x8de   : > { %v1662_v4 = vmul.f32 %v4995_v45, %v1653_v21  ;;  %v4602_v43 = vpack.c.bf16 %v2363_v40, %v2361_v39  ;;  %v2368_v45 = vld [vmem:[#allocation14 + $0x78] sm:$0xff]  ;;  %v2365_v21 = vld [vmem:[#allocation14 + $0x60] sm:$0xff]  ;;  %v2267_v39 = vld [vmem:[#allocation12 + $0x70] sm:$0xff] }
 0x8df   : > { %1668 = vrot.lane.b32.xlu1 %v1663_v20, %s5447_s26  ;;  %v4604_v20 = vpack.c.bf16 %v2368_v45, %v2366_v44  ;;  %v4606_v47 = vpack.c.bf16 %v2367_v46, %v2365_v21  ;;  %v2268_v40 = vld [vmem:[#allocation12 + $0x78] sm:$0xff] }
 0x8e0   : > { %1666 = vrot.lane.b32.xlu0 %v1662_v4, %s5447_s26  ;;  %v2253_v4 = vld [vmem:[#allocation12] sm:$0xff] }
 0x8e1   : > { %v4262_v54 = vpop.f32.mrb[8].mxu0  ;;  %v4560_v52 = vpack.c.bf16 %v2254_v51, %v2253_v4 }
 0x8e2   : > { %v2085_v58 = vmul.f32 %v5001_v13, %v4262_v54  ;;  %v2075_v61 = vpop.f32.mrb[9].mxu0  ;;  %v2372_v13 = vld [vmem:[#allocation14 + $0x98] sm:$0xff]  ;;  %v2369_v54 = vld [vmem:[#allocation14 + $0x80] sm:$0xff] }
 0x8e3   : > { %v2084_v62 = vmul.f32 %v5003_v57, %v2075_v61  ;;  %1877 = vrot.lane.b32.xlu1 %v1873_v55, %s5445_s23  ;;  %v2371_v55 = vld [vmem:[#allocation14 + $0x90] sm:$0xff]  ;;  %v4608_v56 = vpack.c.bf16 %v2372_v13, %v2370_v8  ;;  %4561 = vmatprep.subr.bf16.mxu1 %v4560_v52  ;;  %v2256_v61 = vld [vmem:[#allocation12 + $0x18] sm:$0xff] }
 0x8e4   : > { %v4610_v57 = vpack.c.bf16 %v2371_v55, %v2369_v54  ;;  %4563 = vmatpush3.bf16.msra.mxu1 %v4560_v52 }
 0x8e5   : > { %2088 = vrot.lane.b32.xlu0 %v2084_v62, %s5446_s7  ;;  %v2374_v62 = vld [vmem:[#allocation14 + $0xa8] sm:$0xff] }
 0x8e7   : > { %1879 = vrot.lane.b32.xlu1 %v1874_v63, %s5445_s23 }
 0x8eb   : > { %2090 = vrot.lane.b32.xlu1 %v2085_v58, %s5446_s7  ;;  %v2255_v58 = vld [vmem:[#allocation12 + $0x10] sm:$0xff] }
 0x8ec   : > { %v4564_v63 = vpack.c.bf16 %v2256_v61, %v2255_v58  ;;  %v3959_v61 = vld [vmem:[%s6519_s6] ss:$0 sm:$0xff] }
 0x8ee   : > { %4565 = vmatprep.subr.bf16.mxu1 %v4564_v63 }
 0x8ef   : > { %4567 = vmatpush3.bf16.msra.mxu1 %v4564_v63 }
 0x951   : > { %v1669_v2 = vpop.permute.xlu1 %1668 }
 0x952   : > { %1674 = vst.msk [vmem:[#allocation2 + $0x8] sm:$0xff] %vm1672_vm7, %v1669_v2  ;;  %v1667_v32 = vpop.permute.xlu0 %1666  ;;  %v2376_v2 = vld [vmem:[#allocation14 + $0xb8] sm:$0xff] }
 0x953   : > { %1673 = vst.msk [vmem:[#allocation2] sm:$0xff] %vm1672_vm7, %v1667_v32  ;;  %v2373_v32 = vld [vmem:[#allocation14 + $0xa0] sm:$0xff] }
 0x955   : > { %v1878_v3 = vpop.permute.xlu1 %1877 }
 0x956   : > { %1884 = vst.msk [vmem:[#allocation2] sm:$0xff] %vm1883_vm8, %v1878_v3  ;;  %v2375_v3 = vld [vmem:[#allocation14 + $0xb0] sm:$0xff] }
 0x957   : > { %v2089_v5 = vpop.permute.xlu0 %2088 }
 0x958   : > { %2095 = vst.msk [vmem:[#allocation2] sm:$0xff] %vm2094_vm9, %v2089_v5  ;;  %v4612_v5 = vpack.c.bf16 %v2376_v2, %v2374_v62  ;;  %v3960_v2 = vld [vmem:[%s6425_s11] ss:$0 sm:$0xff] }
 0x959   : > { %v1880_v31 = vpop.permute.xlu1 %1879 }
 0x95a   : > { %1885 = vst.msk [vmem:[#allocation2 + $0x8] sm:$0xff] %vm1883_vm8, %v1880_v31  ;;  %v4614_v31 = vpack.c.bf16 %v2375_v3, %v2373_v32 }
 0x95d   : > { %v2091_v6 = vpop.permute.xlu1 %2090 }
 0x95e   : > { %2096 = vst.msk [vmem:[#allocation2 + $0x8] sm:$0xff] %vm2094_vm9, %v2091_v6  ;;  %v2257_v6 = vld [vmem:[#allocation12 + $0x20] sm:$0xff] }
 0x95f   : > { %v2097_v7 = vld [vmem:[#allocation2] sm:$0xff] }
 0x960   : > { %4295 = vmatprep.mubr.f32.mxu0 %v2097_v7  ;;  %v2258_v7 = vld [vmem:[#allocation12 + $0x28] sm:$0xff] }
 0x965   : > { %v2098_v10 = vld [vmem:[#allocation2 + $0x8] sm:$0xff] }
 0x966   : > { %4296 = vmatmul.mubr.f32.vlgmr.msra.gmra.mrb[10].mxu0 %v2098_v10  ;;  %v2378_v10 = vld [vmem:[#allocation14 + $0xc8] sm:$0xff] }
 0x967   : > { %2461 = vmatprep.mubr.f32.mxu0 %v5444_v59  ;;  %4595 = vmatpush1.bf16.msra.mxu0 %v4594_v25  ;;  %v2383_v25 = vld [vmem:[#allocation14 + $0xf0] sm:$0xff] }
 0x968   : > { %4597 = vmatprep.subr.bf16.mxu0 %v4596_v26  ;;  %v4620_v26 = vpack.c.bf16 %v2384_v23, %v2382_v41 }
 0xa39   : > { %v4297_v11 = vpop.f32.mrb[10].mxu0 }
 0xa3a   : > { %v2194_v12 = vadd.f32 %v4297_v11, %v3958_v60  ;;  %v2188_v14 = vpop.f32.mrb[11].mxu0  ;;  %v2380_v11 = vld [vmem:[#allocation14 + $0xd8] sm:$0xff] }
 0xa3b   : > { %v2189_v15 = vadd.f32 %v3958_v60, %v2188_v14  ;;  %v4568_v60 = vpack.c.bf16 %v2258_v7, %v2257_v6  ;;  %v2379_v14 = vld [vmem:[#allocation14 + $0xd0] sm:$0xff] }
 0xa3c   : > { %v6149_v16 = vadd.f32 %v2194_v12, %v5978_v1  ;;  %v2362_v1 = vld [vmem:[#allocation14 + $0x48] sm:$0xff]  ;;  %v2377_v12 = vld [vmem:[#allocation14 + $0xc0] sm:$0xff] }
 0xa3d   : > { %v6152_v42 = vadd.f32 %v2189_v15, %v5975_v0  ;;  %v4598_v0 = vpack.c.bf16 %v2359_v28, %v2357_v27  ;;  %v4600_v30 = vpack.c.bf16 %v2364_v29, %v2362_v1  ;;  %v4616_v15 = vpack.c.bf16 %v2380_v11, %v2378_v10  ;;  %4569 = vmatprep.subr.bf16.mxu1 %v4568_v60  ;;  %v2261_v28 = vld [vmem:[#allocation12 + $0x40] sm:$0xff]  ;;  %v2262_v1 = vld [vmem:[#allocation12 + $0x48] sm:$0xff] }
 0xa3e   : > { %2201 = vadd.xlane.f32.xlu1 %v6149_v16  ;;  %v4618_v17 = vpack.c.bf16 %v2379_v14, %v2377_v12  ;;  %4571 = vmatpush3.bf16.msra.mxu1 %v4568_v60  ;;  %v4622_v27 = vpack.c.bf16 %v2383_v25, %v2381_v24  ;;  %v4576_v29 = vpack.c.bf16 %v2262_v1, %v2261_v28  ;;  %v2385_v10 = vld [vmem:[%s6429_s15] sm:$0x3] }
 0xa3f   : > { %2199 = vadd.xlane.f32.xlu0 %v6152_v42  ;;  %4599 = vmatpush1.bf16.msra.mxu0 %v4598_v0  ;;  %v2263_v0 = vld [vmem:[#allocation12 + $0x50] sm:$0xff]  ;;  %v2394_v11 = vrot.slane %v2385_v10, %v6007_v53  ;;  %v3961_v25 = vld [vmem:[%s6520_s18] ss:$0 sm:$0xff]  ;;  %s6525_s18 = sld [smem:[#allocation49_spill]] }
 0xa40   : > { %4601 = vmatprep.subr.bf16.mxu0 %v4600_v30  ;;  %4573 = vmatprep.subr.bf16.mxu1 %v4572_v22  ;;  %v2264_v30 = vld [vmem:[#allocation12 + $0x58] sm:$0xff] }
 0xa42   : > { %4575 = vmatpush3.bf16.msra.mxu1 %v4572_v22 }
 0xa43   : > { %4603 = vmatpush1.bf16.msra.mxu0 %v4602_v43  ;;  %4577 = vmatprep.subr.bf16.mxu1 %v4576_v29  ;;  %v4588_v43 = vpack.c.bf16 %v2268_v40, %v2267_v39 }
 0xa44   : > { %4605 = vmatprep.subr.bf16.mxu0 %v4604_v20 }
 0xa46   : > { %4579 = vmatpush3.bf16.msra.mxu1 %v4576_v29 }
 0xa47   : > { %4607 = vmatpush1.bf16.msra.mxu0 %v4606_v47 }
 0xa48   : > { %4609 = vmatprep.subr.bf16.mxu0 %v4608_v56 }
 0xa4b   : > { %4611 = vmatpush1.bf16.msra.mxu0 %v4610_v57 }
 0xa4c   : > { %4613 = vmatprep.subr.bf16.mxu0 %v4612_v5 }
 0xa4f   : > { %4615 = vmatpush1.bf16.msra.mxu0 %v4614_v31 }
 0xa50   : > { %4617 = vmatprep.subr.bf16.mxu0 %v4616_v15 }
 0xa53   : > { %4619 = vmatpush1.bf16.msra.mxu0 %v4618_v17 }
 0xa54   : > { %4621 = vmatprep.subr.bf16.mxu0 %v4620_v26 }
 0xa57   : > { %4623 = vmatpush1.bf16.msra.mxu0 %v4622_v27 }
 0xacb   : > { %v2202_v33 = vpop.xlane.xlu1 %2201 }
 0xacc   : > { %v2200_v34 = vpop.xlane.xlu0 %2199  ;;  %v2204_v35 = vmul.f32 0.0078125, %v2202_v33  ;;  %v982_v33 = vld [vmem:[%s868_s0] sm:$0xff] }
 0xacd   : > { %v2203_v36 = vmul.f32 0.0078125, %v2200_v34  ;;  %v4580_v34 = vpack.c.bf16 %v2264_v30, %v2263_v0  ;;  %2462 = vmatmul.mubr.f32.vlgmr.msra.gmra.mrb[12].mxu0 %v982_v33  ;;  %v990_v30 = vld [vmem:[%s979_s4] sm:$0x1]  ;;  %s3719_s4 = sshll.u32 %s976_s21, 4  ;;  %s6364_s4 = int_to_ptr.vmem [resolvable:$true] %s3719_s4 }
 0xace   : > { %v6160_v48 = vsub.f32 %v6149_v16, %v2204_v35  ;;  %v2265_v35 = vld [vmem:[#allocation12 + $0x60] sm:$0xff]  ;;  %2467 = vmatprep.mubr.f32.mxu0 %v5444_v59  ;;  %v3931_v33 = vadd.f32 -1.0, %v990_v30 }
 0xacf   : > { %v6157_v37 = vsub.f32 %v6152_v42, %v2203_v36  ;;  %v2266_v36 = vld [vmem:[#allocation12 + $0x68] sm:$0xff]  ;;  %4581 = vmatprep.subr.bf16.mxu1 %v4580_v34 }
 0xad0   : > { %v2208_v38 = vmul.f32 %v6160_v48, %v6160_v48  ;;  %4583 = vmatpush3.bf16.msra.mxu1 %v4580_v34  ;;  %v2237_v3 = vmul.f32 %v3959_v61, %v6160_v48  ;;  %v992_v34 = vmul.f32 1e+09, %v3931_v33 }
 0xad1   : > { %v2207_v49 = vmul.f32 %v6157_v37, %v6157_v37  ;;  %v2236_v62 = vmul.f32 %v3959_v61, %v6157_v37  ;;  %v2390_v37 = vrot.slane %v2385_v10, %v6001_v50 }
 0xad3   : > { %2209 = vadd.xlane.f32.xlu0 %v2207_v49  ;;  %v983_v49 = vld [vmem:[%s868_s0 + $0x8] sm:$0xff]  ;;  %s6522_s0 = sld [smem:[#allocation45_spill]] }
 0xad4   : > { %2468 = vmatmul.mubr.f32.gmra.mrb[14].mxu0 %v983_v49 }
 0xad7   : > { %2211 = vadd.xlane.f32.xlu0 %v2208_v38  ;;  %v4584_v38 = vpack.c.bf16 %v2266_v36, %v2265_v35  ;;  %v6209_v35 = vrot.slane %v992_v34, %v6001_v50 }
 0xad9   : > { %4585 = vmatprep.subr.bf16.mxu1 %v4584_v38 }
 0xada   : > { %4587 = vmatpush3.bf16.msra.mxu1 %v4584_v38 }
 0xadb   : > { %4589 = vmatprep.subr.bf16.mxu1 %v4588_v43 }
 0xade   : > { %4591 = vmatpush3.bf16.msra.mxu1 %v4588_v43 }
 0xb60   : > { %v2210_v44 = vpop.xlane.xlu0 %2209 }
 0xb61   : > { %v2213_v45 = vmul.f32 0.007874016, %v2210_v44 }
 0xb63   : > { %5004 = vrsqrt.f32 %v2213_v45  ;;  %vm2217_vm10 = vcmp.eq.f32.partialorder %v2213_v45, inf  ;;  %v2220_v4 = vand.u32 2147483648, %v2213_v45  ;;  %vm2219_vm11 = vcmp.eq.f32.partialorder %v2213_v45, 0.0 }
 0xb64   : > { %v2212_v20 = vpop.xlane.xlu0 %2211 }
 0xb65   : > { %v2214_v21 = vmul.f32 0.007874016, %v2212_v20 }
 0xb67   : > { %5006 = vrsqrt.f32 %v2214_v21  ;;  %vm2224_vm12 = vcmp.eq.f32.partialorder %v2214_v21, inf  ;;  %v2227_v55 = vand.u32 2147483648, %v2214_v21  ;;  %vm2226_vm13 = vcmp.eq.f32.partialorder %v2214_v21, 0.0 }
 0xb6d   : > { %v5005_v46 = vpop.eup %5004 }
 0xb6e   : > { %v2216_v47 = vmul.f32 %v5005_v46, %v2213_v45 }
 0xb70   : > { %v2218_v51 = vsel %vm2217_vm10, %v2213_v45, %v2216_v47 }
 0xb71   : > { %v5007_v8 = vpop.eup %5006  ;;  %v2221_v52 = vsel %vm2219_vm11, %v2220_v4, %v2218_v51 }
 0xb72   : > { %v2223_v13 = vmul.f32 %v5007_v8, %v2214_v21  ;;  %v2238_v54 = vadd.f32 1e-06, %v2221_v52 }
 0xb74   : > { %v2225_v56 = vsel %vm2224_vm12, %v2214_v21, %v2223_v13  ;;  %5008 = vrcp.f32 %v2238_v54 }
 0xb75   : > { %v2228_v57 = vsel %vm2226_vm13, %v2227_v55, %v2225_v56 }
 0xb76   : > { %v2239_v58 = vadd.f32 1e-06, %v2228_v57 }
 0xb78   : > { %5010 = vrcp.f32 %v2239_v58 }
 0xb7e   : > { %v5009_v63 = vpop.eup %5008 }
 0xb7f   : > { %v2241_v32 = vmul.f32 %v5009_v63, %v2236_v62 }
 0xb81   : > { %v2251_v5 = vadd.f32 %v3960_v2, %v2241_v32 }
 0xb82   : > { %v5011_v31 = vpop.eup %5010 }
 0xb83   : > { %v2243_v6 = vmul.f32 %v5011_v31, %v2237_v3  ;;  %4330 = vmatprep.mubr.f32.mxu1 %v2251_v5 }
 0xb85   : > { %v2252_v7 = vadd.f32 %v3960_v2, %v2243_v6 }
 0xb87   : > { %4331 = vmatmul.mubr.f32.vlgmr.msra.gmra.mrb[12].mxu1 %v2252_v7 }
 0xba0   : > { %v2463_v60 = vpop.f32.mrb[12].mxu0 }
 0xba1   : > { %v2465_v12 = vpop.f32.mrb[13].mxu0  ;;  %v2464_v14 = vadd.f32 %v2463_v60, %v2390_v37 }
 0xba2   : > { %v2466_v15 = vadd.f32 %v2465_v12, %v2394_v11 }
 0xba7   : > { %v2469_v17 = vpop.f32.mrb[14].mxu0 }
 0xba8   : > { %v2470_v48 = vadd.f32 %v2469_v17, %v2390_v37  ;;  %v2471_v18 = vpop.f32.mrb[15].mxu0 }
 0xba9   : > { %v2472_v19 = vadd.f32 %v2471_v18, %v2394_v11 }
 0xbaa   : > { %v4624_v41 = vpack.c.bf16 %v2470_v48, %v2464_v14  ;;  %v6184_v23 = vpack.i.bf16 %v2470_v48, %v2464_v14 }
 0xbab   : > { %v4630_v22 = vpack.c.bf16 %v2472_v19, %v2466_v15  ;;  %v6186_v24 = vpack.i.bf16 %v2472_v19, %v2466_v15 }
 0xbac   : > { %4626 = vmatprep.subr.msk.bf16.mxu1 %vm6016_vm5, %v4624_v41 }
 0xbad   : > { %4629 = vmatpush3.bf16.xpose.msk.msra.mxu1 %vm6016_vm5, %v4624_v41 }
 0xbae   : > { %4631 = vmatprep.subr.bf16.mxu1 %v4630_v22 }
 0xc5a   : > { %v4332_v26 = vpop.f32.mrb[12].mxu1 }
 0xc5b   : > { %v2348_v27 = vadd.f32 %v4332_v26, %v3961_v25  ;;  %v2342_v28 = vpop.f32.mrb[13].mxu1 }
 0xc5c   : > { %v2343_v1 = vadd.f32 %v3961_v25, %v2342_v28 }
 0xc5d   : > { %v6197_v0 = vmul.f32 0.17677669, %v2348_v27 }
 0xc5e   : > { %v6195_v29 = vmul.f32 0.17677669, %v2343_v1 }
 0xc60   : > { %4337 = vmatprep.mubr.msk.f32.mxu1 %vm1268_vm4, %v6195_v29 }
 0xc61   : > { %4338 = vmatmul.mubr.msk.f32.vlgmr.msra.gmra.mrb[14].mxu1 %vm1268_vm4, %v6197_v0 }
 0xc62   : > { %4633 = vmatpush3.bf16.msra.mxu1 %v4630_v22 }
 0xd34   : > { %v4339_v36 = vpop.f32.mrb[14].mxu1 }
 0xd35   : > { %v2564_v49 = vadd.f32 %v4339_v36, %v6209_v35  ;;  %v2558_v38 = vpop.f32.mrb[15].mxu1 }
 0xd36   : > { %v2559_v39 = vadd.f32 %v2558_v38, %v6209_v35 }
 0xd37   : > { %v2570_v40 = vsel %vm1356_vm6, %v2564_v49, -inf }
 0xd38   : > { %2571 = vmax.xlane.f32.xlu1 %v2570_v40  ;;  %v2567_v43 = vsel %vm1356_vm6, %v2559_v39, -inf }
 0xd39   : > { %2568 = vmax.xlane.f32.xlu0 %v2567_v43 }
 0xd49   : > { %2672 = vrot.lane.b32.xlu1 %v6195_v29, %s5446_s7 }
 0xd4d   : > { %2674 = vrot.lane.b32.xlu1 %v6197_v0, %s5446_s7 }
 0xd4f   : > { %4935 = vrot.lane.b32.xlu0 %v6184_v23, %s5446_s7 }
 0xd51   : > { %4945 = vrot.lane.b32.xlu1 %v6184_v23, %s5445_s23 }
 0xdc5   : > { %v2572_v44 = vpop.xlane.xlu1 %2571 }
 0xdc6   : > { %v2574_v45 = vsub.f32 %v2564_v49, %v2572_v44  ;;  %v2569_v20 = vpop.xlane.xlu0 %2568 }
 0xdc7   : > { %v2573_v21 = vsub.f32 %v2559_v39, %v2569_v20 }
 0xdc8   : > { %v2577_v46 = vmul.f32 1.442695, %v2574_v45 }
 0xdc9   : > { %v2575_v47 = vmul.f32 1.442695, %v2573_v21  ;;  %v2673_v55 = vpop.permute.xlu1 %2672 }
 0xdca   : > { %v4936_v4 = vpop.permute.xlu0 %4935 }
 0xdcb   : > { %5012 = vpow2.f32 %v2575_v47  ;;  %v4938_v51 = vunpack.i.h.bf16 %v4936_v4  ;;  %v4937_v8 = vunpack.i.l.bf16 %v4936_v4 }
 0xdcc   : > { %5014 = vpow2.f32 %v2577_v46 }
 0xdcd   : > { %v4634_v52 = vpack.c.bf16 %v4938_v51, %v4937_v8  ;;  %v2675_v56 = vpop.permute.xlu1 %2674 }
 0xdcf   : > { %4636 = vmatprep.subr.msk.bf16.mxu1 %vm6016_vm5, %v4634_v52 }
 0xdd1   : > { %v4946_v5 = vpop.permute.xlu1 %4945 }
 0xdd2   : > { %v4948_v12 = vunpack.i.h.bf16 %v4946_v5  ;;  %v4947_v14 = vunpack.i.l.bf16 %v4946_v5 }
 0xdd4   : > { %v4644_v18 = vpack.c.bf16 %v4948_v12, %v4947_v14 }
 0xdd5   : > { %v6225_v13 = vpop.eup %5012 }
 0xdd6   : > { %v6227_v54 = vpop.eup %5014  ;;  %4344 = vmatprep.mubr.msk.f32.mxu1 %vm1356_vm6, %v6225_v13 }
 0xdd7   : > { %4345 = vmatmul.mubr.msk.f32.vlgmr.msra.gmra.mrb[16].mxu1 %vm1356_vm6, %v6227_v54 }
 0xdd8   : > { %4639 = vmatpush3.bf16.xpose.msk.msra.mxu1 %vm6016_vm5, %v4634_v52  ;;  %4351 = vmatprep.mubr.msk.f32.mxu1 %vm1268_vm4, %v2673_v55 }
 0xddf   : > { %4352 = vmatmul.mubr.msk.f32.vlgmr.msra.gmra.mrb[18].mxu1 %vm1268_vm4, %v2675_v56 }
 0xeaa   : > { %v6237_v57 = vpop.f32.mrb[16].mxu1 }
 0xeab   : > { %v6239_v58 = vpop.f32.mrb[17].mxu1 }
 0xeb2   : > { %v4353_v61 = vpop.f32.mrb[18].mxu1 }
 0xeb3   : > { %v2760_v62 = vadd.f32 %v4353_v61, %v6209_v35  ;;  %v2754_v63 = vpop.f32.mrb[19].mxu1 }
 0xeb4   : > { %v2755_v2 = vadd.f32 %v2754_v63, %v6209_v35 }
 0xeb5   : > { %v2766_v32 = vsel %vm1356_vm6, %v2760_v62, -inf }
 0xeb6   : > { %2767 = vmax.xlane.f32.xlu0 %v2766_v32  ;;  %v2763_v3 = vsel %vm1356_vm6, %v2755_v2, -inf }
 0xeb7   : > { %2764 = vmax.xlane.f32.xlu1 %v2763_v3 }
 0xec8   : > { %2884 = vrot.lane.b32.xlu1 %v6195_v29, %s5445_s23 }
 0xecc   : > { %4940 = vrot.lane.b32.xlu0 %v6186_v24, %s5446_s7  ;;  %4955 = vrot.lane.b32.xlu1 %v6184_v23, %s5447_s26 }
 0xed0   : > { %2886 = vrot.lane.b32.xlu0 %v6197_v0, %s5445_s23 }
 0xf43   : > { %v2768_v31 = vpop.xlane.xlu0 %2767 }
 0xf44   : > { %v2770_v6 = vsub.f32 %v2760_v62, %v2768_v31  ;;  %v2765_v7 = vpop.xlane.xlu1 %2764 }
 0xf45   : > { %v2769_v10 = vsub.f32 %v2755_v2, %v2765_v7 }
 0xf46   : > { %v2773_v37 = vmul.f32 1.442695, %v2770_v6 }
 0xf47   : > { %v2771_v60 = vmul.f32 1.442695, %v2769_v10  ;;  %v4941_v11 = vpop.permute.xlu0 %4940 }
 0xf48   : > { %v4943_v15 = vunpack.i.h.bf16 %v4941_v11  ;;  %v4942_v17 = vunpack.i.l.bf16 %v4941_v11  ;;  %v2885_v22 = vpop.permute.xlu1 %2884 }
 0xf49   : > { %5016 = vpow2.f32 %v2771_v60 }
 0xf4a   : > { %5018 = vpow2.f32 %v2773_v37  ;;  %v4640_v48 = vpack.c.bf16 %v4943_v15, %v4942_v17 }
 0xf4b   : > { %v2887_v23 = vpop.permute.xlu0 %2886 }
 0xf4c   : > { %4641 = vmatprep.subr.bf16.mxu1 %v4640_v48  ;;  %v4956_v36 = vpop.permute.xlu1 %4955 }
 0xf4d   : > { %4643 = vmatpush3.bf16.msra.mxu1 %v4640_v48  ;;  %v4958_v20 = vunpack.i.h.bf16 %v4956_v36  ;;  %v4957_v21 = vunpack.i.l.bf16 %v4956_v36 }
 0xf4e   : > { %4646 = vmatprep.subr.msk.bf16.mxu1 %vm6016_vm5, %v4644_v18 }
 0xf4f   : > { %v4654_v4 = vpack.c.bf16 %v4958_v20, %v4957_v21  ;;  %v3310_v21 = vld [vmem:[#allocation15 + $0x20] sm:$0xff] }
 0xf53   : > { %v5017_v19 = vpop.eup %5016 }
 0xf54   : > { %v5019_v41 = vpop.eup %5018  ;;  %4358 = vmatprep.mubr.msk.f32.mxu1 %vm1356_vm6, %v5017_v19  ;;  %v2775_v3 = vsel %vm1356_vm6, %v5017_v19, 0.0 }
 0xf55   : > { %4359 = vmatmul.mubr.msk.f32.vlgmr.msra.gmra.mrb[20].mxu1 %vm1356_vm6, %v5019_v41  ;;  %v2778_v5 = vsel %vm1356_vm6, %v5019_v41, 0.0 }
 0xf56   : > { %4649 = vmatpush3.bf16.xpose.msk.msra.mxu1 %vm6016_vm5, %v4644_v18  ;;  %4365 = vmatprep.mubr.msk.f32.mxu1 %vm1268_vm4, %v2885_v22 }
 0xf5d   : > { %4366 = vmatmul.mubr.msk.f32.vlgmr.msra.gmra.mrb[22].mxu1 %vm1268_vm4, %v2887_v23 }
0x1028   : > { %v6261_v25 = vpop.f32.mrb[20].mxu1 }
0x1029   : > { %v6263_v26 = vpop.f32.mrb[21].mxu1 }
0x1030   : > { %v4367_v27 = vpop.f32.mrb[22].mxu1 }
0x1031   : > { %v2972_v28 = vadd.f32 %v4367_v27, %v6209_v35  ;;  %v2966_v1 = vpop.f32.mrb[23].mxu1  ;;  %v2579_v27 = vsel %vm1356_vm6, %v6225_v13, 0.0 }
0x1032   : > { %v2967_v30 = vadd.f32 %v2966_v1, %v6209_v35 }
0x1033   : > { %v2978_v33 = vsel %vm1356_vm6, %v2972_v28, -inf }
0x1034   : > { %2979 = vmax.xlane.f32.xlu0 %v2978_v33  ;;  %v2975_v34 = vsel %vm1356_vm6, %v2967_v30, -inf }
0x1035   : > { %2976 = vmax.xlane.f32.xlu1 %v2975_v34 }
0x1046   : > { %3094 = vrot.lane.b32.xlu1 %v6195_v29, %s5447_s26 }
0x104a   : > { %4950 = vrot.lane.b32.xlu0 %v6186_v24, %s5445_s23 }
0x104e   : > { %3096 = vrot.lane.b32.xlu0 %v6197_v0, %s5447_s26 }
0x10c1   : > { %v2980_v49 = vpop.xlane.xlu0 %2979 }
0x10c2   : > { %v2982_v38 = vsub.f32 %v2972_v28, %v2980_v49  ;;  %v2977_v39 = vpop.xlane.xlu1 %2976  ;;  %v2582_v28 = vsel %vm1356_vm6, %v6227_v54, 0.0 }
0x10c3   : > { %v2981_v40 = vsub.f32 %v2967_v30, %v2977_v39  ;;  %v3306_v39 = vld [vmem:[#allocation15] sm:$0xff] }
0x10c4   : > { %v2985_v43 = vmul.f32 1.442695, %v2982_v38 }
0x10c5   : > { %v2983_v44 = vmul.f32 1.442695, %v2981_v40  ;;  %v4951_v45 = vpop.permute.xlu0 %4950  ;;  %v3307_v40 = vld [vmem:[#allocation15 + $0x8] sm:$0xff] }
0x10c6   : > { %v4953_v46 = vunpack.i.h.bf16 %v4951_v45  ;;  %v4952_v47 = vunpack.i.l.bf16 %v4951_v45  ;;  %v3095_v8 = vpop.permute.xlu1 %3094  ;;  %v3309_v45 = vld [vmem:[#allocation15 + $0x18] sm:$0xff] }
0x10c7   : > { %5020 = vpow2.f32 %v2983_v44  ;;  %v4664_v44 = vpack.c.bf16 %v3307_v40, %v3306_v39  ;;  %v3461_v39 = vld [vmem:[#allocation17 + $0x8] sm:$0xff]  ;;  %v3463_v40 = vld [vmem:[#allocation17 + $0x18] sm:$0xff] }
0x10c8   : > { %5022 = vpow2.f32 %v2985_v43  ;;  %v4650_v29 = vpack.c.bf16 %v4953_v46, %v4952_v47  ;;  %v3308_v43 = vld [vmem:[#allocation15 + $0x10] sm:$0xff]  ;;  %v3313_v47 = vld [vmem:[#allocation15 + $0x38] sm:$0xff] }
0x10c9   : > { %v3097_v52 = vpop.permute.xlu0 %3096  ;;  %v4668_v20 = vpack.c.bf16 %v3309_v45, %v3308_v43  ;;  %4665 = vmatprep.subr.bf16.mxu0 %v4664_v44  ;;  %v4696_v43 = vpack.c.bf16 %v3463_v40, %v3461_v39  ;;  %v3462_v45 = vld [vmem:[#allocation17 + $0x10] sm:$0xff]  ;;  %v3588_v40 = vld [vmem:[#allocation18 + $0x18] sm:$0xff] }
0x10ca   : > { %4651 = vmatprep.subr.bf16.mxu1 %v4650_v29  ;;  %4667 = vmatpush3.bf16.msra.mxu0 %v4664_v44  ;;  %v3460_v44 = vld [vmem:[#allocation17] sm:$0xff]  ;;  %v3587_v39 = vld [vmem:[#allocation18 + $0x10] sm:$0xff] }
0x10cb   : > { %4653 = vmatpush3.bf16.msra.mxu1 %v4650_v29  ;;  %4669 = vmatprep.subr.bf16.mxu0 %v4668_v20 }
0x10cc   : > { %4656 = vmatprep.subr.msk.bf16.mxu1 %vm6016_vm5, %v4654_v4 }
0x10ce   : > { %4671 = vmatpush3.bf16.msra.mxu0 %v4668_v20  ;;  %v4698_v20 = vpack.c.bf16 %v3462_v45, %v3460_v44  ;;  %v3606_v44 = vld [vmem:[#allocation18 + $0xa8] sm:$0xff]  ;;  %v4734_v45 = vpack.c.bf16 %v3588_v40, %v3587_v39 }
0x10cf   : > { %v3598_v39 = vld [vmem:[#allocation18 + $0x68] sm:$0xff] }
0x10d1   : > { %v5021_v0 = vpop.eup %5020 }
0x10d2   : > { %v5023_v51 = vpop.eup %5022  ;;  %4372 = vmatprep.mubr.msk.f32.mxu1 %vm1356_vm6, %v5021_v0  ;;  %v2987_v31 = vsel %vm1356_vm6, %v5021_v0, 0.0  ;;  %v3315_v0 = vld [vmem:[#allocation15 + $0x48] sm:$0xff] }
0x10d3   : > { %4373 = vmatmul.mubr.msk.f32.vlgmr.msra.gmra.mrb[24].mxu1 %vm1356_vm6, %v5023_v51  ;;  %v2990_v6 = vsel %vm1356_vm6, %v5023_v51, 0.0 }
0x10d4   : > { %4659 = vmatpush3.bf16.xpose.msk.msra.mxu1 %vm6016_vm5, %v4654_v4  ;;  %4379 = vmatprep.mubr.msk.f32.mxu1 %vm1268_vm4, %v3095_v8  ;;  %v3314_v4 = vld [vmem:[#allocation15 + $0x40] sm:$0xff] }
0x10d5   : > { %v4680_v51 = vpack.c.bf16 %v3315_v0, %v3314_v4  ;;  %v3469_v4 = vld [vmem:[#allocation17 + $0x48] sm:$0xff]  ;;  %v3471_v0 = vld [vmem:[#allocation17 + $0x58] sm:$0xff] }
0x10db   : > { %4380 = vmatmul.mubr.msk.f32.vlgmr.msra.gmra.mrb[26].mxu1 %vm1268_vm4, %v3097_v52 }
0x11a6   : > { %v6283_v55 = vpop.f32.mrb[24].mxu1 }
0x11a7   : > { %v3073_v56 = vpop.f32.mrb[25].mxu1 }
0x11ae   : > { %v4381_v61 = vpop.f32.mrb[26].mxu1 }
0x11af   : > { %v3182_v62 = vadd.f32 %v4381_v61, %v6209_v35  ;;  %v3176_v63 = vpop.f32.mrb[27].mxu1 }
0x11b0   : > { %v3177_v2 = vadd.f32 %v3176_v63, %v6209_v35 }
0x11b1   : > { %v3188_v32 = vsel %vm1356_vm6, %v3182_v62, -inf }
0x11b2   : > { %3189 = vmax.xlane.f32.xlu0 %v3188_v32  ;;  %v3185_v9 = vsel %vm1356_vm6, %v3177_v2, -inf }
0x11b3   : > { %3186 = vmax.xlane.f32.xlu1 %v3185_v9 }
0x11b7   : > { %2776 = vadd.xlane.f32.xlu1 %v2775_v3 }
0x11bb   : > { %2779 = vadd.xlane.f32.xlu1 %v2778_v5 }
0x11bf   : > { %2988 = vadd.xlane.f32.xlu1 %v2987_v31  ;;  %v3316_v31 = vld [vmem:[#allocation15 + $0x50] sm:$0xff] }
0x11c3   : > { %2991 = vadd.xlane.f32.xlu1 %v2990_v6 }
0x11c8   : > { %4960 = vrot.lane.b32.xlu0 %v6186_v24, %s5447_s26 }
0x123f   : > { %v3190_v35 = vpop.xlane.xlu0 %3189 }
0x1240   : > { %v3192_v7 = vsub.f32 %v3182_v62, %v3190_v35  ;;  %v3187_v10 = vpop.xlane.xlu1 %3186  ;;  %v3318_v35 = vld [vmem:[#allocation15 + $0x60] sm:$0xff] }
0x1241   : > { %v3191_v37 = vsub.f32 %v3177_v2, %v3187_v10 }
0x1242   : > { %v3195_v60 = vmul.f32 1.442695, %v3192_v7  ;;  %v3319_v7 = vld [vmem:[#allocation15 + $0x68] sm:$0xff] }
0x1243   : > { %v3193_v11 = vmul.f32 1.442695, %v3191_v37  ;;  %v4961_v12 = vpop.permute.xlu0 %4960  ;;  %v4688_v10 = vpack.c.bf16 %v3319_v7, %v3318_v35  ;;  %v3321_v37 = vld [vmem:[#allocation15 + $0x78] sm:$0xff]  ;;  %v3481_v35 = vld [vmem:[#allocation17 + $0xa8] sm:$0xff] }
0x1244   : > { %5024 = vpow2.f32 %v3195_v60  ;;  %v4963_v14 = vunpack.i.h.bf16 %v4961_v12  ;;  %v4962_v15 = vunpack.i.l.bf16 %v4961_v12  ;;  %v2777_v48 = vpop.xlane.xlu1 %2776  ;;  %v3483_v7 = vld [vmem:[#allocation17 + $0xb8] sm:$0xff] }
0x1245   : > { %5026 = vpow2.f32 %v3193_v11 }
0x1246   : > { %v4660_v17 = vpack.c.bf16 %v4963_v14, %v4962_v15 }
0x1248   : > { %4661 = vmatprep.subr.bf16.mxu1 %v4660_v17  ;;  %v2780_v19 = vpop.xlane.xlu1 %2779 }
0x1249   : > { %4663 = vmatpush3.bf16.msra.mxu1 %v4660_v17 }
0x124a   : > { %4697 = vmatprep.subr.bf16.mxu1 %v4696_v43  ;;  %v3605_v43 = vld [vmem:[#allocation18 + $0xa0] sm:$0xff] }
0x124c   : > { %v2989_v23 = vpop.xlane.xlu1 %2988 }
0x124d   : > { %5028 = vrcp.f32 %v2989_v23 }
0x124e   : > { %v5025_v18 = vpop.eup %5024  ;;  %5030 = vrcp.f32 %v2777_v48 }
0x124f   : > { %v5027_v41 = vpop.eup %5026  ;;  %v3200_v24 = vsel %vm1356_vm6, %v5025_v18, 0.0  ;;  %5032 = vrcp.f32 %v2780_v19 }
0x1250   : > { %3201 = vadd.xlane.f32.xlu0 %v3200_v24  ;;  %4386 = vmatprep.mubr.msk.f32.mxu1 %vm1356_vm6, %v5027_v41  ;;  %v3197_v22 = vsel %vm1356_vm6, %v5027_v41, 0.0  ;;  %v2992_v1 = vpop.xlane.xlu1 %2991 }
0x1251   : > { %4387 = vmatmul.mubr.msk.f32.vlgmr.msra.gmra.mrb[28].mxu1 %vm1356_vm6, %v5025_v18  ;;  %3198 = vadd.xlane.f32.xlu1 %v3197_v22  ;;  %5034 = vrcp.f32 %v2992_v1  ;;  %v3986_v22 = vld [vmem:[%s6522_s0] ss:$0 sm:$0xff] }
0x1252   : > { %3568 = vmatprep.mubr.f32.mxu1 %v5444_v59  ;;  %4699 = vmatpush1.bf16.msra.mxu1 %v4698_v20  ;;  %v4736_v20 = vpack.c.bf16 %v3606_v44, %v3605_v43  ;;  %v3616_v43 = vld [vmem:[#allocation18 + $0xf8] sm:$0xff] }
0x1255   : > { %2580 = vadd.xlane.f32.xlu1 %v2579_v27 }
0x1257   : > { %v5029_v30 = vpop.eup %5028 }
0x1258   : > { %v3082_v33 = vmul.f32 %v5029_v30, %v3073_v56  ;;  %v5031_v34 = vpop.eup %5030 }
0x1259   : > { %2583 = vadd.xlane.f32.xlu1 %v2582_v28  ;;  %v2872_v36 = vmul.f32 %v5031_v34, %v6263_v26  ;;  %v5033_v49 = vpop.eup %5032  ;;  %v3311_v26 = vld [vmem:[#allocation15 + $0x28] sm:$0xff] }
0x125a   : > { %v2873_v13 = vmul.f32 %v5033_v49, %v6261_v25  ;;  %v4672_v46 = vpack.c.bf16 %v3311_v26, %v3310_v21  ;;  %v3312_v25 = vld [vmem:[#allocation15 + $0x30] sm:$0xff]  ;;  %v3465_v21 = vld [vmem:[#allocation17 + $0x28] sm:$0xff]  ;;  %v3467_v26 = vld [vmem:[#allocation17 + $0x38] sm:$0xff] }
0x125b   : > { %v5035_v38 = vpop.eup %5034  ;;  %v4676_v29 = vpack.c.bf16 %v3313_v47, %v3312_v25  ;;  %v3464_v25 = vld [vmem:[#allocation17 + $0x20] sm:$0xff]  ;;  %v3466_v47 = vld [vmem:[#allocation17 + $0x30] sm:$0xff] }
0x125c   : > { %v3083_v54 = vmul.f32 %v5035_v38, %v6283_v55  ;;  %4673 = vmatprep.subr.bf16.mxu0 %v4672_v46 }
0x125d   : > { %4675 = vmatpush3.bf16.msra.mxu0 %v4672_v46  ;;  %v4700_v46 = vpack.c.bf16 %v3467_v26, %v3465_v21  ;;  %v3589_v21 = vld [vmem:[#allocation18 + $0x20] sm:$0xff]  ;;  %v3590_v26 = vld [vmem:[#allocation18 + $0x28] sm:$0xff] }
0x125e   : > { %4677 = vmatprep.subr.bf16.mxu0 %v4676_v29 }
0x125f   : > { %4701 = vmatprep.subr.bf16.mxu1 %v4700_v46  ;;  %v3607_v46 = vld [vmem:[#allocation18 + $0xb0] sm:$0xff] }
0x1261   : > { %4679 = vmatpush3.bf16.msra.mxu0 %v4676_v29  ;;  %v4702_v29 = vpack.c.bf16 %v3466_v47, %v3464_v25  ;;  %v3608_v25 = vld [vmem:[#allocation18 + $0xb8] sm:$0xff]  ;;  %v4738_v47 = vpack.c.bf16 %v3590_v26, %v3589_v21 }
0x1262   : > { %4681 = vmatprep.subr.bf16.mxu0 %v4680_v51 }
0x1263   : > { %4703 = vmatpush1.bf16.msra.mxu1 %v4702_v29  ;;  %v4740_v29 = vpack.c.bf16 %v3608_v25, %v3607_v46 }
0x1265   : > { %4683 = vmatpush3.bf16.msra.mxu0 %v4680_v51  ;;  %v4704_v51 = vpack.c.bf16 %v3471_v0, %v3469_v4  ;;  %v3591_v4 = vld [vmem:[#allocation18 + $0x30] sm:$0xff]  ;;  %v3592_v0 = vld [vmem:[#allocation18 + $0x38] sm:$0xff] }
0x1266   : > { %3086 = vrot.lane.b32.xlu0 %v3082_v33, %s5445_s23 }
0x1267   : > { %4705 = vmatprep.subr.bf16.mxu1 %v4704_v51  ;;  %v3609_v51 = vld [vmem:[#allocation18 + $0xc0] sm:$0xff] }
0x126a   : > { %2876 = vrot.lane.b32.xlu1 %v2872_v36, %s5447_s26 }
0x126e   : > { %2878 = vrot.lane.b32.xlu1 %v2873_v13, %s5447_s26 }
0x1272   : > { %3088 = vrot.lane.b32.xlu1 %v3083_v54, %s5445_s23  ;;  %s3997_s23 = sshll.u32 %s5607_s8, 8  ;;  %s5448_s8 = smov [#allocation20]  }
0x1273   : > { %s5340_s19 = sshll.u32 %s5448_s8, 4  ;;  %s5341_s19 = int_to_ptr.vmem [resolvable:$false] %s5340_s19 }
0x1274   : > { %s5342_s28 = scalar_lea.vmem %s5341_s19, 512  ;;  %p5343_p3 = scmp.lt.s32.totalorder %s6364_s4, %s5341_s19 }
0x12dd   : > { %v3202_v61 = vpop.xlane.xlu0 %3201 }
0x12de   : > { %v3199_v8 = vpop.xlane.xlu1 %3198 }
0x12e1   : > { %v3087_v9 = vpop.permute.xlu0 %3086 }
0x12e2   : > { %v2581_v52 = vpop.xlane.xlu1 %2580 }
0x12e3   : > { %5036 = vrcp.f32 %v2581_v52  ;;  %v3470_v52 = vld [vmem:[#allocation17 + $0x50] sm:$0xff] }
0x12e6   : > { %v2584_v55 = vpop.xlane.xlu1 %2583 }
0x12e7   : > { %5038 = vrcp.f32 %v2584_v55 }
0x12e8   : > { %5040 = vrcp.f32 %v3199_v8  ;;  %v3468_v8 = vld [vmem:[#allocation17 + $0x40] sm:$0xff] }
0x12e9   : > { %5042 = vrcp.f32 %v3202_v61  ;;  %v4706_v55 = vpack.c.bf16 %v3470_v52, %v3468_v8  ;;  %v3475_v61 = vld [vmem:[#allocation17 + $0x78] sm:$0xff]  ;;  %v3610_v8 = vld [vmem:[#allocation18 + $0xc8] sm:$0xff]  ;;  %v4742_v52 = vpack.c.bf16 %v3592_v0, %v3591_v4 }
0x12ea   : > { %v2877_v56 = vpop.permute.xlu1 %2876 }
0x12eb   : > { %4707 = vmatpush1.bf16.msra.mxu1 %v4706_v55  ;;  %v4744_v55 = vpack.c.bf16 %v3610_v8, %v3609_v51 }
0x12ed   : > { %v5037_v62 = vpop.eup %5036 }
0x12ee   : > { %v2668_v63 = vmul.f32 %v5037_v62, %v6239_v58  ;;  %v2879_v2 = vpop.permute.xlu1 %2878  ;;  %v3317_v58 = vld [vmem:[#allocation15 + $0x58] sm:$0xff] }
0x12ef   : > { %v4684_v6 = vpack.c.bf16 %v3317_v58, %v3316_v31  ;;  %v3476_v31 = vld [vmem:[#allocation17 + $0x80] sm:$0xff]  ;;  %v3478_v58 = vld [vmem:[#allocation17 + $0x90] sm:$0xff] }
0x12f0   : > { %2670 = vst.msk [vmem:[#allocation2] sm:$0xff] %vm1268_vm4, %v2668_v63  ;;  %v3472_v63 = vld [vmem:[#allocation17 + $0x60] sm:$0xff] }
0x12f1   : > { %v5039_v32 = vpop.eup %5038  ;;  %2882 = vst.msk [vmem:[#allocation2] sm:$0xff] %vm1672_vm7, %v2877_v56  ;;  %4685 = vmatprep.subr.bf16.mxu0 %v4684_v6  ;;  %v3473_v56 = vld [vmem:[#allocation17 + $0x68] sm:$0xff] }
0x12f2   : > { %v2669_v3 = vmul.f32 %v5039_v32, %v6237_v57  ;;  %3092 = vst.msk [vmem:[#allocation2] sm:$0xff] %vm1883_vm8, %v3087_v9  ;;  %v3089_v5 = vpop.permute.xlu1 %3088  ;;  %4687 = vmatpush3.bf16.msra.mxu0 %v4684_v6  ;;  %v3320_v57 = vld [vmem:[#allocation15 + $0x70] sm:$0xff]  ;;  %v5041_v12 = vpop.eup %5040  ;;  %v4708_v62 = vpack.c.bf16 %v3475_v61, %v3473_v56  ;;  %v3477_v9 = vld [vmem:[#allocation17 + $0x88] sm:$0xff]  ;;  %v4714_v6 = vpack.c.bf16 %v3478_v58, %v3476_v31  ;;  %v3593_v56 = vld [vmem:[#allocation18 + $0x40] sm:$0xff] }
0x12f3   : > { %4689 = vmatprep.subr.bf16.mxu0 %v4688_v10  ;;  %v4692_v60 = vpack.c.bf16 %v3321_v37, %v3320_v57  ;;  %v5043_v17 = vpop.eup %5042  ;;  %v4716_v57 = vpack.c.bf16 %v3483_v7, %v3481_v35  ;;  %v3482_v37 = vld [vmem:[#allocation17 + $0xb0] sm:$0xff]  ;;  %v3594_v61 = vld [vmem:[#allocation18 + $0x48] sm:$0xff] }
0x12f4   : > { %2671 = vst.msk [vmem:[#allocation2 + $0x8] sm:$0xff] %vm1268_vm4, %v2669_v3  ;;  %4709 = vmatprep.subr.bf16.mxu1 %v4708_v62  ;;  %v3479_v3 = vld [vmem:[#allocation17 + $0x98] sm:$0xff]  ;;  %v3611_v62 = vld [vmem:[#allocation18 + $0xd0] sm:$0xff]  ;;  %v3614_v31 = vld [vmem:[#allocation18 + $0xe8] sm:$0xff] }
0x12f5   : > { %2883 = vst.msk [vmem:[#allocation2 + $0x8] sm:$0xff] %vm1672_vm7, %v2879_v2  ;;  %v3474_v2 = vld [vmem:[#allocation17 + $0x70] sm:$0xff] }
0x12f6   : > { %3093 = vst.msk [vmem:[#allocation2 + $0x8] sm:$0xff] %vm1883_vm8, %v3089_v5  ;;  %4691 = vmatpush3.bf16.msra.mxu0 %v4688_v10  ;;  %v4710_v32 = vpack.c.bf16 %v3474_v2, %v3472_v63  ;;  %v4712_v5 = vpack.c.bf16 %v3479_v3, %v3477_v9  ;;  %v3480_v10 = vld [vmem:[#allocation17 + $0xa0] sm:$0xff]  ;;  %v3612_v63 = vld [vmem:[#allocation18 + $0xd8] sm:$0xff]  ;;  %v4746_v2 = vpack.c.bf16 %v3594_v61, %v3593_v56  ;;  %v3595_v9 = vld [vmem:[#allocation18 + $0x50] sm:$0xff] }
0x12f7   : > { %4693 = vmatprep.subr.bf16.mxu0 %v4692_v60  ;;  %v3596_v3 = vld [vmem:[#allocation18 + $0x58] sm:$0xff] }
0x12f8   : > { %4711 = vmatpush1.bf16.msra.mxu1 %v4710_v32  ;;  %v4748_v32 = vpack.c.bf16 %v3612_v63, %v3611_v62  ;;  %v4750_v58 = vpack.c.bf16 %v3596_v3, %v3595_v9  ;;  %v3989_v63 = vld [vmem:[%s6526_s16] ss:$0 sm:$0xff] }
0x12f9   : > { %4713 = vmatprep.subr.bf16.mxu1 %v4712_v5  ;;  %v3613_v5 = vld [vmem:[#allocation18 + $0xe0] sm:$0xff] }
0x12fa   : > { %4695 = vmatpush3.bf16.msra.mxu0 %v4692_v60  ;;  %v3485_v60 = vld [vmem:[#allocation17 + $0xc8] sm:$0xff] }
0x12fc   : > { %4715 = vmatpush1.bf16.msra.mxu1 %v4714_v6  ;;  %v4752_v6 = vpack.c.bf16 %v3614_v31, %v3613_v5 }
0x12fd   : > { %4717 = vmatprep.subr.bf16.mxu1 %v4716_v57 }
0x1324   : > { %v4388_v11 = vpop.f32.mrb[28].mxu1 }
0x1325   : > { %v3283_v14 = vpop.f32.mrb[29].mxu1  ;;  %v3293_v48 = vmul.f32 %v5043_v17, %v4388_v11  ;;  %v3487_v11 = vld [vmem:[#allocation17 + $0xd8] sm:$0xff]  ;;  %v3486_v17 = vld [vmem:[#allocation17 + $0xd0] sm:$0xff] }
0x1326   : > { %v3292_v15 = vmul.f32 %v5041_v12, %v3283_v14  ;;  %v4718_v12 = vpack.c.bf16 %v3482_v37, %v3480_v10  ;;  %v4720_v14 = vpack.c.bf16 %v3487_v11, %v3485_v60 }
0x1328   : > { %3296 = vrot.lane.b32.xlu1 %v3292_v15, %s5446_s7  ;;  %v3484_v15 = vld [vmem:[#allocation17 + $0xc0] sm:$0xff]  ;;  %4719 = vmatpush1.bf16.msra.mxu1 %v4718_v12 }
0x1329   : > { %4721 = vmatprep.subr.bf16.mxu1 %v4720_v14 }
0x132c   : > { %3298 = vrot.lane.b32.xlu1 %v3293_v48, %s5446_s7  ;;  %v3489_v48 = vld [vmem:[#allocation17 + $0xe8] sm:$0xff]  ;;  %s6527_s7 = sld [smem:[#allocation52_spill]] }
0x1332   : > { %s6370_s6 = scalar_lea.hbm %s6527_s7, %s3997_s23 }
0x139a   : > { %v3297_v18 = vpop.permute.xlu1 %3296 }
0x139b   : > { %3302 = vst.msk [vmem:[#allocation2] sm:$0xff] %vm2094_vm9, %v3297_v18  ;;  %v3491_v18 = vld [vmem:[#allocation17 + $0xf8] sm:$0xff] }
0x139e   : > { %v3299_v19 = vpop.permute.xlu1 %3298 }
0x139f   : > { %3303 = vst.msk [vmem:[#allocation2 + $0x8] sm:$0xff] %vm2094_vm9, %v3299_v19  ;;  %v4722_v19 = vpack.c.bf16 %v3486_v17, %v3484_v15 }
0x13a1   : > { %4723 = vmatpush1.bf16.msra.mxu1 %v4722_v19 }
0x13a2   : > { %v3304_v41 = vld [vmem:[#allocation2] sm:$0xff] }
0x13a3   : > { %4421 = vmatprep.mubr.f32.mxu0 %v3304_v41  ;;  %v4724_v41 = vpack.c.bf16 %v3491_v18, %v3489_v48 }
0x13a5   : > { %4725 = vmatprep.subr.bf16.mxu1 %v4724_v41 }
0x13a6   : > { %v3305_v24 = vld [vmem:[#allocation2 + $0x8] sm:$0xff] }
0x13a7   : > { %4422 = vmatmul.mubr.f32.vlgmr.msra.gmra.mrb[16].mxu0 %v3305_v24  ;;  %v3488_v24 = vld [vmem:[#allocation17 + $0xe0] sm:$0xff] }
0x147a   : > { %v4423_v23 = vpop.f32.mrb[16].mxu0 }
0x147b   : > { %v3401_v27 = vadd.f32 %v4423_v23, %v3986_v22  ;;  %v3395_v28 = vpop.f32.mrb[17].mxu0 }
0x147c   : > { %v3396_v1 = vadd.f32 %v3986_v22, %v3395_v28  ;;  %v3490_v22 = vld [vmem:[#allocation17 + $0xf0] sm:$0xff]  ;;  %v3602_v28 = vld [vmem:[#allocation18 + $0x88] sm:$0xff] }
0x147d   : > { %v6327_v30 = vadd.f32 %v3401_v27, %v6149_v16  ;;  %v4726_v23 = vpack.c.bf16 %v3490_v22, %v3488_v24  ;;  %v3601_v27 = vld [vmem:[#allocation18 + $0x80] sm:$0xff] }
0x147e   : > { %v6330_v33 = vadd.f32 %v3396_v1, %v6152_v42  ;;  %v3585_v1 = vld [vmem:[#allocation18] sm:$0xff] }
0x147f   : > { %3408 = vadd.xlane.f32.xlu0 %v6327_v30  ;;  %4727 = vmatpush1.bf16.msra.mxu1 %v4726_v23  ;;  %v3987_v22 = vld [vmem:[%s6523_s17] ss:$0 sm:$0xff]  ;;  %s5336_s17 = scalar_lea.vmem %s6364_s4, 256 }
0x1480   : > { %3406 = vadd.xlane.f32.xlu1 %v6330_v33  ;;  %p5337_p2 = scmp.ne.s32.totalorder %s6364_s4, %s5336_s17  ;;  %p5344_p10 = scmp.lt.s32.totalorder %s5342_s28, %s5336_s17 }
0x1482   : > { %p5338_p8 = pnand %p5337_p2, %p6528_p5  ;;  %p5345_p1 = por %p5344_p10, %p5343_p3 }
0x1484   : > { %p5339_p4 = pneg %p5338_p8 }
0x1486   : > { %p5346_p11 = pnand %p5345_p1, %p5339_p4 }
0x150c   : > { %v3409_v34 = vpop.xlane.xlu0 %3408 }
0x150d   : > { %v3407_v36 = vpop.xlane.xlu1 %3406  ;;  %v3411_v49 = vmul.f32 0.0078125, %v3409_v34  ;;  %v4728_v34 = vpack.c.bf16 %v3602_v28, %v3601_v27  ;;  %v3988_v28 = vld [vmem:[%s6524_s13] ss:$0 sm:$0xff] }
0x150e   : > { %v3410_v13 = vmul.f32 0.0078125, %v3407_v36  ;;  %v3586_v36 = vld [vmem:[#allocation18 + $0x8] sm:$0xff] }
0x150f   : > { %v6338_v54 = vsub.f32 %v6327_v30, %v3411_v49  ;;  %v3603_v49 = vld [vmem:[#allocation18 + $0x90] sm:$0xff]  ;;  %4729 = vmatprep.subr.bf16.mxu0 %v4728_v34 }
0x1510   : > { %v6335_v38 = vsub.f32 %v6330_v33, %v3410_v13  ;;  %v3604_v13 = vld [vmem:[#allocation18 + $0x98] sm:$0xff] }
0x1511   : > { %v3415_v42 = vmul.f32 %v6338_v54, %v6338_v54  ;;  %v3444_v34 = vmul.f32 %v3987_v22, %v6338_v54  ;;  %v3492_v54 = vld [vmem:[%s6525_s18] sm:$0x3] }
0x1512   : > { %v3414_v16 = vmul.f32 %v6335_v38, %v6335_v38  ;;  %v3443_v23 = vmul.f32 %v3987_v22, %v6335_v38  ;;  %v3615_v38 = vld [vmem:[#allocation18 + $0xf0] sm:$0xff]  ;;  %v3501_v26 = vrot.slane %v3492_v54, %v6007_v53 }
0x1513   : > { %v4756_v44 = vpack.c.bf16 %v3616_v43, %v3615_v38 }
0x1514   : > { %3416 = vadd.xlane.f32.xlu1 %v3414_v16  ;;  %v4730_v16 = vpack.c.bf16 %v3586_v36, %v3585_v1 }
0x1516   : > { %4731 = vmatpush3.bf16.msra.mxu0 %v4730_v16 }
0x1518   : > { %3418 = vadd.xlane.f32.xlu1 %v3415_v42  ;;  %v4732_v42 = vpack.c.bf16 %v3604_v13, %v3603_v49 }
0x151a   : > { %4733 = vmatprep.subr.bf16.mxu0 %v4732_v42  ;;  %v3597_v42 = vld [vmem:[#allocation18 + $0x60] sm:$0xff] }
0x151b   : > { %4735 = vmatpush3.bf16.msra.mxu0 %v4734_v45  ;;  %v4754_v40 = vpack.c.bf16 %v3598_v39, %v3597_v42  ;;  %v3599_v45 = vld [vmem:[#allocation18 + $0x70] sm:$0xff] }
0x151c   : > { %4737 = vmatprep.subr.bf16.mxu0 %v4736_v20  ;;  %v3600_v20 = vld [vmem:[#allocation18 + $0x78] sm:$0xff] }
0x151d   : > { %v4758_v21 = vpack.c.bf16 %v3600_v20, %v3599_v45 }
0x151f   : > { %4739 = vmatpush3.bf16.msra.mxu0 %v4738_v47 }
0x1520   : > { %4741 = vmatprep.subr.bf16.mxu0 %v4740_v29 }
0x1523   : > { %4743 = vmatpush3.bf16.msra.mxu0 %v4742_v52 }
0x1524   : > { %4745 = vmatprep.subr.bf16.mxu0 %v4744_v55 }
0x1527   : > { %4747 = vmatpush3.bf16.msra.mxu0 %v4746_v2 }
0x1528   : > { %4749 = vmatprep.subr.bf16.mxu0 %v4748_v32 }
0x152b   : > { %4751 = vmatpush3.bf16.msra.mxu0 %v4750_v58 }
0x152c   : > { %4753 = vmatprep.subr.bf16.mxu0 %v4752_v6 }
0x152f   : > { %4755 = vmatpush3.bf16.msra.mxu0 %v4754_v40 }
0x1530   : > { %4757 = vmatprep.subr.bf16.mxu0 %v4756_v44 }
0x1533   : > { %4759 = vmatpush3.bf16.msra.mxu0 %v4758_v21 }
0x15a1   : > { %v3417_v35 = vpop.xlane.xlu1 %3416 }
0x15a2   : > { %v3420_v7 = vmul.f32 0.007874016, %v3417_v35 }
0x15a4   : > { %5044 = vrsqrt.f32 %v3420_v7  ;;  %vm3424_vm14 = vcmp.eq.f32.partialorder %v3420_v7, inf  ;;  %v3427_v11 = vand.u32 2147483648, %v3420_v7  ;;  %vm3426_vm15 = vcmp.eq.f32.partialorder %v3420_v7, 0.0 }
0x15a5   : > { %v3419_v10 = vpop.xlane.xlu1 %3418 }
0x15a6   : > { %v3421_v57 = vmul.f32 0.007874016, %v3419_v10 }
0x15a8   : > { %5046 = vrsqrt.f32 %v3421_v57  ;;  %vm3431_vm0 = vcmp.eq.f32.partialorder %v3421_v57, inf  ;;  %v3434_v18 = vand.u32 2147483648, %v3421_v57  ;;  %vm3433_vm1 = vcmp.eq.f32.partialorder %v3421_v57, 0.0 }
0x15ae   : > { %v5045_v37 = vpop.eup %5044 }
0x15af   : > { %v3423_v60 = vmul.f32 %v5045_v37, %v3420_v7 }
0x15b1   : > { %v3425_v12 = vsel %vm3424_vm14, %v3420_v7, %v3423_v60 }
0x15b2   : > { %v5047_v14 = vpop.eup %5046  ;;  %v3428_v15 = vsel %vm3426_vm15, %v3427_v11, %v3425_v12 }
0x15b3   : > { %v3430_v17 = vmul.f32 %v5047_v14, %v3421_v57  ;;  %v3445_v48 = vadd.f32 1e-06, %v3428_v15 }
0x15b5   : > { %v3432_v19 = vsel %vm3431_vm0, %v3421_v57, %v3430_v17  ;;  %5048 = vrcp.f32 %v3445_v48 }
0x15b6   : > { %v3435_v41 = vsel %vm3433_vm1, %v3434_v18, %v3432_v19 }
0x15b7   : > { %v3446_v24 = vadd.f32 1e-06, %v3435_v41 }
0x15b9   : > { %5050 = vrcp.f32 %v3446_v24 }
0x15bf   : > { %v5049_v27 = vpop.eup %5048 }
0x15c0   : > { %v3448_v1 = vmul.f32 %v5049_v27, %v3443_v23 }
0x15c2   : > { %v3458_v36 = vadd.f32 %v3988_v28, %v3448_v1 }
0x15c3   : > { %v5051_v49 = vpop.eup %5050 }
0x15c4   : > { %3569 = vmatmul.mubr.f32.vlgmr.msra.gmra.mrb[30].mxu1 %v3458_v36  ;;  %v3450_v13 = vmul.f32 %v5051_v49, %v3444_v34 }
0x15c5   : > { %3574 = vmatprep.mubr.f32.mxu1 %v5444_v59  ;;  %v3497_v59 = vrot.slane %v3492_v54, %v6001_v50 }
0x15c6   : > { %v3459_v16 = vadd.f32 %v3988_v28, %v3450_v13 }
0x15c8   : > { %3575 = vmatmul.mubr.f32.gmra.mrb[32].mxu1 %v3459_v16 }
0x1697   : > { %v3570_v46 = vpop.f32.mrb[30].mxu1 }
0x1698   : > { %v3571_v25 = vadd.f32 %v3570_v46, %v3497_v59  ;;  %v3572_v47 = vpop.f32.mrb[31].mxu1 }
0x1699   : > { %v3573_v29 = vadd.f32 %v3572_v47, %v3501_v26 }
0x169a   : > { %v3581_v51 = vmax.f32 %v3571_v25, 0.0 }
0x169b   : > { %v3582_v4 = vmax.f32 %v3573_v29, 0.0  ;;  %v3576_v0 = vpop.f32.mrb[32].mxu1 }
0x169c   : > { %v3577_v8 = vadd.f32 %v3576_v0, %v3497_v59  ;;  %v3578_v52 = vpop.f32.mrb[33].mxu1 }
0x169d   : > { %v3579_v55 = vadd.f32 %v3578_v52, %v3501_v26  ;;  %3681 = vmatprep.mubr.f32.mxu0 %v3582_v4 }
0x169e   : > { %3682 = vmatmul.mubr.f32.vlgmr.msra.gmra.mrb[18].mxu0 %v3581_v51  ;;  %v3583_v61 = vmax.f32 %v3577_v8, 0.0 }
0x169f   : > { %v3584_v56 = vmax.f32 %v3579_v55, 0.0 }
0x16a1   : > { %3686 = vmatprep.mubr.f32.mxu0 %v3584_v56 }
0x16a2   : > { %3687 = vmatmul.mubr.f32.gmra.mrb[20].mxu0 %v3583_v61 }
0x1771   : > { %v4166_v50 = vpop.f32.mrb[18].mxu0 }
0x1772   : > { %v4167_v53 = vpop.f32.mrb[19].mxu0 }
0x1773   : > { %v4168_v62 = vadd.f32 %v4167_v53, %v4166_v50 }
0x1775   : > { %v3692_v2 = vadd.f32 %v4168_v62, %v6330_v33  ;;  %v4169_v32 = vpop.f32.mrb[20].mxu0 }
0x1776   : > { %v4170_v9 = vpop.f32.mrb[21].mxu0 }
0x1777   : > { %v3701_v3 = vadd.f32 %v3989_v63, %v3692_v2  ;;  %v4171_v5 = vadd.f32 %v4170_v9, %v4169_v32 }
0x1779   : > { %3703 = vst [vmem:[%s976_s21] sm:$0xff] %v3701_v3  ;;  %v3693_v31 = vadd.f32 %v4171_v5, %v6327_v30 }
0x177b   : > { %v3702_v33 = vadd.f32 %v3989_v63, %v3693_v31 }
0x177d   : > { %3704 = vst [vmem:[%s976_s21 + $0x8] sm:$0xff] %v3702_v33 }
0x177e   : > { %5349 = shalt.err (!%p5346_p11)
}
0x177f   : > { %s5350_s13 = scalar_lea.hbm %s6370_s6, 256  ;;  %s5354_s18 = scalar_lea.hbm %s6527_s7, 512 }
0x1780   : > { %p5351_p12 = scmp.ne.s32.totalorder %s6370_s6, %s5350_s13  ;;  %p5355_p7 = scmp.lt.u32.totalorder %s6370_s6, %s6527_s7 }
0x1781   : > { %p5356_p9 = scmp.lt.u32.totalorder %s5354_s18, %s5350_s13  ;;  %p5358_p2 = scmp.lt.u32.totalorder %s5350_s13, %s6370_s6 }
0x1782   : > { %p5352_p6 = pnand %p5351_p12, %p6528_p5 }
0x1783   : > { %p5357_p0 = por %p5356_p9, %p5355_p7 }
0x1784   : > { %p5353_p13 = pneg %p5352_p6 }
0x1785   : > { %p5359_p8 = por %p5358_p2, %p5357_p0 }
0x1787   : > { %p5360_p4 = pnand %p5359_p8, %p5353_p13 }
0x1789   : > { %5363 = shalt.err (!%p5360_p4)
}
0x178a   : > { %s5449_s16 = smov 128   ;;  %s5450_s21 = smov 8  }
0x178b   : > { %4796 = dma.vmem_to_hbm [thread:$0]  (%p6528_p5), %s6364_s4, 256, %s6370_s6, %s3706_s14, %s5449_s16, %s5449_s16, %s5450_s21  }
0x178c PF: > { %s3734_s23 = sand.u32 1, %s5414_s27   ;;  %p6529_p3 = scmp.ne.s32.totalorder %s6498_s1, 0 }
0x178d   : > { %p6530_p10 = scmp.ge.s32.totalorder %s5426_s25, 2  ;;  %s3735_s26 = scalar_lea.sflag [#allocation5], %s3734_s23 }
0x178f   : > { %p4831_p1 = pnand %p6530_p10, %p6529_p3 }
0x1791   : > { %5409 = dma.done.wait (!%p4831_p1), %s3735_s26, 256  }
0x1792   : > { %5411 = vsyncadd (!%p4831_p1), %s3735_s26, 4294967040  ;;  %s6531_s0 = sld [smem:[#allocation29_spill]]  ;;  %p46_p11 = scmp.ge.s32.totalorder %s5816_s29, 4  }
0x1793   : > { %s6532_s27 = smov %s5418_s3  ;;  %s6533_s3 = smov %s5422_s24 }
0x1794   : > { %s6535_s25 = smov %s5816_s29  ;;  %48 = sbr.rel (!%p46_p11) target bundleno = 35 (0x23), region = 217 }
0x1798   : > { %s6534_s24 = smov %s6531_s0 }
0x179b   :  { %3740 = vsyncpa [#allocation4], 1 }
0x179c   :  { %3742 = vsyncpa [#allocation4 + $0x1], 1 }
0x179d   :  { %3743 = vsyncpa [#allocation7], 1 }
0x179e   :  { %3745 = vsyncpa [#allocation7 + $0x1], 1 }
0x179f   :  { %3746 = vsyncpa [#allocation10], 1 }
0x17a0   :  { %3747 = vsyncpa [#allocation13], 1 }
0x17a1   :  { %3748 = vsyncpa [#allocation16], 1 }
0x17a2   :  { %3749 = vsyncpa [#allocation19], 1 }
0x17a3   :  { %3750 = vsyncpa [#allocation5], 1 }
0x17a4   :  { %3752 = vsyncpa [#allocation5 + $0x1], 1 }

</bundles_post_ra>
